<compile_context>
chip_gen: v5e
topology: v5e:2x2
jax: 0.10.0
libtpu: 0.0.40
codegen_flags: <defaults>
</compile_context>

<pallas_src>
import jax
import jax.numpy as jnp
from jax import lax
from jax.experimental import pallas as pl
from jax.experimental.pallas import tpu as pltpu

C_IN, C_MID, C_OUT = 128, 63, 24
C_MID_P = 64          # conv1 out-channels padded to a sublane multiple
BN_EPS = 1e-5


def _extended_decoder_kernel(x_ref, m_ref, w1_ref, b1_ref, w2_ref, b2_ref,
                             o_ref):
    # x_ref : (C_IN, PXt)        bf16  flat padded input slab (row stride Wp)
    # m_ref : (1, LYt)           f32   conv2-input validity mask
    # w1_ref: (C_MID_P, 9*C_IN)  bf16  BN-folded conv1 weights, 9 taps on K
    # b1_ref: (C_MID_P, 1)       f32
    # w2_ref: (C_OUT, 9*C_MID_P) bf16
    # b2_ref: (C_OUT, 1)         f32
    # o_ref : (C_OUT, TH, Wp)    f32   NCHW output tile (cols 2..W+1 valid)
    TH = o_ref.shape[1]
    Wp = o_ref.shape[2]
    LY = m_ref.shape[1]            # (TH + 2) * Wp + 2
    LO = TH * Wp

    # ---- Conv1 (128 -> 63, BN folded): 9 taps fused along K = 1152 ----
    p1 = jnp.concatenate(
        [x_ref[:, dy * Wp + dx: dy * Wp + dx + LY]
         for dy in range(3) for dx in range(3)], axis=0)      # (9*C_IN, LY)
    y = jnp.dot(w1_ref[...], p1, preferred_element_type=jnp.float32)
    y = y + b1_ref[...]                                       # (C_MID_P, LY)

    # ---- SiLU: x * sigmoid(x), reciprocal on the EUP slot ----
    y = y * pl.reciprocal(1.0 + jnp.exp(-y), approx=True)

    # ---- zero conv2's SAME-padding ring + junk stride columns ----
    y = (y * m_ref[...]).astype(jnp.bfloat16)

    # ---- Conv2 (63 -> 24): 9 taps fused along K = 576 ----
    p2 = jnp.concatenate(
        [y[:, dy * Wp + dx: dy * Wp + dx + LO]
         for dy in range(3) for dx in range(3)], axis=0)      # (9*C_MID_P, LO)
    o = jnp.dot(w2_ref[...], p2, preferred_element_type=jnp.float32)
    o = o + b2_ref[...]                                       # (C_OUT, LO)

    # ---- unflatten rows into the NCHW output block ----
    for r in range(TH):
        o_ref[:, r, :] = o[:, r * Wp:(r + 1) * Wp]


def extended_decoder_additional_layers(x_nchw, params, *, tile_h=8):
    """x_nchw: (N, 128, H, W) output of original_decoder (conv_out == Identity)."""
    N, C, H, W = x_nchw.shape
    assert C == C_IN
    assert H % tile_h == 0 and (tile_h % 8 == 0 or tile_h == H), (tile_h, H)
    TH = tile_h
    T = H // TH
    Wp = W + 4
    PXt = (TH + 4) * Wp + 4
    LYt = (TH + 2) * Wp + 2

    # ---- fold eval-mode BatchNorm into conv1 (wrapper side, zero cost) ----
    scale = params["gamma"] * lax.rsqrt(params["var"] + BN_EPS)        # (63,)
    w1f = params["w1"] * scale[None, None, None, :]                    # HWIO
    b1f = (params["b1"] - params["mean"]) * scale + params["beta"]     # (63,)

    # ---- pad conv1 out-channels / conv2 in-channels 63 -> 64 (exact zeros) --
    w1p = jnp.pad(w1f, ((0, 0), (0, 0), (0, 0), (0, C_MID_P - C_MID)))
    b1p = jnp.pad(b1f, ((0, C_MID_P - C_MID),))
    w2p = jnp.pad(params["w2"], ((0, 0), (0, 0), (0, C_MID_P - C_MID), (0, 0)))

    # ---- tap-fused, channel-major bf16 weights ----
    w1cat = jnp.concatenate(
        [w1p[dy, dx].T for dy in range(3) for dx in range(3)],
        axis=1).astype(jnp.bfloat16)                          # (64, 1152)
    w2cat = jnp.concatenate(
        [w2p[dy, dx].T for dy in range(3) for dx in range(3)],
        axis=1).astype(jnp.bfloat16)                          # (24, 576)
    b1c = b1p.reshape(C_MID_P, 1).astype(jnp.float32)
    b2c = params["b2"].reshape(C_OUT, 1).astype(jnp.float32)

    # ---- flat-strided padded input slabs, one per row tile ----
    xp = jnp.pad(x_nchw.astype(jnp.bfloat16), ((0, 0), (0, 0), (2, 2), (2, 2)))
    slabs = jnp.stack(
        [xp[:, :, t * TH: t * TH + TH + 4, :] for t in range(T)], axis=1)
    x_tiles = jnp.pad(slabs.reshape(N, T, C_IN, (TH + 4) * Wp),
                      ((0, 0), (0, 0), (0, 0), (2, 2)))       # (N, T, C_IN, PXt)

    # ---- per-tile conv2-input validity mask (flat, stride Wp, 1 slack/end) --
    col_ok = (jnp.arange(Wp) >= 2) & (jnp.arange(Wp) < W + 2)

    def tile_mask(t):
        yg = t * TH + jnp.arange(TH + 2) - 1          # global rows of conv1 out
        row_ok = (yg >= 0) & (yg < H)
        m = (row_ok[:, None] & col_ok[None, :]).astype(jnp.float32).reshape(-1)
        z1 = jnp.zeros((1,), jnp.float32)
        return jnp.concatenate([z1, m, z1])           # (LYt,)

    masks = jnp.stack([tile_mask(t) for t in range(T)], axis=0)[:, None, :]

    grid_spec = pltpu.PrefetchScalarGridSpec(
        num_scalar_prefetch=0,
        grid=(N, T),
        in_specs=[
            pl.BlockSpec((None, None, C_IN, PXt), lambda n, t: (n, t, 0, 0)),
            pl.BlockSpec((None, 1, LYt), lambda n, t: (t, 0, 0)),
            pl.BlockSpec((C_MID_P, 9 * C_IN), lambda n, t: (0, 0)),
            pl.BlockSpec((C_MID_P, 1), lambda n, t: (0, 0)),
            pl.BlockSpec((C_OUT, 9 * C_MID_P), lambda n, t: (0, 0)),
            pl.BlockSpec((C_OUT, 1), lambda n, t: (0, 0)),
        ],
        out_specs=pl.BlockSpec((None, C_OUT, TH, Wp), lambda n, t: (n, 0, t, 0)),
    )

    out = pl.pallas_call(
        _extended_decoder_kernel,
        out_shape=jax.ShapeDtypeStruct((N, C_OUT, H, Wp), jnp.float32),
        grid_spec=grid_spec,
        compiler_params=pltpu.CompilerParams(
            dimension_semantics=("parallel", "parallel")),
    )(x_tiles, masks, w1cat, b1c, w2cat, b2c)

    return out[:, :, :, 2:W + 2]                      # drop the stride columns


def ref_forward(x, p):
    """Pure-JAX f32 reference of additional_layers (eval-mode BatchNorm)."""
    dn = ("NCHW", "HWIO", "NCHW")
    y = lax.conv_general_dilated(x, p["w1"], (1, 1), "SAME",
                                 dimension_numbers=dn)
    y = y + p["b1"][None, :, None, None]
    y = ((y - p["mean"][None, :, None, None])
         * lax.rsqrt(p["var"] + BN_EPS)[None, :, None, None]
         * p["gamma"][None, :, None, None] + p["beta"][None, :, None, None])
    y = y * jax.nn.sigmoid(y)
    y = lax.conv_general_dilated(y, p["w2"], (1, 1), "SAME",
                                 dimension_numbers=dn)
    return y + p["b2"][None, :, None, None]


if __name__ == "__main__":
    key = jax.random.PRNGKey(0)
    ks = jax.random.split(key, 9)

    # x = output of original_decoder (128 channels), small spatial size
    x = jax.random.normal(ks[0], (2, C_IN, 16, 16), jnp.float32)

    params = {
        "w1":    0.05 * jax.random.normal(ks[1], (3, 3, C_IN, C_MID), jnp.float32),
        "b1":    0.10 * jax.random.normal(ks[2], (C_MID,), jnp.float32),
        "gamma": 1.0 + 0.1 * jax.random.normal(ks[3], (C_MID,), jnp.float32),
        "beta":  0.10 * jax.random.normal(ks[4], (C_MID,), jnp.float32),
        "mean":  0.10 * jax.random.normal(ks[5], (C_MID,), jnp.float32),
        "var":   jax.random.uniform(ks[6], (C_MID,), jnp.float32, 0.5, 1.5),
        "w2":    0.05 * jax.random.normal(ks[7], (3, 3, C_MID, C_OUT), jnp.float32),
        "b2":    0.10 * jax.random.normal(ks[8], (C_OUT,), jnp.float32),
    }

    out = extended_decoder_additional_layers(x, params, tile_h=8)
    out = jax.block_until_ready(out)

    ref = ref_forward(x, params)
    assert out.shape == (2, C_OUT, 16, 16), out.shape
    # bf16 activations/weights + approx reciprocal in SiLU -> loosened tolerance
    assert jnp.allclose(out, ref, atol=1e-1, rtol=1e-1), \
        float(jnp.max(jnp.abs(out - ref)))
    print("KERNEL_OK")
</pallas_src>

<mosaic_0001>
module attributes {stable_mosaic.version = 11 : i64} {
  func.func @_extended_decoder_kernel(%arg0: i32, %arg1: i32, %arg2: memref<1x1x128x244xbf16, #tpu.memory_space<vmem>>, %arg3: memref<1x1x202xf32, #tpu.memory_space<vmem>>, %arg4: memref<64x1152xbf16, #tpu.memory_space<vmem>>, %arg5: memref<64x1xf32, #tpu.memory_space<vmem>>, %arg6: memref<24x576xbf16, #tpu.memory_space<vmem>>, %arg7: memref<24x1xf32, #tpu.memory_space<vmem>>, %arg8: memref<1x24x8x20xf32, #tpu.memory_space<vmem>>) attributes {dimension_semantics = [#tpu.dimension_semantics<parallel>, #tpu.dimension_semantics<parallel>], iteration_bounds = array<i64: 2, 2>, scalar_prefetch = 0 : i64, scratch_operands = 0 : i64, tpu.core_type = #tpu.core_type<tc>, window_params = [{transform_indices = @transform_0, window_bounds = array<i64: 1, 1, 128, 244>}, {transform_indices = @transform_1, window_bounds = array<i64: 1, 1, 202>}, {pipeline_mode = #tpu.pipeline_mode<synchronous>, transform_indices = @transform_2, window_bounds = array<i64: 64, 1152>}, {pipeline_mode = #tpu.pipeline_mode<synchronous>, transform_indices = @transform_3, window_bounds = array<i64: 64, 1>}, {pipeline_mode = #tpu.pipeline_mode<synchronous>, transform_indices = @transform_4, window_bounds = array<i64: 24, 576>}, {pipeline_mode = #tpu.pipeline_mode<synchronous>, transform_indices = @transform_5, window_bounds = array<i64: 24, 1>}, {transform_indices = @transform_6, window_bounds = array<i64: 1, 24, 8, 20>}]} {
    %c0 = arith.constant 0 : index
    %c0_0 = arith.constant 0 : index
    %c0_1 = arith.constant 0 : index
    %c0_2 = arith.constant 0 : index
    %0 = vector.load %arg2[%c0, %c0_0, %c0_1, %c0_2] : memref<1x1x128x244xbf16, #tpu.memory_space<vmem>>, vector<1x1x128x202xbf16>
    %1 = vector.shape_cast %0 : vector<1x1x128x202xbf16> to vector<128x202xbf16>
    %c0_3 = arith.constant 0 : index
    %c0_4 = arith.constant 0 : index
    %c0_5 = arith.constant 0 : index
    %c1 = arith.constant 1 : index
    %2 = vector.load %arg2[%c0_3, %c0_4, %c0_5, %c1] : memref<1x1x128x244xbf16, #tpu.memory_space<vmem>>, vector<1x1x128x202xbf16>
    %3 = vector.shape_cast %2 : vector<1x1x128x202xbf16> to vector<128x202xbf16>
    %c0_6 = arith.constant 0 : index
    %c0_7 = arith.constant 0 : index
    %c0_8 = arith.constant 0 : index
    %c2 = arith.constant 2 : index
    %4 = vector.load %arg2[%c0_6, %c0_7, %c0_8, %c2] : memref<1x1x128x244xbf16, #tpu.memory_space<vmem>>, vector<1x1x128x202xbf16>
    %5 = vector.shape_cast %4 : vector<1x1x128x202xbf16> to vector<128x202xbf16>
    %c0_9 = arith.constant 0 : index
    %c0_10 = arith.constant 0 : index
    %c0_11 = arith.constant 0 : index
    %c20 = arith.constant 20 : index
    %6 = vector.load %arg2[%c0_9, %c0_10, %c0_11, %c20] : memref<1x1x128x244xbf16, #tpu.memory_space<vmem>>, vector<1x1x128x202xbf16>
    %7 = vector.shape_cast %6 : vector<1x1x128x202xbf16> to vector<128x202xbf16>
    %c0_12 = arith.constant 0 : index
    %c0_13 = arith.constant 0 : index
    %c0_14 = arith.constant 0 : index
    %c21 = arith.constant 21 : index
    %8 = vector.load %arg2[%c0_12, %c0_13, %c0_14, %c21] : memref<1x1x128x244xbf16, #tpu.memory_space<vmem>>, vector<1x1x128x202xbf16>
    %9 = vector.shape_cast %8 : vector<1x1x128x202xbf16> to vector<128x202xbf16>
    %c0_15 = arith.constant 0 : index
    %c0_16 = arith.constant 0 : index
    %c0_17 = arith.constant 0 : index
    %c22 = arith.constant 22 : index
    %10 = vector.load %arg2[%c0_15, %c0_16, %c0_17, %c22] : memref<1x1x128x244xbf16, #tpu.memory_space<vmem>>, vector<1x1x128x202xbf16>
    %11 = vector.shape_cast %10 : vector<1x1x128x202xbf16> to vector<128x202xbf16>
    %c0_18 = arith.constant 0 : index
    %c0_19 = arith.constant 0 : index
    %c0_20 = arith.constant 0 : index
    %c40 = arith.constant 40 : index
    %12 = vector.load %arg2[%c0_18, %c0_19, %c0_20, %c40] : memref<1x1x128x244xbf16, #tpu.memory_space<vmem>>, vector<1x1x128x202xbf16>
    %13 = vector.shape_cast %12 : vector<1x1x128x202xbf16> to vector<128x202xbf16>
    %c0_21 = arith.constant 0 : index
    %c0_22 = arith.constant 0 : index
    %c0_23 = arith.constant 0 : index
    %c41 = arith.constant 41 : index
    %14 = vector.load %arg2[%c0_21, %c0_22, %c0_23, %c41] : memref<1x1x128x244xbf16, #tpu.memory_space<vmem>>, vector<1x1x128x202xbf16>
    %15 = vector.shape_cast %14 : vector<1x1x128x202xbf16> to vector<128x202xbf16>
    %c0_24 = arith.constant 0 : index
    %c0_25 = arith.constant 0 : index
    %c0_26 = arith.constant 0 : index
    %c42 = arith.constant 42 : index
    %16 = vector.load %arg2[%c0_24, %c0_25, %c0_26, %c42] : memref<1x1x128x244xbf16, #tpu.memory_space<vmem>>, vector<1x1x128x202xbf16>
    %17 = vector.shape_cast %16 : vector<1x1x128x202xbf16> to vector<128x202xbf16>
    %18 = tpu.concatenate %1, %3, %5, %7, %9, %11, %13, %15, %17 in 0 : vector<128x202xbf16>, vector<128x202xbf16>, vector<128x202xbf16>, vector<128x202xbf16>, vector<128x202xbf16>, vector<128x202xbf16>, vector<128x202xbf16>, vector<128x202xbf16>, vector<128x202xbf16> -> vector<1152x202xbf16>
    %c0_27 = arith.constant 0 : index
    %c0_28 = arith.constant 0 : index
    %19 = vector.load %arg4[%c0_27, %c0_28] : memref<64x1152xbf16, #tpu.memory_space<vmem>>, vector<64x1152xbf16>
    %cst = arith.constant dense<0.000000e+00> : vector<64x202xf32>
    %20 = tpu.matmul %19, %18, %cst {dimension_numbers = #tpu.dot_dimension_numbers<[1], [0], [0], [1], [0, 0, 1, 1], [], []>} : vector<64x1152xbf16>, vector<1152x202xbf16>, vector<64x202xf32> -> vector<64x202xf32>
    %c0_29 = arith.constant 0 : index
    %c0_30 = arith.constant 0 : index
    %21 = vector.load %arg5[%c0_29, %c0_30] : memref<64x1xf32, #tpu.memory_space<vmem>>, vector<64x1xf32>
    %22 = vector.broadcast %21 : vector<64x1xf32> to vector<64x202xf32>
    %23 = arith.addf %20, %22 : vector<64x202xf32>
    %cst_31 = arith.constant 0.000000e+00 : f32
    %24 = vector.broadcast %cst_31 : f32 to vector<64x202xf32>
    %25 = arith.subf %24, %23 : vector<64x202xf32>
    %26 = math.exp %25 : vector<64x202xf32>
    %cst_32 = arith.constant 1.000000e+00 : f32
    %27 = vector.broadcast %cst_32 : f32 to vector<64x202xf32>
    %28 = arith.addf %27, %26 : vector<64x202xf32>
    %29 = tpu.reciprocal %28 {approx = true} : vector<64x202xf32> -> vector<64x202xf32>
    %30 = arith.mulf %23, %29 : vector<64x202xf32>
    %c0_33 = arith.constant 0 : index
    %c0_34 = arith.constant 0 : index
    %c0_35 = arith.constant 0 : index
    %31 = vector.load %arg3[%c0_33, %c0_34, %c0_35] : memref<1x1x202xf32, #tpu.memory_space<vmem>>, vector<1x1x202xf32>
    %32 = vector.shape_cast %31 : vector<1x1x202xf32> to vector<1x202xf32>
    %33 = vector.broadcast %32 : vector<1x202xf32> to vector<64x202xf32>
    %34 = arith.mulf %30, %33 : vector<64x202xf32>
    %35 = arith.truncf %34 : vector<64x202xf32> to vector<64x202xbf16>
    %36 = vector.extract_strided_slice %35 {offsets = [0, 0], sizes = [64, 160], strides = [1, 1]} : vector<64x202xbf16> to vector<64x160xbf16>
    %37 = vector.extract_strided_slice %35 {offsets = [0, 1], sizes = [64, 160], strides = [1, 1]} : vector<64x202xbf16> to vector<64x160xbf16>
    %38 = vector.extract_strided_slice %35 {offsets = [0, 2], sizes = [64, 160], strides = [1, 1]} : vector<64x202xbf16> to vector<64x160xbf16>
    %39 = vector.extract_strided_slice %35 {offsets = [0, 20], sizes = [64, 160], strides = [1, 1]} : vector<64x202xbf16> to vector<64x160xbf16>
    %40 = vector.extract_strided_slice %35 {offsets = [0, 21], sizes = [64, 160], strides = [1, 1]} : vector<64x202xbf16> to vector<64x160xbf16>
    %41 = vector.extract_strided_slice %35 {offsets = [0, 22], sizes = [64, 160], strides = [1, 1]} : vector<64x202xbf16> to vector<64x160xbf16>
    %42 = vector.extract_strided_slice %35 {offsets = [0, 40], sizes = [64, 160], strides = [1, 1]} : vector<64x202xbf16> to vector<64x160xbf16>
    %43 = vector.extract_strided_slice %35 {offsets = [0, 41], sizes = [64, 160], strides = [1, 1]} : vector<64x202xbf16> to vector<64x160xbf16>
    %44 = vector.extract_strided_slice %35 {offsets = [0, 42], sizes = [64, 160], strides = [1, 1]} : vector<64x202xbf16> to vector<64x160xbf16>
    %45 = tpu.concatenate %36, %37, %38, %39, %40, %41, %42, %43, %44 in 0 : vector<64x160xbf16>, vector<64x160xbf16>, vector<64x160xbf16>, vector<64x160xbf16>, vector<64x160xbf16>, vector<64x160xbf16>, vector<64x160xbf16>, vector<64x160xbf16>, vector<64x160xbf16> -> vector<576x160xbf16>
    %c0_36 = arith.constant 0 : index
    %c0_37 = arith.constant 0 : index
    %46 = vector.load %arg6[%c0_36, %c0_37] : memref<24x576xbf16, #tpu.memory_space<vmem>>, vector<24x576xbf16>
    %cst_38 = arith.constant dense<0.000000e+00> : vector<24x160xf32>
    %47 = tpu.matmul %46, %45, %cst_38 {dimension_numbers = #tpu.dot_dimension_numbers<[1], [0], [0], [1], [0, 0, 1, 1], [], []>} : vector<24x576xbf16>, vector<576x160xbf16>, vector<24x160xf32> -> vector<24x160xf32>
    %c0_39 = arith.constant 0 : index
    %c0_40 = arith.constant 0 : index
    %48 = vector.load %arg7[%c0_39, %c0_40] : memref<24x1xf32, #tpu.memory_space<vmem>>, vector<24x1xf32>
    %49 = vector.broadcast %48 : vector<24x1xf32> to vector<24x160xf32>
    %50 = arith.addf %47, %49 : vector<24x160xf32>
    %51 = vector.extract_strided_slice %50 {offsets = [0, 0], sizes = [24, 20], strides = [1, 1]} : vector<24x160xf32> to vector<24x20xf32>
    %c0_41 = arith.constant 0 : index
    %c0_42 = arith.constant 0 : index
    %c0_43 = arith.constant 0 : index
    %c0_44 = arith.constant 0 : index
    %52 = vector.load %arg8[%c0_41, %c0_42, %c0_43, %c0_44] : memref<1x24x8x20xf32, #tpu.memory_space<vmem>>, vector<1x24x1x20xf32>
    %53 = vector.shape_cast %52 : vector<1x24x1x20xf32> to vector<24x20xf32>
    %54 = vector.shape_cast %51 : vector<24x20xf32> to vector<1x24x1x20xf32>
    tpu.vector_store %arg8[%c0_41, %c0_42, %c0_43, %c0_44], %54 {strides = array<i32>} : memref<1x24x8x20xf32, #tpu.memory_space<vmem>>, vector<1x24x1x20xf32>,
    %55 = vector.extract_strided_slice %50 {offsets = [0, 20], sizes = [24, 20], strides = [1, 1]} : vector<24x160xf32> to vector<24x20xf32>
    %c0_45 = arith.constant 0 : index
    %c0_46 = arith.constant 0 : index
    %c1_47 = arith.constant 1 : index
    %c0_48 = arith.constant 0 : index
    %56 = vector.load %arg8[%c0_45, %c0_46, %c1_47, %c0_48] : memref<1x24x8x20xf32, #tpu.memory_space<vmem>>, vector<1x24x1x20xf32>
    %57 = vector.shape_cast %56 : vector<1x24x1x20xf32> to vector<24x20xf32>
    %58 = vector.shape_cast %55 : vector<24x20xf32> to vector<1x24x1x20xf32>
    tpu.vector_store %arg8[%c0_45, %c0_46, %c1_47, %c0_48], %58 {strides = array<i32>} : memref<1x24x8x20xf32, #tpu.memory_space<vmem>>, vector<1x24x1x20xf32>,
    %59 = vector.extract_strided_slice %50 {offsets = [0, 40], sizes = [24, 20], strides = [1, 1]} : vector<24x160xf32> to vector<24x20xf32>
    %c0_49 = arith.constant 0 : index
    %c0_50 = arith.constant 0 : index
    %c2_51 = arith.constant 2 : index
    %c0_52 = arith.constant 0 : index
    %60 = vector.load %arg8[%c0_49, %c0_50, %c2_51, %c0_52] : memref<1x24x8x20xf32, #tpu.memory_space<vmem>>, vector<1x24x1x20xf32>
    %61 = vector.shape_cast %60 : vector<1x24x1x20xf32> to vector<24x20xf32>
    %62 = vector.shape_cast %59 : vector<24x20xf32> to vector<1x24x1x20xf32>
    tpu.vector_store %arg8[%c0_49, %c0_50, %c2_51, %c0_52], %62 {strides = array<i32>} : memref<1x24x8x20xf32, #tpu.memory_space<vmem>>, vector<1x24x1x20xf32>,
    %63 = vector.extract_strided_slice %50 {offsets = [0, 60], sizes = [24, 20], strides = [1, 1]} : vector<24x160xf32> to vector<24x20xf32>
    %c0_53 = arith.constant 0 : index
    %c0_54 = arith.constant 0 : index
    %c3 = arith.constant 3 : index
    %c0_55 = arith.constant 0 : index
    %64 = vector.load %arg8[%c0_53, %c0_54, %c3, %c0_55] : memref<1x24x8x20xf32, #tpu.memory_space<vmem>>, vector<1x24x1x20xf32>
    %65 = vector.shape_cast %64 : vector<1x24x1x20xf32> to vector<24x20xf32>
    %66 = vector.shape_cast %63 : vector<24x20xf32> to vector<1x24x1x20xf32>
    tpu.vector_store %arg8[%c0_53, %c0_54, %c3, %c0_55], %66 {strides = array<i32>} : memref<1x24x8x20xf32, #tpu.memory_space<vmem>>, vector<1x24x1x20xf32>,
    %67 = vector.extract_strided_slice %50 {offsets = [0, 80], sizes = [24, 20], strides = [1, 1]} : vector<24x160xf32> to vector<24x20xf32>
    %c0_56 = arith.constant 0 : index
    %c0_57 = arith.constant 0 : index
    %c4 = arith.constant 4 : index
    %c0_58 = arith.constant 0 : index
    %68 = vector.load %arg8[%c0_56, %c0_57, %c4, %c0_58] : memref<1x24x8x20xf32, #tpu.memory_space<vmem>>, vector<1x24x1x20xf32>
    %69 = vector.shape_cast %68 : vector<1x24x1x20xf32> to vector<24x20xf32>
    %70 = vector.shape_cast %67 : vector<24x20xf32> to vector<1x24x1x20xf32>
    tpu.vector_store %arg8[%c0_56, %c0_57, %c4, %c0_58], %70 {strides = array<i32>} : memref<1x24x8x20xf32, #tpu.memory_space<vmem>>, vector<1x24x1x20xf32>,
    %71 = vector.extract_strided_slice %50 {offsets = [0, 100], sizes = [24, 20], strides = [1, 1]} : vector<24x160xf32> to vector<24x20xf32>
    %c0_59 = arith.constant 0 : index
    %c0_60 = arith.constant 0 : index
    %c5 = arith.constant 5 : index
    %c0_61 = arith.constant 0 : index
    %72 = vector.load %arg8[%c0_59, %c0_60, %c5, %c0_61] : memref<1x24x8x20xf32, #tpu.memory_space<vmem>>, vector<1x24x1x20xf32>
    %73 = vector.shape_cast %72 : vector<1x24x1x20xf32> to vector<24x20xf32>
    %74 = vector.shape_cast %71 : vector<24x20xf32> to vector<1x24x1x20xf32>
    tpu.vector_store %arg8[%c0_59, %c0_60, %c5, %c0_61], %74 {strides = array<i32>} : memref<1x24x8x20xf32, #tpu.memory_space<vmem>>, vector<1x24x1x20xf32>,
    %75 = vector.extract_strided_slice %50 {offsets = [0, 120], sizes = [24, 20], strides = [1, 1]} : vector<24x160xf32> to vector<24x20xf32>
    %c0_62 = arith.constant 0 : index
    %c0_63 = arith.constant 0 : index
    %c6 = arith.constant 6 : index
    %c0_64 = arith.constant 0 : index
    %76 = vector.load %arg8[%c0_62, %c0_63, %c6, %c0_64] : memref<1x24x8x20xf32, #tpu.memory_space<vmem>>, vector<1x24x1x20xf32>
    %77 = vector.shape_cast %76 : vector<1x24x1x20xf32> to vector<24x20xf32>
    %78 = vector.shape_cast %75 : vector<24x20xf32> to vector<1x24x1x20xf32>
    tpu.vector_store %arg8[%c0_62, %c0_63, %c6, %c0_64], %78 {strides = array<i32>} : memref<1x24x8x20xf32, #tpu.memory_space<vmem>>, vector<1x24x1x20xf32>,
    %79 = vector.extract_strided_slice %50 {offsets = [0, 140], sizes = [24, 20], strides = [1, 1]} : vector<24x160xf32> to vector<24x20xf32>
    %c0_65 = arith.constant 0 : index
    %c0_66 = arith.constant 0 : index
    %c7 = arith.constant 7 : index
    %c0_67 = arith.constant 0 : index
    %80 = vector.load %arg8[%c0_65, %c0_66, %c7, %c0_67] : memref<1x24x8x20xf32, #tpu.memory_space<vmem>>, vector<1x24x1x20xf32>
    %81 = vector.shape_cast %80 : vector<1x24x1x20xf32> to vector<24x20xf32>
    %82 = vector.shape_cast %79 : vector<24x20xf32> to vector<1x24x1x20xf32>
    tpu.vector_store %arg8[%c0_65, %c0_66, %c7, %c0_67], %82 {strides = array<i32>} : memref<1x24x8x20xf32, #tpu.memory_space<vmem>>, vector<1x24x1x20xf32>,
    return
  }
  func.func @transform_0(%arg0: i32, %arg1: i32) -> (i32, i32, i32, i32) {
    %c0_i32 = arith.constant 0 : i32
    %c0_i32_0 = arith.constant 0 : i32
    %c0_i32_1 = arith.constant 0 : i32
    return %arg0, %arg1, %c0_i32, %c0_i32_0 : i32, i32, i32, i32
  }
  func.func @transform_1(%arg0: i32, %arg1: i32) -> (i32, i32, i32) {
    %c0_i32 = arith.constant 0 : i32
    %c0_i32_0 = arith.constant 0 : i32
    %c0_i32_1 = arith.constant 0 : i32
    return %arg1, %c0_i32, %c0_i32_0 : i32, i32, i32
  }
  func.func @transform_2(%arg0: i32, %arg1: i32) -> (i32, i32) {
    %c0_i32 = arith.constant 0 : i32
    %c0_i32_0 = arith.constant 0 : i32
    %c0_i32_1 = arith.constant 0 : i32
    return %c0_i32, %c0_i32_0 : i32, i32
  }
  func.func @transform_3(%arg0: i32, %arg1: i32) -> (i32, i32) {
    %c0_i32 = arith.constant 0 : i32
    %c0_i32_0 = arith.constant 0 : i32
    %c0_i32_1 = arith.constant 0 : i32
    return %c0_i32, %c0_i32_0 : i32, i32
  }
  func.func @transform_4(%arg0: i32, %arg1: i32) -> (i32, i32) {
    %c0_i32 = arith.constant 0 : i32
    %c0_i32_0 = arith.constant 0 : i32
    %c0_i32_1 = arith.constant 0 : i32
    return %c0_i32, %c0_i32_0 : i32, i32
  }
  func.func @transform_5(%arg0: i32, %arg1: i32) -> (i32, i32) {
    %c0_i32 = arith.constant 0 : i32
    %c0_i32_0 = arith.constant 0 : i32
    %c0_i32_1 = arith.constant 0 : i32
    return %c0_i32, %c0_i32_0 : i32, i32
  }
  func.func @transform_6(%arg0: i32, %arg1: i32) -> (i32, i32, i32, i32) {
    %c0_i32 = arith.constant 0 : i32
    %c0_i32_0 = arith.constant 0 : i32
    %c0_i32_1 = arith.constant 0 : i32
    return %arg0, %c0_i32, %arg1, %c0_i32_0 : i32, i32, i32, i32
  }
}

</mosaic_0001>

<bundles_post_ra>
// kernel: tpu_custom_call.1
= control target key start
LH: loop header
LB: loop body
LE: loop exit
PB: predicated region body
PF: predicated region fallthrough
CT: control target
= control target key end

     0   :  { %s4050_s21 = smov 0   ;;  %s4052_s22 = smov 0   ;;  %s7102_s0 = inlined_call_operand.vmem [shape: bf16[2,2,128,244], index: 0, kind: input, shape index: {}]   ;;  %s7103_s1 = inlined_call_operand.vmem [shape: f32[2,1,202], index: 1, kind: input, shape index: {}]   ;;  %s7104_s2 = inlined_call_operand.vmem [shape: bf16[64,1152], index: 2, kind: input, shape index: {}]   ;;  %s7105_s3 = inlined_call_operand.vmem [shape: f32[64,1], index: 3, kind: input, shape index: {}]   ;;  %s7106_s4 = inlined_call_operand.vmem [shape: bf16[24,576], index: 4, kind: input, shape index: {}]   ;;  %s7107_s5 = inlined_call_operand.vmem [shape: f32[24,1], index: 5, kind: input, shape index: {}]   ;;  %s7108_s6 = inlined_call_operand.vmem [shape: f32[2,24,16,20], index: 6, kind: output, shape index: {}]  }
   0x1   :  { %s4054_s23 = smov 0   ;;  %s4056_s24 = smov 0  }
   0x2   :  { %s4058_s25 = smov 0   ;;  %s4060_s26 = smov 0  }
   0x3   :  { %s4062_s27 = smov 0  }
   0x4 LB: > { %s25_s28 = sadd.s32 1, %s3991_s25  ;;  %s28_s29 = sadd.s32 1, %s3995_s26  ;;  %s3999_s27 = sphi %s4062_s27, %s16_s27   ;;  %s3995_s26 = sphi %s4060_s26, %s7240_s26   ;;  %s3991_s25 = sphi %s4058_s25, %s7239_s25   ;;  %s3987_s24 = sphi %s4056_s24, %s7238_s24   ;;  %s3983_s23 = sphi %s4054_s23, %s7237_s23   ;;  %s3979_s22 = sphi %s4052_s22, %s7236_s22   ;;  %s3975_s21 = sphi %s4050_s21, %s7235_s21  }
   0x5   : > { %p26_p0 = scmp.ge.s32.totalorder %s25_s28, 2  ;;  %s3493_s30 = sadd.s32 4294967295, %s3999_s27  }
   0x6   : > { %p185_p1 = scmp.ne.s32.totalorder %s3979_s22, %s3975_s21  ;;  %p186_p2 = scmp.eq.s32.totalorder %s3493_s30, 3 }
   0x7   : > { %s7242_s28 = smov (%p26_p0, %s25_s28), 0  ;;  %s7244_s29 = smov (!%p26_p0, %s28_s29), %s3995_s26 }
   0x8   : > { %s171_s7 = ssub.s32 %s3991_s25, %s7242_s28  ;;  %p30_p3 = scmp.ge.s32.totalorder %s7244_s29, 2 }
   0x9   : > { %p3497_p4 = scmp.ge.s32.totalorder %s3999_s27, 1  ;;  %p4096_p5 = por %p186_p2, %p185_p1 }
   0xa   : > { %p241_p6 = scmp.lt.s32.totalorder %s3999_s27, 5  ;;  %s7246_s29 = smov (%p30_p3, %s7244_s29), 0 }
   0xb   : > { %s170_s9 = ssub.s32 %s3995_s26, %s7246_s29  ;;  %s175_s11 = sadd.s32 1, %s3979_s22 }
   0xc   : > { %p242_p7 = pnand %p3497_p4, %p241_p6  ;;  %s172_s10 = sor.u32 %s171_s7, %s170_s9 }
   0xd   : > { %p173_p8 = scmp.eq.s32.totalorder %s172_s10, 0 }
   0xe   : > { %245 = sbr.rel (%p242_p7) target bundleno = 1894 (0x766), region = 44 }
   0xf   : > { %s4107_s12 = scalar_select %p173_p8, %s3979_s22, %s175_s11  }
  0x13   : > { %p278_p9 = scmp.lt.s32.totalorder %s3987_s24, 1  ;;  %p280_p10 = scmp.lt.s32.totalorder %s3983_s23, 1  ;;  %vm420_vm0 = vcmask 1039360   ;;  %vm477_vm1 = vcmask 1031168   ;;  %vm534_vm2 = vcmask 883712   ;;  %vm591_vm3 = vcmask 875520  }
  0x14   : > { %s4001_s7 = smov 127   ;;  %s4002_s9 = smov 126   ;;  %vm648_vm4 = vcmask 867328   ;;  %vm705_vm5 = vcmask 719872   ;;  %vm762_vm6 = vcmask 711680   ;;  %vm819_vm7 = vcmask 703488  }
  0x15   : > { %s279_s13 = scalar_select %p278_p9, %s3987_s24, 1  ;;  %vm2097_vm8 = vcmask 523264   ;;  %vm2329_vm9 = vcmask 155648   ;;  %vm2866_vm10 = vcmask 1041409   ;;  %vm2864_vm11 = vcmask 1040384  }
  0x16   : > { %s4113_s14 = scalar_select %p280_p10, %s3983_s23, 1  ;;  %vm2869_vm12 = vcmask 1042434   ;;  %vm2875_vm13 = vcmask 1044484   ;;  %vm2872_vm14 = vcmask 1043459   ;;  %vm2878_vm15 = vcmask 1045509  }
  0x17   : > { %s3499_s15 = sshll.u32 %s279_s13, 6  ;;  %s4003_s10 = smov 108  }
  0x18   : > { %s3498_s16 = sshll.u32 %s4113_s14, 5  ;;  %s7113_s11 = smov 107  }
  0x19   : > { %s284_s17 = sadd.s32 %s3499_s15, %s3498_s16  ;;  %s7111_s13 = smov 106  }
  0x1a   : > { %s3500_s18 = sshll.u32 %s284_s17, 2  ;;  %s7109_s15 = smov 88  }
  0x1b   : > { %s4119_s30 = scalar_lea.vmem %s7102_s0, %s3500_s18  ;;  %s7125_s16 = smov 87  }
  0x1c   : > { %v3512_v0 = vld [vmem:[%s4119_s30 + $0x10] sm:$0xf]  ;;  %v3740_v1 = vld [vmem:[%s4119_s30 + $0x14] sm:$0xf0]  ;;  %v3504_v2 = vld [vmem:[%s4119_s30] sm:$0xf] }
  0x1d   : > { %v4124_v3 = vor.u32 %v3740_v1, %v3512_v0  ;;  %v3738_v4 = vld [vmem:[%s4119_s30 + $0x4] sm:$0xf0]  ;;  %v3739_v6 = vld [vmem:[%s4119_s30 + $0x14] sm:$0xf]  ;;  %v3514_v7 = vld [vmem:[%s4119_s30 + $0x18] sm:$0xf0] }
  0x1e   : > { %v4127_v5 = vor.u32 %v3738_v4, %v3504_v2  ;;  %v3520_v8 = vld [vmem:[%s4119_s30 + $0x20] sm:$0xf]  ;;  %v3742_v9 = vld [vmem:[%s4119_s30 + $0x24] sm:$0xf0]  ;;  %v3737_v10 = vld [vmem:[%s4119_s30 + $0x4] sm:$0xf]  ;;  %v4141_v13 = vor.u32 %v3739_v6, %v3514_v7 }
  0x1f   : > { %392 = vrot.lane.b32.xlu1 %v4124_v3, %s4001_s7  ;;  %v3506_v11 = vld [vmem:[%s4119_s30 + $0x8] sm:$0xf0]  ;;  %v4139_v12 = vor.u32 %v3742_v9, %v3520_v8  ;;  %v3741_v15 = vld [vmem:[%s4119_s30 + $0x24] sm:$0xf]  ;;  %v3743_v18 = vld [vmem:[%s4119_s30 + $0x34] sm:$0xf] }
  0x20   : > { %388 = vrot.lane.b32.xlu0 %v4127_v5, %s4001_s7  ;;  %v4145_v14 = vor.u32 %v3737_v10, %v3506_v11  ;;  %v3522_v16 = vld [vmem:[%s4119_s30 + $0x28] sm:$0xf0]  ;;  %v3530_v19 = vld [vmem:[%s4119_s30 + $0x38] sm:$0xf0]  ;;  %v3528_v20 = vld [vmem:[%s4119_s30 + $0x30] sm:$0xf] }
  0x21   : > { %396 = vrot.lane.b32.xlu2 %v4139_v12, %s4001_s7  ;;  %v4151_v17 = vor.u32 %v3741_v15, %v3522_v16  ;;  %v3744_v21 = vld [vmem:[%s4119_s30 + $0x34] sm:$0xf0]  ;;  %v4159_v22 = vor.u32 %v3743_v18, %v3530_v19  ;;  %v3536_v24 = vld [vmem:[%s4119_s30 + $0x40] sm:$0xf]  ;;  %v3746_v25 = vld [vmem:[%s4119_s30 + $0x44] sm:$0xf0] }
  0x22   : > { %v4163_v23 = vor.u32 %v3744_v21, %v3528_v20  ;;  %v3544_v26 = vld [vmem:[%s4119_s30 + $0x50] sm:$0xf]  ;;  %v4170_v27 = vor.u32 %v3746_v25, %v3536_v24  ;;  %v3748_v28 = vld [vmem:[%s4119_s30 + $0x54] sm:$0xf0]  ;;  %v3745_v31 = vld [vmem:[%s4119_s30 + $0x44] sm:$0xf] }
  0x23   : > { %v3560_v29 = vld [vmem:[%s4119_s30 + $0x70] sm:$0xf]  ;;  %v3752_v30 = vld [vmem:[%s4119_s30 + $0x74] sm:$0xf0]  ;;  %v3538_v32 = vld [vmem:[%s4119_s30 + $0x48] sm:$0xf0]  ;;  %v4183_v36 = vor.u32 %v3748_v28, %v3544_v26 }
  0x24   : > { %v4179_v33 = vor.u32 %v3752_v30, %v3560_v29  ;;  %v3552_v34 = vld [vmem:[%s4119_s30 + $0x60] sm:$0xf]  ;;  %v3750_v35 = vld [vmem:[%s4119_s30 + $0x64] sm:$0xf0]  ;;  %v4188_v37 = vor.u32 %v3745_v31, %v3538_v32  ;;  %v3747_v38 = vld [vmem:[%s4119_s30 + $0x54] sm:$0xf] }
  0x25   : > { %v3546_v39 = vld [vmem:[%s4119_s30 + $0x58] sm:$0xf0]  ;;  %v4192_v40 = vor.u32 %v3750_v35, %v3552_v34  ;;  %v3749_v42 = vld [vmem:[%s4119_s30 + $0x64] sm:$0xf]  ;;  %v3554_v43 = vld [vmem:[%s4119_s30 + $0x68] sm:$0xf0] }
  0x26   : > { %1116 = vmatpush.bf16.msra.mxu0 %v4179_v33  ;;  %v4196_v41 = vor.u32 %v3747_v38, %v3546_v39  ;;  %v4203_v44 = vor.u32 %v3749_v42, %v3554_v43  ;;  %v3751_v45 = vld [vmem:[%s4119_s30 + $0x74] sm:$0xf]  ;;  %v3562_v46 = vld [vmem:[%s4119_s30 + $0x78] sm:$0xf0]  ;;  %s3501_s17 = sshll.u32 %s4113_s14, 1  ;;  %s7217_s14 = smov 107  }
  0x27   : > { %394 = vrot.lane.b32.xlu1 %v4141_v13, %s4001_s7  ;;  %v4218_v47 = vor.u32 %v3751_v45, %v3562_v46  ;;  %s7218_s19 = smov 106   ;;  %s7219_s20 = smov 88  }
  0x28   : > { %390 = vrot.lane.b32.xlu0 %v4145_v14, %s4001_s7 }
  0x29   : > { %398 = vrot.lane.b32.xlu2 %v4151_v17, %s4001_s7 }
  0x2a   : > { %1117 = vmatpush.bf16.msra.mxu0 %v4192_v40 }
  0x2e   : > { %1118 = vmatpush.bf16.msra.mxu0 %v4183_v36 }
  0x2f   : > { %402 = vrot.lane.b32.xlu1 %v4159_v22, %s4001_s7 }
  0x30   : > { %400 = vrot.lane.b32.xlu0 %v4163_v23, %s4001_s7 }
  0x31   : > { %404 = vrot.lane.b32.xlu2 %v4170_v27, %s4001_s7 }
  0x32   : > { %1119 = vmatpush.bf16.msra.mxu0 %v4170_v27 }
  0x36   : > { %1120 = vmatpush.bf16.msra.mxu0 %v4163_v23 }
  0x37   : > { %408 = vrot.lane.b32.xlu1 %v4183_v36, %s4001_s7 }
  0x38   : > { %406 = vrot.lane.b32.xlu0 %v4188_v37, %s4001_s7 }
  0x39   : > { %410 = vrot.lane.b32.xlu2 %v4196_v41, %s4001_s7 }
  0x3a   : > { %1121 = vmatpush.bf16.msra.mxu0 %v4139_v12 }
  0x3e   : > { %1122 = vmatpush.bf16.msra.mxu0 %v4124_v3 }
  0x3f   : > { %414 = vrot.lane.b32.xlu1 %v4203_v44, %s4001_s7 }
  0x40   : > { %412 = vrot.lane.b32.xlu0 %v4192_v40, %s4001_s7 }
  0x41   : > { %416 = vrot.lane.b32.xlu2 %v4179_v33, %s4001_s7 }
  0x42   : > { %1123 = vmatpush.bf16.msra.mxu0 %v4127_v5 }
  0x47   : > { %445 = vrot.lane.b32.xlu1 %v4127_v5, %s4002_s9 }
  0x48   : > { %418 = vrot.lane.b32.xlu0 %v4218_v47, %s4001_s7 }
  0x49   : > { %447 = vrot.lane.b32.xlu2 %v4145_v14, %s4002_s9 }
  0x4f   : > { %451 = vrot.lane.b32.xlu1 %v4141_v13, %s4002_s9 }
  0x50   : > { %449 = vrot.lane.b32.xlu0 %v4124_v3, %s4002_s9 }
  0x51   : > { %453 = vrot.lane.b32.xlu2 %v4139_v12, %s4002_s9 }
  0x57   : > { %457 = vrot.lane.b32.xlu1 %v4163_v23, %s4002_s9 }
  0x58   : > { %455 = vrot.lane.b32.xlu0 %v4151_v17, %s4002_s9 }
  0x59   : > { %459 = vrot.lane.b32.xlu2 %v4159_v22, %s4002_s9 }
  0x5f   : > { %463 = vrot.lane.b32.xlu1 %v4188_v37, %s4002_s9 }
  0x60   : > { %461 = vrot.lane.b32.xlu0 %v4170_v27, %s4002_s9 }
  0x61   : > { %465 = vrot.lane.b32.xlu2 %v4183_v36, %s4002_s9 }
  0x67   : > { %469 = vrot.lane.b32.xlu1 %v4192_v40, %s4002_s9 }
  0x68   : > { %467 = vrot.lane.b32.xlu0 %v4196_v41, %s4002_s9 }
  0x69   : > { %471 = vrot.lane.b32.xlu2 %v4203_v44, %s4002_s9 }
  0x6f   : > { %475 = vrot.lane.b32.xlu1 %v4218_v47, %s4002_s9 }
  0x70   : > { %473 = vrot.lane.b32.xlu0 %v4179_v33, %s4002_s9 }
  0x71   : > { %502 = vrot.lane.b32.xlu2 %v4127_v5, %s4003_s10 }
  0x77   : > { %506 = vrot.lane.b32.xlu1 %v4124_v3, %s4003_s10 }
  0x78   : > { %504 = vrot.lane.b32.xlu0 %v4145_v14, %s4003_s10 }
  0x79   : > { %508 = vrot.lane.b32.xlu2 %v4141_v13, %s4003_s10 }
  0x7b   : > { %v4265_v48 = vpop.permute.xlu2 %396 }
  0x7f   : > { %512 = vrot.lane.b32.xlu1 %v4151_v17, %s4003_s10 }
  0x80   : > { %510 = vrot.lane.b32.xlu0 %v4139_v12, %s4003_s10 }
  0x81   : > { %514 = vrot.lane.b32.xlu2 %v4163_v23, %s4003_s10 }
  0x83   : > { %v4273_v49 = vpop.permute.xlu2 %398 }
  0x84   : > { %v423_v24 = vsel %vm420_vm0, %v4265_v48, %v4273_v49 }
  0x87   : > { %518 = vrot.lane.b32.xlu1 %v4170_v27, %s4003_s10 }
  0x88   : > { %516 = vrot.lane.b32.xlu0 %v4159_v22, %s4003_s10 }
  0x89   : > { %520 = vrot.lane.b32.xlu2 %v4188_v37, %s4003_s10 }
  0x8b   : > { %v405_v50 = vpop.permute.xlu2 %404 }
  0x8f   : > { %524 = vrot.lane.b32.xlu1 %v4196_v41, %s4003_s10 }
  0x90   : > { %522 = vrot.lane.b32.xlu0 %v4183_v36, %s4003_s10 }
  0x91   : > { %v4285_v51 = vpop.permute.xlu1 %392  ;;  %526 = vrot.lane.b32.xlu2 %v4192_v40, %s4003_s10 }
  0x92   : > { %v4287_v52 = vpop.permute.xlu0 %388 }
  0x93   : > { %v4291_v53 = vpop.permute.xlu2 %410 }
  0x97   : > { %530 = vrot.lane.b32.xlu1 %v4179_v33, %s4003_s10 }
  0x98   : > { %528 = vrot.lane.b32.xlu0 %v4203_v44, %s4003_s10 }
  0x99   : > { %v4297_v54 = vpop.permute.xlu1 %394  ;;  %532 = vrot.lane.b32.xlu2 %v4218_v47, %s4003_s10 }
  0x9a   : > { %v4299_v55 = vpop.permute.xlu0 %390  ;;  %v422_v28 = vsel %vm420_vm0, %v4285_v51, %v4297_v54 }
  0x9b   : > { %v417_v56 = vpop.permute.xlu2 %416  ;;  %v421_v30 = vsel %vm420_vm0, %v4287_v52, %v4299_v55 }
  0x9f   : > { %561 = vrot.lane.b32.xlu1 %v4145_v14, %s7113_s11 }
  0xa0   : > { %559 = vrot.lane.b32.xlu0 %v4127_v5, %s7113_s11 }
  0xa1   : > { %v4307_v57 = vpop.permute.xlu1 %402  ;;  %563 = vrot.lane.b32.xlu2 %v4124_v3, %s7113_s11 }
  0xa2   : > { %v401_v58 = vpop.permute.xlu0 %400 }
  0xa3   : > { %v4311_v59 = vpop.permute.xlu2 %447  ;;  %v424_v20 = vsel %vm420_vm0, %v401_v58, %v4307_v57 }
  0xa4   : > { %7151 = vst [vmem:[#allocation3_spill] sm:$0xff] %v4311_v59 }
  0xa7   : > { %567 = vrot.lane.b32.xlu1 %v4139_v12, %s7113_s11 }
  0xa8   : > { %565 = vrot.lane.b32.xlu0 %v4141_v13, %s7113_s11 }
  0xa9   : > { %v409_v60 = vpop.permute.xlu1 %408  ;;  %569 = vrot.lane.b32.xlu2 %v4151_v17, %s7113_s11 }
  0xaa   : > { %v4317_v61 = vpop.permute.xlu0 %406  ;;  %v426_v11 = vsel %vm420_vm0, %v409_v60, %v4291_v53 }
  0xab   : > { %v4321_v62 = vpop.permute.xlu2 %453  ;;  %v425_v16 = vsel %vm420_vm0, %v405_v50, %v4317_v61 }
  0xaf   : > { %573 = vrot.lane.b32.xlu1 %v4159_v22, %s7113_s11 }
  0xb0   : > { %571 = vrot.lane.b32.xlu0 %v4163_v23, %s7113_s11 }
  0xb1   : > { %v4327_v63 = vpop.permute.xlu1 %414  ;;  %575 = vrot.lane.b32.xlu2 %v4170_v27, %s7113_s11 }
  0xb2   : > { %v413_v0 = vpop.permute.xlu0 %412 }
  0xb3   : > { %v4331_v1 = vpop.permute.xlu2 %459  ;;  %v427_v8 = vsel %vm420_vm0, %v413_v0, %v4327_v63 }
  0xb7   : > { %579 = vrot.lane.b32.xlu1 %v4183_v36, %s7113_s11 }
  0xb8   : > { %577 = vrot.lane.b32.xlu0 %v4188_v37, %s7113_s11 }
  0xb9   : > { %v4337_v2 = vpop.permute.xlu1 %445  ;;  %581 = vrot.lane.b32.xlu2 %v4196_v41, %s7113_s11 }
  0xba   : > { %v4339_v4 = vpop.permute.xlu0 %418 }
  0xbb   : > { %v428_v6 = vsel %vm420_vm0, %v417_v56, %v4339_v4  ;;  %v466_v7 = vpop.permute.xlu2 %465 }
  0xbc   : > { %1145 = vmatpush.bf16.msra.mxu1 %v428_v6 }
  0xbf   : > { %585 = vrot.lane.b32.xlu1 %v4203_v44, %s7113_s11 }
  0xc0   : > { %583 = vrot.lane.b32.xlu0 %v4192_v40, %s7113_s11  ;;  %1146 = vmatpush.bf16.msra.mxu1 %v427_v8 }
  0xc1   : > { %v4351_v9 = vpop.permute.xlu1 %451  ;;  %587 = vrot.lane.b32.xlu2 %v4179_v33, %s7113_s11 }
  0xc2   : > { %7152 = vst [vmem:[#allocation4_spill] sm:$0xff] %v4351_v9  ;;  %v4353_v10 = vpop.permute.xlu0 %449 }
  0xc3   : > { %v4359_v15 = vpop.permute.xlu2 %471  ;;  %v479_v8 = vsel %vm477_vm1, %v4353_v10, %v4351_v9 }
  0xc4   : > { %1147 = vmatpush.bf16.msra.mxu1 %v426_v11 }
  0xc7   : > { %616 = vrot.lane.b32.xlu1 %v4127_v5, %s7111_s13 }
  0xc8   : > { %589 = vrot.lane.b32.xlu0 %v4218_v47, %s7113_s11  ;;  %1148 = vmatpush.bf16.msra.mxu1 %v425_v16  ;;  %s4008_s11 = smov 86  }
  0xc9   : > { %v458_v18 = vpop.permute.xlu1 %457  ;;  %618 = vrot.lane.b32.xlu2 %v4145_v14, %s7111_s13 }
  0xca   : > { %v4367_v19 = vpop.permute.xlu0 %455  ;;  %v481_v58 = vsel %vm477_vm1, %v458_v18, %v4331_v1 }
  0xcb   : > { %7153 = vst [vmem:[#allocation5_spill] sm:$0xff] %v4367_v19  ;;  %v4373_v21 = vpop.permute.xlu2 %502  ;;  %v480_v0 = vsel %vm477_vm1, %v4321_v62, %v4367_v19  ;;  %v478_v62 = vsel %vm477_vm1, %v4337_v2, %v4311_v59 }
  0xcc   : > { %1149 = vmatpush.bf16.msra.mxu1 %v424_v20 }
  0xcf   : > { %622 = vrot.lane.b32.xlu1 %v4141_v13, %s7111_s13 }
  0xd0   : > { %620 = vrot.lane.b32.xlu0 %v4124_v3, %s7111_s13  ;;  %1150 = vmatpush.bf16.msra.mxu1 %v423_v24 }
  0xd1   : > { %v4382_v25 = vpop.permute.xlu1 %463  ;;  %624 = vrot.lane.b32.xlu2 %v4139_v12, %s7111_s13 }
  0xd2   : > { %v462_v26 = vpop.permute.xlu0 %461 }
  0xd3   : > { %v4389_v29 = vpop.permute.xlu2 %508  ;;  %v482_v51 = vsel %vm477_vm1, %v462_v26, %v4382_v25 }
  0xd4   : > { %1151 = vmatpush.bf16.msra.mxu1 %v422_v28  ;;  %7154 = vst [vmem:[#allocation6_spill] sm:$0xff] %v4389_v29 }
  0xd7   : > { %628 = vrot.lane.b32.xlu1 %v4163_v23, %s7111_s13 }
  0xd8   : > { %626 = vrot.lane.b32.xlu0 %v4151_v17, %s7111_s13  ;;  %1152 = vmatpush.bf16.msra.mxu1 %v421_v30 }
  0xd9   : > { %v470_v31 = vpop.permute.xlu1 %469  ;;  %630 = vrot.lane.b32.xlu2 %v4159_v22, %s7111_s13 }
  0xda   : > { %v4398_v32 = vpop.permute.xlu0 %467  ;;  %v484_v43 = vsel %vm477_vm1, %v470_v31, %v4359_v15 }
  0xdb   : > { %v4402_v34 = vpop.permute.xlu2 %514  ;;  %v483_v48 = vsel %vm477_vm1, %v466_v7, %v4398_v32 }
  0xdf   : > { %634 = vrot.lane.b32.xlu1 %v4188_v37, %s7111_s13 }
  0xe0   : > { %632 = vrot.lane.b32.xlu0 %v4170_v27, %s7111_s13 }
  0xe1   : > { %v4408_v35 = vpop.permute.xlu1 %475  ;;  %636 = vrot.lane.b32.xlu2 %v4183_v36, %s7111_s13 }
  0xe2   : > { %v474_v38 = vpop.permute.xlu0 %473 }
  0xe3   : > { %v485_v39 = vsel %vm477_vm1, %v474_v38, %v4408_v35  ;;  %v4414_v42 = vpop.permute.xlu2 %520 }
  0xe4   : > { %1174 = vmatpush.bf16.msra.mxu2 %v485_v39  ;;  %7155 = vst [vmem:[#allocation7_spill] sm:$0xff] %v4414_v42 }
  0xe7   : > { %640 = vrot.lane.b32.xlu1 %v4192_v40, %s7111_s13 }
  0xe8   : > { %638 = vrot.lane.b32.xlu0 %v4196_v41, %s7111_s13  ;;  %1175 = vmatpush.bf16.msra.mxu2 %v484_v43 }
  0xe9   : > { %v4422_v45 = vpop.permute.xlu1 %506  ;;  %642 = vrot.lane.b32.xlu2 %v4203_v44, %s7111_s13 }
  0xea   : > { %v4424_v46 = vpop.permute.xlu0 %504 }
  0xeb   : > { %7156 = vst [vmem:[#allocation8_spill] sm:$0xff] %v4424_v46  ;;  %v527_v50 = vpop.permute.xlu2 %526 }
  0xec   : > { %1176 = vmatpush.bf16.msra.mxu2 %v483_v48 }
  0xef   : > { %646 = vrot.lane.b32.xlu1 %v4218_v47, %s7111_s13 }
  0xf0   : > { %644 = vrot.lane.b32.xlu0 %v4179_v33, %s7111_s13  ;;  %1177 = vmatpush.bf16.msra.mxu2 %v482_v51 }
  0xf1   : > { %v4436_v52 = vpop.permute.xlu1 %512  ;;  %673 = vrot.lane.b32.xlu2 %v4127_v5, %s7109_s15 }
  0xf2   : > { %7157 = vst [vmem:[#allocation9_spill] sm:$0xff] %v4436_v52  ;;  %v511_v56 = vpop.permute.xlu0 %510 }
  0xf3   : > { %v4442_v60 = vpop.permute.xlu2 %532 }
  0xf4   : > { %1178 = vmatpush.bf16.msra.mxu2 %v481_v58  ;;  %7158 = vst [vmem:[#allocation10_spill] sm:$0xff] %v4442_v60 }
  0xf7   : > { %677 = vrot.lane.b32.xlu1 %v4124_v3, %s7109_s15 }
  0xf8   : > { %675 = vrot.lane.b32.xlu0 %v4145_v14, %s7109_s15  ;;  %1179 = vmatpush.bf16.msra.mxu2 %v480_v0  ;;  %v537_v0 = vsel %vm534_vm2, %v511_v56, %v4436_v52 }
  0xf9   : > { %v519_v6 = vpop.permute.xlu1 %518  ;;  %679 = vrot.lane.b32.xlu2 %v4141_v13, %s7109_s15 }
  0xfa   : > { %v4451_v7 = vpop.permute.xlu0 %516  ;;  %v539_v43 = vsel %vm534_vm2, %v519_v6, %v4414_v42  ;;  %v3757_v6 = vld [vmem:[%s7104_s2 + $0x20] sm:$0xf0] }
  0xfb   : > { %7159 = vst [vmem:[#allocation11_spill] sm:$0xff] %v4451_v7  ;;  %v4458_v11 = vpop.permute.xlu2 %563  ;;  %v538_v51 = vsel %vm534_vm2, %v4402_v34, %v4451_v7  ;;  %v3568_v34 = vld [vmem:[%s7104_s2] sm:$0xf] }
  0xfc   : > { %1180 = vmatpush.bf16.msra.mxu2 %v479_v8 }
  0xff   : > { %683 = vrot.lane.b32.xlu1 %v4151_v17, %s7109_s15 }
 0x100   : > { %681 = vrot.lane.b32.xlu0 %v4139_v12, %s7109_s15  ;;  %1181 = vmatpush.bf16.msra.mxu2 %v478_v62  ;;  %v4530_v62 = vor.u32 %v3757_v6, %v3568_v34  ;;  %v3766_v34 = vld [vmem:[%s7104_s2 + $0x68] sm:$0xf0] }
 0x101   : > { %v4467_v16 = vpop.permute.xlu1 %524  ;;  %685 = vrot.lane.b32.xlu2 %v4163_v23, %s7109_s15 }
 0x102   : > { %7160 = vst [vmem:[#allocation12_spill] sm:$0xff] %v4467_v16  ;;  %v523_v10 = vpop.permute.xlu0 %522  ;;  %1124 = vmatmul.bf16.vlgmr.msra.gmra.mxu0 %v4530_v62 }
 0x103   : > { %v4471_v18 = vpop.permute.xlu2 %569  ;;  %v540_v38 = vsel %vm534_vm2, %v523_v10, %v4467_v16  ;;  %v536_v10 = vsel %vm534_vm2, %v4422_v45, %v4389_v29  ;;  %v535_v45 = vsel %vm534_vm2, %v4373_v21, %v4424_v46  ;;  %v3604_v21 = vld [vmem:[%s7104_s2 + $0x48] sm:$0xf] }
 0x107   : > { %689 = vrot.lane.b32.xlu1 %v4170_v27, %s7109_s15 }
 0x108   : > { %687 = vrot.lane.b32.xlu0 %v4159_v22, %s7109_s15 }
 0x109   : > { %v531_v20 = vpop.permute.xlu1 %530  ;;  %691 = vrot.lane.b32.xlu2 %v4188_v37, %s7109_s15 }
 0x10a   : > { %v4477_v2 = vpop.permute.xlu0 %528  ;;  %v542_v24 = vsel %vm534_vm2, %v531_v20, %v4442_v60  ;;  %v3753_v20 = vld [vmem:[%s7104_s2 + $0x4] sm:$0xf] }
 0x10b   : > { %7161 = vst [vmem:[#allocation13_spill] sm:$0xff] %v4477_v2  ;;  %1203 = vmatpush.bf16.msra.mxu3 %v542_v24  ;;  %v4483_v26 = vpop.permute.xlu2 %575  ;;  %v541_v28 = vsel %vm534_vm2, %v527_v50, %v4477_v2  ;;  %v3570_v24 = vld [vmem:[%s7104_s2 + $0x24] sm:$0xf0] }
 0x10f   : > { %695 = vrot.lane.b32.xlu1 %v4196_v41, %s7109_s15  ;;  %1204 = vmatpush.bf16.msra.mxu3 %v541_v28  ;;  %v4545_v28 = vor.u32 %v3753_v20, %v3570_v24  ;;  %v3762_v24 = vld [vmem:[%s7104_s2 + $0x4c] sm:$0xf] }
 0x110   : > { %693 = vrot.lane.b32.xlu0 %v4183_v36, %s7109_s15 }
 0x111   : > { %v4491_v30 = vpop.permute.xlu1 %561  ;;  %697 = vrot.lane.b32.xlu2 %v4192_v40, %s7109_s15  ;;  %1153 = vmatmul.bf16.vlgmr.msra.gmra.mxu1 %v4545_v28 }
 0x112   : > { %v4493_v31 = vpop.permute.xlu0 %559 }
 0x113   : > { %1205 = vmatpush.bf16.msra.mxu3 %v540_v38  ;;  %v4499_v39 = vpop.permute.xlu2 %581 }
 0x117   : > { %701 = vrot.lane.b32.xlu1 %v4179_v33, %s7109_s15  ;;  %1206 = vmatpush.bf16.msra.mxu3 %v539_v43 }
 0x118   : > { %699 = vrot.lane.b32.xlu0 %v4203_v44, %s7109_s15 }
 0x119   : > { %v4507_v48 = vpop.permute.xlu1 %567  ;;  %703 = vrot.lane.b32.xlu2 %v4218_v47, %s7109_s15  ;;  %s290_s15 = scalar_lea.vmem %s7103_s1, %s3501_s17  ;;  %s275_s17 = sand.u32 1, %s3975_s21  }
 0x11a   : > { %v4509_v50 = vpop.permute.xlu0 %565  ;;  %s3806_s18 = smul.u32 192, %s275_s17  ;;  %s4010_s21 = smov 68  }
 0x11b   : > { %1207 = vmatpush.bf16.msra.mxu3 %v538_v51  ;;  %v588_v58 = vpop.permute.xlu2 %587 }
 0x11c   : > { %s5977_s13 = scalar_lea.vmem [#allocation2], %s3806_s18 }
 0x11f   : > { %732 = vrot.lane.b32.xlu1 %v4145_v14, %s7125_s16  ;;  %1208 = vmatpush.bf16.msra.mxu3 %v537_v0 }
 0x120   : > { %730 = vrot.lane.b32.xlu0 %v4127_v5, %s7125_s16 }
 0x121   : > { %v4528_v8 = vpop.permute.xlu1 %573  ;;  %734 = vrot.lane.b32.xlu2 %v4124_v3, %s7125_s16 }
 0x122   : > { %v4532_v56 = vpop.permute.xlu0 %571 }
 0x123   : > { %1209 = vmatpush.bf16.msra.mxu3 %v536_v10  ;;  %v4548_v38 = vpop.permute.xlu2 %618  ;;  %v4576_v10 = vor.u32 %v3766_v34, %v3604_v21 }
 0x125   : > { %1129 = vmatmul.bf16.gmra.mxu0 %v4576_v10 }
 0x127   : > { %738 = vrot.lane.b32.xlu1 %v4139_v12, %s7125_s16  ;;  %1210 = vmatpush.bf16.msra.mxu3 %v535_v45  ;;  %v3606_v45 = vld [vmem:[%s7104_s2 + $0x6c] sm:$0xf0] }
 0x128   : > { %736 = vrot.lane.b32.xlu0 %v4141_v13, %s7125_s16  ;;  %v4586_v46 = vor.u32 %v3762_v24, %v3606_v45 }
 0x129   : > { %v580_v43 = vpop.permute.xlu1 %579  ;;  %740 = vrot.lane.b32.xlu2 %v4151_v17, %s7125_s16 }
 0x12a   : > { %v4558_v51 = vpop.permute.xlu0 %577  ;;  %7162 = vst [vmem:[#allocation14_spill] sm:$0xff] %v4586_v46  ;;  %1158 = vmatmul.bf16.gmra.mxu1 %v4586_v46  ;;  %v597_v2 = vsel %vm591_vm3, %v580_v43, %v4499_v39 }
 0x12b   : > { %v4562_v0 = vpop.permute.xlu2 %624  ;;  %v596_v43 = vsel %vm591_vm3, %v4483_v26, %v4558_v51  ;;  %v595_v26 = vsel %vm591_vm3, %v4532_v56, %v4528_v8  ;;  %v3676_v56 = vld [vmem:[%s7104_s2 + $0xd8] sm:$0xf] }
 0x12f   : > { %744 = vrot.lane.b32.xlu1 %v4159_v22, %s7125_s16 }
 0x130   : > { %742 = vrot.lane.b32.xlu0 %v4163_v23, %s7125_s16 }
 0x131   : > { %v4574_v6 = vpop.permute.xlu1 %585  ;;  %746 = vrot.lane.b32.xlu2 %v4170_v27, %s7125_s16 }
 0x132   : > { %v584_v20 = vpop.permute.xlu0 %583 }
 0x133   : > { %v4589_v29 = vpop.permute.xlu2 %630  ;;  %v598_v52 = vsel %vm591_vm3, %v584_v20, %v4574_v6  ;;  %v3771_v20 = vld [vmem:[%s7104_s2 + $0x94] sm:$0xf] }
 0x137   : > { %750 = vrot.lane.b32.xlu1 %v4183_v36, %s7125_s16 }
 0x138   : > { %748 = vrot.lane.b32.xlu0 %v4188_v37, %s7125_s16 }
 0x139   : > { %v4596_v21 = vpop.permute.xlu1 %616  ;;  %752 = vrot.lane.b32.xlu2 %v4196_v41, %s7125_s16 }
 0x13a   : > { %v4598_v34 = vpop.permute.xlu0 %589 }
 0x13b   : > { %v599_v24 = vsel %vm591_vm3, %v588_v58, %v4598_v34  ;;  %v4604_v45 = vpop.permute.xlu2 %636  ;;  %v3640_v58 = vld [vmem:[%s7104_s2 + $0x90] sm:$0xf] }
 0x13c   : > { %1232 = vmatpush.bf16.msrb.mxu0 %v599_v24  ;;  %v3775_v24 = vld [vmem:[%s7104_s2 + $0xb0] sm:$0xf0] }
 0x13d   : > { %v4620_v42 = vor.u32 %v3775_v24, %v3640_v58  ;;  %v3758_v24 = vld [vmem:[%s7104_s2 + $0x28] sm:$0xf0] }
 0x13f   : > { %756 = vrot.lane.b32.xlu1 %v4203_v44, %s7125_s16  ;;  %1134 = vmatmul.bf16.gmra.mxu0 %v4620_v42 }
 0x140   : > { %754 = vrot.lane.b32.xlu0 %v4192_v40, %s7125_s16  ;;  %1233 = vmatpush.bf16.msrb.mxu0 %v598_v52  ;;  %v3642_v52 = vld [vmem:[%s7104_s2 + $0xb4] sm:$0xf0] }
 0x141   : > { %v4618_v7 = vpop.permute.xlu1 %622  ;;  %758 = vrot.lane.b32.xlu2 %v4179_v33, %s7125_s16  ;;  %v4634_v60 = vor.u32 %v3771_v20, %v3642_v52 }
 0x142   : > { %v4622_v16 = vpop.permute.xlu0 %620 }
 0x143   : > { %7163 = vst [vmem:[#allocation15_spill] sm:$0xff] %v4634_v60  ;;  %v4636_v58 = vpop.permute.xlu2 %642  ;;  %1163 = vmatmul.bf16.gmra.mxu1 %v4634_v60 }
 0x144   : > { %1234 = vmatpush.bf16.msrb.mxu0 %v597_v2  ;;  %v3576_v2 = vld [vmem:[%s7104_s2 + $0x8] sm:$0xf] }
 0x145   : > { %v4655_v52 = vor.u32 %v3758_v24, %v3576_v2  ;;  %v594_v2 = vsel %vm591_vm3, %v4507_v48, %v4471_v18  ;;  %v3784_v24 = vld [vmem:[%s7104_s2 + $0xf8] sm:$0xf0] }
 0x146   : > { %v3780_v48 = vld [vmem:[%s7104_s2 + $0xdc] sm:$0xf] }
 0x147   : > { %787 = vrot.lane.b32.xlu1 %v4127_v5, %s4008_s11  ;;  %7164 = vst [vmem:[#allocation16_spill] sm:$0xff] %v4655_v52  ;;  %1182 = vmatmul.bf16.vlgmr.msra.gmra.mxu2 %v4655_v52  ;;  %v4682_v52 = vor.u32 %v3784_v24, %v3676_v56  ;;  %v592_v24 = vsel %vm591_vm3, %v4493_v31, %v4491_v30  ;;  %v3578_v31 = vld [vmem:[%s7104_s2 + $0x2c] sm:$0xf0] }
 0x148   : > { %760 = vrot.lane.b32.xlu0 %v4218_v47, %s7125_s16  ;;  %1235 = vmatpush.bf16.msrb.mxu0 %v596_v43  ;;  %s7220_s16 = smov 87  }
 0x149   : > { %v4653_v20 = vpop.permute.xlu1 %628  ;;  %789 = vrot.lane.b32.xlu2 %v4145_v14, %s4008_s11  ;;  %7165 = vst [vmem:[#allocation17_spill] sm:$0xff] %v4682_v52 }
 0x14a   : > { %v4657_v5 = vpop.permute.xlu0 %626 }
 0x14b   : > { %v4665_v43 = vpop.permute.xlu2 %673 }
 0x14c   : > { %1236 = vmatpush.bf16.msrb.mxu0 %v595_v26 }
 0x14f   : > { %793 = vrot.lane.b32.xlu1 %v4141_v13, %s4008_s11  ;;  %1139 = vmatmul.bf16.gmra.mxu0 %v4682_v52  ;;  %v650_v52 = vsel %vm648_vm4, %v4622_v16, %v4618_v7  ;;  %v649_v16 = vsel %vm648_vm4, %v4596_v21, %v4548_v38  ;;  %v884_v21 = vld [vmem:[%s7105_s3] sm:$0xff] }
 0x150   : > { %791 = vrot.lane.b32.xlu0 %v4124_v3, %s4008_s11  ;;  %1237 = vmatpush.bf16.msrb.mxu0 %v594_v2  ;;  %v3678_v3 = vld [vmem:[%s7104_s2 + $0xfc] sm:$0xf0]  ;;  %v593_v2 = vsel %vm591_vm3, %v4458_v11, %v4509_v50  ;;  %v3767_v11 = vld [vmem:[%s7104_s2 + $0x70] sm:$0xf0] }
 0x151   : > { %v4680_v26 = vpop.permute.xlu1 %634  ;;  %795 = vrot.lane.b32.xlu2 %v4139_v12, %s4008_s11  ;;  %v4697_v46 = vor.u32 %v3780_v48, %v3678_v3  ;;  %v3612_v12 = vld [vmem:[%s7104_s2 + $0x50] sm:$0xf] }
 0x152   : > { %v4684_v60 = vpop.permute.xlu0 %632  ;;  %v4719_v3 = vor.u32 %v3767_v11, %v3612_v12  ;;  %v3584_v12 = vld [vmem:[%s7104_s2 + $0x10] sm:$0xf]  ;;  %v3759_v11 = vld [vmem:[%s7104_s2 + $0x30] sm:$0xf0] }
 0x153   : > { %7166 = vst [vmem:[#allocation18_spill] sm:$0xff] %v4697_v46  ;;  %v4699_v56 = vpop.permute.xlu2 %679  ;;  %1168 = vmatmul.bf16.gmra.mxu1 %v4697_v46 }
 0x154   : > { %1238 = vmatpush.bf16.msrb.mxu0 %v593_v2  ;;  %7167 = vst [vmem:[#allocation19_spill] sm:$0xff] %v4719_v3 }
 0x157   : > { %799 = vrot.lane.b32.xlu1 %v4163_v23, %s4008_s11  ;;  %v3754_v23 = vld [vmem:[%s7104_s2 + $0xc] sm:$0xf]  ;;  %1187 = vmatmul.bf16.gmra.mxu2 %v4719_v3 }
 0x158   : > { %797 = vrot.lane.b32.xlu0 %v4151_v17, %s4008_s11  ;;  %1239 = vmatpush.bf16.msrb.mxu0 %v592_v24  ;;  %v4726_v24 = vor.u32 %v3754_v23, %v3578_v31  ;;  %v4746_v31 = vor.u32 %v3759_v11, %v3584_v12 }
 0x159   : > { %v641_v48 = vpop.permute.xlu1 %640  ;;  %801 = vrot.lane.b32.xlu2 %v4159_v22, %s4008_s11 }
 0x15a   : > { %v4724_v2 = vpop.permute.xlu0 %638  ;;  %7168 = vst [vmem:[#allocation20_spill] sm:$0xff] %v4726_v24  ;;  %1211 = vmatmul.bf16.vlgmr.msra.gmra.mxu3 %v4726_v24  ;;  %v655_v12 = vsel %vm648_vm4, %v641_v48, %v4636_v58  ;;  %v3614_v48 = vld [vmem:[%s7104_s2 + $0x74] sm:$0xf0] }
 0x15b   : > { %v4732_v46 = vpop.permute.xlu2 %685  ;;  %7169 = vst [vmem:[#allocation21_spill] sm:$0xff] %v4746_v31  ;;  %v654_v59 = vsel %vm648_vm4, %v4604_v45, %v4724_v2  ;;  %v653_v45 = vsel %vm648_vm4, %v4684_v60, %v4680_v26  ;;  %v652_v60 = vsel %vm648_vm4, %v4653_v20, %v4589_v29  ;;  %v3785_v20 = vld [vmem:[%s7104_s2 + $0x100] sm:$0xf0] }
 0x15f   : > { %805 = vrot.lane.b32.xlu1 %v4188_v37, %s4008_s11  ;;  %1240 = vmatmul.bf16.vlgmr.msrb.gmra.mxu0 %v4746_v31 }
 0x160   : > { %803 = vrot.lane.b32.xlu0 %v4170_v27, %s4008_s11 }
 0x161   : > { %v4744_v23 = vpop.permute.xlu1 %646  ;;  %807 = vrot.lane.b32.xlu2 %v4183_v36, %s4008_s11  ;;  %v3776_v36 = vld [vmem:[%s7104_s2 + $0xb8] sm:$0xf0] }
 0x162   : > { %v645_v24 = vpop.permute.xlu0 %644 }
 0x163   : > { %v656_v3 = vsel %vm648_vm4, %v645_v24, %v4744_v23  ;;  %v4752_v27 = vpop.permute.xlu2 %691  ;;  %v3648_v24 = vld [vmem:[%s7104_s2 + $0x98] sm:$0xf] }
 0x164   : > { %1261 = vmatpush.bf16.msrb.mxu1 %v656_v3  ;;  %v3763_v3 = vld [vmem:[%s7104_s2 + $0x54] sm:$0xf]  ;;  %v4772_v11 = vor.u32 %v3776_v36, %v3648_v24  ;;  %v4009_v36 = vmov 0  }
 0x165   : > { %v4779_v31 = vor.u32 %v3763_v3, %v3614_v48  ;;  %3879 = vset.pattern.permute.xlu0 %v4009_v36  ;;  %3880 = vset.pattern.permute.xlu1 %v4009_v36  ;;  %v3768_v3 = vld [vmem:[%s7104_s2 + $0x78] sm:$0xf0] }
 0x166   : > { %7170 = vst [vmem:[#allocation22_spill] sm:$0xff] %v4772_v11  ;;  %3878 = vset.pattern.permute.xlu2 %v4009_v36 }
 0x167   : > { %811 = vrot.lane.b32.xlu1 %v4192_v40, %s4008_s11  ;;  %7171 = vst [vmem:[#allocation23_spill] sm:$0xff] %v4779_v31  ;;  %1192 = vmatmul.bf16.gmra.mxu2 %v4772_v11 }
 0x168   : > { %809 = vrot.lane.b32.xlu0 %v4196_v41, %s4008_s11  ;;  %1262 = vmatpush.bf16.msrb.mxu1 %v655_v12 }
 0x169   : > { %v4770_v40 = vpop.permute.xlu1 %677  ;;  %813 = vrot.lane.b32.xlu2 %v4203_v44, %s4008_s11 }
 0x16a   : > { %v4777_v12 = vpop.permute.xlu0 %675  ;;  %1216 = vmatmul.bf16.gmra.mxu3 %v4779_v31 }
 0x16b   : > { %v4788_v24 = vpop.permute.xlu2 %697 }
 0x16c   : > { %1263 = vmatpush.bf16.msrb.mxu1 %v654_v59  ;;  %v3620_v59 = vld [vmem:[%s7104_s2 + $0x58] sm:$0xf] }
 0x16d   : > { %v4805_v36 = vor.u32 %v3768_v3, %v3620_v59  ;;  %v651_v59 = vsel %vm648_vm4, %v4562_v0, %v4657_v5  ;;  %v3684_v3 = vld [vmem:[%s7104_s2 + $0xe0] sm:$0xf] }
 0x16e   : > { %v3650_v0 = vld [vmem:[%s7104_s2 + $0xbc] sm:$0xf0] }
 0x16f   : > { %817 = vrot.lane.b32.xlu1 %v4218_v47, %s4008_s11  ;;  %7172 = vst [vmem:[#allocation24_spill] sm:$0xff] %v4805_v36  ;;  %1245 = vmatmul.bf16.gmra.mxu0 %v4805_v36  ;;  %v4830_v36 = vor.u32 %v3785_v20, %v3684_v3  ;;  %v3755_v3 = vld [vmem:[%s7104_s2 + $0x14] sm:$0xf]  ;;  %v3586_v20 = vld [vmem:[%s7104_s2 + $0x34] sm:$0xf0] }
 0x170   : > { %815 = vrot.lane.b32.xlu0 %v4179_v33, %s4008_s11  ;;  %1264 = vmatpush.bf16.msrb.mxu1 %v653_v45  ;;  %v885_v45 = vld [vmem:[%s7105_s3 + $0x8] sm:$0xff] }
 0x171   : > { %v4803_v48 = vpop.permute.xlu1 %683  ;;  %7173 = vst [vmem:[#allocation25_spill] sm:$0xff] %v4830_v36  ;;  %894 = vperm.xlu2 %3878, %v884_v21   ;;  %v3764_v21 = vld [vmem:[%s7104_s2 + $0x5c] sm:$0xf] }
 0x172   : > { %v4807_v31 = vpop.permute.xlu0 %681 }
 0x173   : > { %v4812_v33 = vpop.permute.xlu2 %703 }
 0x174   : > { %1265 = vmatpush.bf16.msrb.mxu1 %v652_v60  ;;  %v3772_v60 = vld [vmem:[%s7104_s2 + $0x9c] sm:$0xf] }
 0x177   : > { %1197 = vmatmul.bf16.gmra.mxu2 %v4830_v36 }
 0x178   : > { %1266 = vmatpush.bf16.msrb.mxu1 %v651_v59  ;;  %899 = vperm.xlu0 %3879, %v885_v45   ;;  %v4837_v59 = vor.u32 %v3772_v60, %v3650_v0  ;;  %v886_v60 = vld [vmem:[%s7105_s3 + $0x10] sm:$0xff]  ;;  %v3656_v0 = vld [vmem:[%s7104_s2 + $0xa0] sm:$0xf] }
 0x179   : > { %v690_v11 = vpop.permute.xlu1 %689  ;;  %904 = vperm.xlu1 %3880, %v886_v60  }
 0x17a   : > { %v4835_v45 = vpop.permute.xlu0 %687  ;;  %7174 = vst [vmem:[#allocation26_spill] sm:$0xff] %v4837_v59  ;;  %1221 = vmatmul.bf16.gmra.mxu3 %v4837_v59  ;;  %v3777_v59 = vld [vmem:[%s7104_s2 + $0xc0] sm:$0xf0] }
 0x17b   : > { %v4850_v9 = vpop.permute.xlu2 %734  ;;  %v4869_v60 = vor.u32 %v3777_v59, %v3656_v0  ;;  %v3686_v59 = vld [vmem:[%s7104_s2 + $0x104] sm:$0xf0] }
 0x17c   : > { %1267 = vmatpush.bf16.msrb.mxu1 %v650_v52  ;;  %v4858_v52 = vor.u32 %v3755_v3, %v3586_v20 }
 0x17e   : > { %7175 = vst [vmem:[#allocation27_spill] sm:$0xff] %v4858_v52 }
 0x17f   : > { %1250 = vmatmul.bf16.gmra.mxu0 %v4869_v60 }
 0x180   : > { %1268 = vmatpush.bf16.msrb.mxu1 %v649_v16 }
 0x181   : > { %v4867_v36 = vpop.permute.xlu1 %695 }
 0x182   : > { %v694_v19 = vpop.permute.xlu0 %693 }
 0x183   : > { %1269 = vmatmul.bf16.vlgmr.msrb.gmra.mxu1 %v4858_v52  ;;  %v4876_v3 = vpop.permute.xlu2 %740  ;;  %v3622_v52 = vld [vmem:[%s7104_s2 + $0x7c] sm:$0xf0] }
 0x184   : > { %1377 = vmatpush.bf16.msra.mxu1 %v4218_v47  ;;  %v3781_v47 = vld [vmem:[%s7104_s2 + $0xe4] sm:$0xf] }
 0x185   : > { %v4886_v16 = vor.u32 %v3781_v47, %v3686_v59  ;;  %v4906_v59 = vor.u32 %v3764_v21, %v3622_v52  ;;  %v711_v52 = vsel %vm705_vm5, %v694_v19, %v4867_v36  ;;  %v887_v21 = vld [vmem:[%s7105_s3 + $0x18] sm:$0xff] }
 0x186   : > { %909 = vperm.xlu2 %3878, %v887_v21  }
 0x187   : > { %7176 = vst [vmem:[#allocation28_spill] sm:$0xff] %v4886_v16 }
 0x188   : > { %1378 = vmatpush.bf16.msra.mxu1 %v4203_v44  ;;  %7177 = vst [vmem:[#allocation29_spill] sm:$0xff] %v4906_v59 }
 0x189   : > { %v702_v20 = vpop.permute.xlu1 %701 }
 0x18a   : > { %v4888_v0 = vpop.permute.xlu0 %699  ;;  %v713_v44 = vsel %vm705_vm5, %v702_v20, %v4812_v33  ;;  %1226 = vmatmul.bf16.gmra.mxu3 %v4886_v16  ;;  %v3786_v16 = vld [vmem:[%s7104_s2 + $0x108] sm:$0xf0] }
 0x18b   : > { %1290 = vmatpush.bf16.msrb.mxu2 %v713_v44  ;;  %v712_v47 = vsel %vm705_vm5, %v4788_v24, %v4888_v0  ;;  %v4908_v20 = vpop.permute.xlu2 %746  ;;  %v3692_v44 = vld [vmem:[%s7104_s2 + $0xe8] sm:$0xf] }
 0x18c   : > { %1379 = vmatpush.bf16.msra.mxu1 %v4196_v41  ;;  %v888_v41 = vld [vmem:[%s7105_s3 + $0x20] sm:$0xff] }
 0x18d   : > { %914 = vperm.xlu1 %3880, %v888_v41   ;;  %v4919_v41 = vor.u32 %v3786_v16, %v3692_v44  ;;  %v709_v44 = vsel %vm705_vm5, %v4732_v46, %v4835_v45  ;;  %v708_v46 = vsel %vm705_vm5, %v4807_v31, %v4803_v48  ;;  %v3760_v31 = vld [vmem:[%s7104_s2 + $0x38] sm:$0xf0] }
 0x18f   : > { %1291 = vmatpush.bf16.msrb.mxu2 %v712_v47  ;;  %1255 = vmatmul.bf16.gmra.mxu0 %v4919_v41 }
 0x190   : > { %1380 = vmatpush.bf16.msra.mxu1 %v4188_v37 }
 0x191   : > { %v4917_v37 = vpop.permute.xlu1 %732 }
 0x192   : > { %v4921_v24 = vpop.permute.xlu0 %730 }
 0x193   : > { %1292 = vmatpush.bf16.msrb.mxu2 %v711_v52  ;;  %1274 = vmatmul.bf16.gmra.mxu1 %v4906_v59  ;;  %v4936_v19 = vpop.permute.xlu2 %752  ;;  %v890_v52 = vld [vmem:[%s7105_s3 + $0x30] sm:$0xff] }
 0x194   : > { %1381 = vmatpush.bf16.msra.mxu1 %v4159_v22  ;;  %v710_v22 = vsel %vm705_vm5, %v690_v11, %v4752_v27  ;;  %v3658_v11 = vld [vmem:[%s7104_s2 + $0xc4] sm:$0xf0]  ;;  %924 = vperm.xlu0 %3879, %v890_v52  }
 0x197   : > { %1293 = vmatpush.bf16.msrb.mxu2 %v710_v22 }
 0x198   : > { %1382 = vmatpush.bf16.msra.mxu1 %v4151_v17  ;;  %v3773_v17 = vld [vmem:[%s7104_s2 + $0xa4] sm:$0xf] }
 0x199   : > { %v4934_v16 = vpop.permute.xlu1 %738  ;;  %v4960_v21 = vor.u32 %v3773_v17, %v3658_v11 }
 0x19a   : > { %v4938_v47 = vpop.permute.xlu0 %736 }
 0x19b   : > { %1294 = vmatpush.bf16.msrb.mxu2 %v709_v44  ;;  %v4964_v44 = vpop.f32.mrf.mxu0  ;;  %v759_v17 = vpop.permute.xlu2 %758 }
 0x19c   : > { %1383 = vmatpush.bf16.msra.mxu1 %v4141_v13  ;;  %v891_v13 = vld [vmem:[%s7105_s3 + $0x38] sm:$0xff] }
 0x19d   : > { %929 = vperm.xlu1 %3880, %v891_v13  }
 0x19f   : > { %1295 = vmatpush.bf16.msrb.mxu2 %v708_v46 }
 0x1a0   : > { %1384 = vmatpush.bf16.msra.mxu1 %v4145_v14  ;;  %v707_v14 = vsel %vm705_vm5, %v4770_v40, %v4699_v56  ;;  %v706_v40 = vsel %vm705_vm5, %v4665_v43, %v4777_v12  ;;  %v3694_v43 = vld [vmem:[%s7104_s2 + $0x10c] sm:$0xf0] }
 0x1a1   : > { %v4962_v22 = vpop.permute.xlu1 %744 }
 0x1a2   : > { %v4967_v59 = vpop.permute.xlu0 %742 }
 0x1a3   : > { %1296 = vmatpush.bf16.msrb.mxu2 %v707_v14  ;;  %1279 = vmatmul.bf16.gmra.mxu1 %v4960_v21  ;;  %v4989_v52 = vpop.f32.mrf.mxu0  ;;  %v5004_v14 = vpop.permute.xlu2 %789 }
 0x1a4   : > { %1493 = vmatpush.bf16.msrb.mxu1 %v4598_v34  ;;  %v3592_v34 = vld [vmem:[%s7104_s2 + $0x18] sm:$0xf]  ;;  %7178 = vst [vmem:[#allocation30_spill] sm:$0xff] %v4989_v52 }
 0x1a5   : > { %v4986_v11 = vor.u32 %v3760_v31, %v3592_v34 }
 0x1a7   : > { %1297 = vmatpush.bf16.msrb.mxu2 %v706_v40 }
 0x1a8   : > { %1494 = vmatpush.bf16.msrb.mxu1 %v4574_v6  ;;  %v889_v6 = vld [vmem:[%s7105_s3 + $0x28] sm:$0xff] }
 0x1a9   : > { %919 = vperm.xlu2 %3878, %v889_v6   ;;  %v751_v13 = vpop.permute.xlu1 %750  ;;  %v3628_v6 = vld [vmem:[%s7104_s2 + $0x60] sm:$0xf] }
 0x1aa   : > { %v4992_v46 = vpop.permute.xlu0 %748  ;;  %1298 = vmatmul.bf16.vlgmr.msrb.gmra.mxu2 %v4986_v11 }
 0x1ab   : > { %1406 = vmatpush.bf16.msra.mxu2 %v4339_v4  ;;  %v5002_v4 = vpop.f32.mrf.mxu1 }
 0x1ac   : > { %1495 = vmatpush.bf16.msrb.mxu1 %v4499_v39  ;;  %v3782_v39 = vld [vmem:[%s7104_s2 + $0xec] sm:$0xf] }
 0x1af   : > { %1407 = vmatpush.bf16.msra.mxu2 %v4327_v63  ;;  %v5012_v63 = vpop.f32.mrf.mxu0 }
 0x1b0   : > { %1496 = vmatpush.bf16.msrb.mxu1 %v4558_v51  ;;  %v5007_v51 = vor.u32 %v3782_v39, %v3694_v43 }
 0x1b1   : > { %v5010_v34 = vpop.permute.xlu1 %756 }
 0x1b2   : > { %v755_v31 = vpop.permute.xlu0 %754 }
 0x1b3   : > { %1408 = vmatpush.bf16.msra.mxu2 %v4291_v53  ;;  %1284 = vmatmul.bf16.gmra.mxu1 %v5007_v51  ;;  %v5026_v40 = vpop.f32.mrf.mxu1 }
 0x1b4   : > { %1497 = vmatpush.bf16.msrb.mxu1 %v4528_v8  ;;  %v3769_v8 = vld [vmem:[%s7104_s2 + $0x80] sm:$0xf0]  ;;  %7179 = vst [vmem:[#allocation31_spill] sm:$0xff] %v5026_v40 }
 0x1b5   : > { %v5024_v53 = vor.u32 %v3769_v8, %v3628_v6 }
 0x1b7   : > { %1409 = vmatpush.bf16.msra.mxu2 %v4317_v61  ;;  %v5033_v43 = vpop.f32.mrf.mxu0 }
 0x1b8   : > { %1498 = vmatpush.bf16.msrb.mxu1 %v4471_v18  ;;  %v5028_v18 = vpop.permute.xlu2 %795  ;;  %7180 = vst [vmem:[#allocation32_spill] sm:$0xff] %v5033_v43 }
 0x1b9   : > { %v5031_v39 = vpop.permute.xlu1 %787 }
 0x1ba   : > { %v5036_v52 = vpop.permute.xlu0 %760  ;;  %1303 = vmatmul.bf16.gmra.mxu2 %v5024_v53 }
 0x1bb   : > { %1410 = vmatpush.bf16.msra.mxu2 %v4307_v57  ;;  %v770_v61 = vsel %vm762_vm6, %v759_v17, %v5036_v52  ;;  %v769_v57 = vsel %vm762_vm6, %v755_v31, %v5010_v34  ;;  %v768_v17 = vsel %vm762_vm6, %v751_v13, %v4936_v19  ;;  %v767_v13 = vsel %vm762_vm6, %v4908_v20, %v4992_v46 }
 0x1bc   : > { %1499 = vmatpush.bf16.msrb.mxu1 %v4509_v50  ;;  %1319 = vmatpush.bf16.msrb.mxu3 %v770_v61  ;;  %v5045_v50 = vpop.f32.mrf.mxu1 }
 0x1bf   : > { %1411 = vmatpush.bf16.msra.mxu2 %v4273_v49  ;;  %v5053_v43 = vpop.f32.mrf.mxu0  ;;  %v3664_v49 = vld [vmem:[%s7104_s2 + $0xa8] sm:$0xf] }
 0x1c0   : > { %1500 = vmatpush.bf16.msrb.mxu1 %v4491_v30  ;;  %1320 = vmatpush.bf16.msrb.mxu3 %v769_v57  ;;  %v5049_v6 = vpop.permute.xlu2 %801 }
 0x1c1   : > { %v5047_v30 = vpop.permute.xlu1 %793 }
 0x1c2   : > { %v5051_v8 = vpop.permute.xlu0 %791 }
 0x1c3   : > { %1412 = vmatpush.bf16.msra.mxu2 %v4297_v54  ;;  %v3778_v54 = vld [vmem:[%s7104_s2 + $0xc8] sm:$0xf0]  ;;  %1385 = vmatmul.bf16.vlgmr.msra.gmra.mxu1 %v4530_v62 }
 0x1c4   : > { %1321 = vmatpush.bf16.msrb.mxu3 %v768_v17  ;;  %v5066_v31 = vor.u32 %v3778_v54, %v3664_v49  ;;  %v5084_v17 = vpop.f32.mrf.mxu1 }
 0x1c5   : > { %7182 = vst [vmem:[#allocation34_spill] sm:$0xff] %v5084_v17 }
 0x1c7   : > { %1413 = vmatpush.bf16.msra.mxu2 %v4299_v55  ;;  %v5077_v62 = vpop.f32.mrf.mxu0  ;;  %v766_v55 = vsel %vm762_vm6, %v4967_v59, %v4962_v22  ;;  %v764_v59 = vsel %vm762_vm6, %v4850_v9, %v4938_v47 }
 0x1c8   : > { %1322 = vmatpush.bf16.msrb.mxu3 %v767_v13  ;;  %7181 = vst [vmem:[#allocation33_spill] sm:$0xff] %v5077_v62  ;;  %v3594_v13 = vld [vmem:[%s7104_s2 + $0x3c] sm:$0xf0] }
 0x1c9   : > { %v5071_v61 = vpop.permute.xlu1 %799 }
 0x1ca   : > { %v5074_v57 = vpop.permute.xlu0 %797  ;;  %1308 = vmatmul.bf16.gmra.mxu2 %v5066_v31  ;;  %v1183_v17 = vpop.f32.mrf.mxu2 }
 0x1cb   : > { %1522 = vmatpush.bf16.msrb.mxu2 %v4744_v23  ;;  %v5082_v23 = vpop.permute.xlu2 %807 }
 0x1cc   : > { %1323 = vmatpush.bf16.msrb.mxu3 %v766_v55 }
 0x1cf   : > { %1523 = vmatpush.bf16.msrb.mxu2 %v4636_v58  ;;  %v765_v58 = vsel %vm762_vm6, %v4934_v16, %v4876_v3  ;;  %v5095_v54 = vpop.f32.mrf.mxu0  ;;  %v3787_v16 = vld [vmem:[%s7104_s2 + $0x110] sm:$0xf0] }
 0x1d0   : > { %1324 = vmatpush.bf16.msrb.mxu3 %v765_v58  ;;  %v5116_v58 = vpop.f32.mrf.mxu1 }
 0x1d1   : > { %v5090_v20 = vpop.permute.xlu1 %805 }
 0x1d2   : > { %v5093_v49 = vpop.permute.xlu0 %803 }
 0x1d3   : > { %1524 = vmatpush.bf16.msrb.mxu2 %v4724_v2  ;;  %v3700_v2 = vld [vmem:[%s7104_s2 + $0xf0] sm:$0xf]  ;;  %1390 = vmatmul.bf16.gmra.mxu1 %v4576_v10  ;;  %v814_v9 = vpop.permute.xlu2 %813  ;;  %v763_v10 = vsel %vm762_vm6, %v4921_v24, %v4917_v37 }
 0x1d4   : > { %1325 = vmatpush.bf16.msrb.mxu3 %v764_v59  ;;  %v5114_v55 = vor.u32 %v3787_v16, %v3700_v2 }
 0x1d6   : > { %7183 = vst [vmem:[#allocation35_spill] sm:$0xff] %v5114_v55 }
 0x1d7   : > { %1525 = vmatpush.bf16.msrb.mxu2 %v4680_v26  ;;  %v3756_v26 = vld [vmem:[%s7104_s2 + $0x1c] sm:$0xf] }
 0x1d8   : > { %v5121_v59 = vor.u32 %v3756_v26, %v3594_v13  ;;  %1326 = vmatpush.bf16.msrb.mxu3 %v763_v10  ;;  %v5135_v16 = vpop.f32.mrf.mxu1  ;;  %v5139_v26 = vpop.f32.mrf.mxu2 }
 0x1d9   : > { %v812_v40 = vpop.permute.xlu1 %811 }
 0x1da   : > { %v810_v62 = vpop.permute.xlu0 %809  ;;  %1313 = vmatmul.bf16.gmra.mxu2 %v5114_v55 }
 0x1db   : > { %1526 = vmatpush.bf16.msrb.mxu2 %v4589_v29  ;;  %v5126_v29 = vpop.f32.mrf.mxu0  ;;  %1327 = vmatmul.bf16.vlgmr.msrb.gmra.mxu3 %v5121_v59  ;;  %v5131_v24 = vpop.permute.xlu2 %894 }
 0x1dc   : > { %1435 = vmatpush.bf16.msra.mxu3 %v4408_v35  ;;  %v1126_v35 = vadd.f32 %v4964_v44, %v5131_v24 }
 0x1dd   : > { %v1212_v2 = vpop.f32.mrf.mxu3 }
 0x1de   : > { %v1155_v13 = vadd.f32 %v5002_v4, %v1126_v35  ;;  %v826_v4 = vsel %vm819_vm7, %v812_v40, %v814_v9 }
 0x1df   : > { %1527 = vmatpush.bf16.msrb.mxu2 %v4657_v5 }
 0x1e0   : > { %1436 = vmatpush.bf16.msra.mxu3 %v4359_v15  ;;  %v1184_v55 = vadd.f32 %v1183_v17, %v1155_v13  ;;  %v5163_v40 = vpop.f32.mrf.mxu1  ;;  %v7185_v13 = vld [vmem:[#allocation4_spill] sm:$0xff] }
 0x1e1   : > { %v818_v5 = vpop.permute.xlu1 %817 }
 0x1e2   : > { %v816_v15 = vpop.permute.xlu0 %815  ;;  %1609 = vmatpush.bf16.msra.mxu1 %v818_v5  ;;  %v1213_v44 = vadd.f32 %v1212_v2, %v1184_v55  ;;  %v7184_v55 = vld [vmem:[#allocation5_spill] sm:$0xff] }
 0x1e3   : > { %1528 = vmatpush.bf16.msrb.mxu2 %v4618_v7  ;;  %v1241_v7 = vpop.f32.mrf.mxu0  ;;  %v827_v10 = vsel %vm819_vm7, %v816_v15, %v818_v5  ;;  %1395 = vmatmul.bf16.gmra.mxu1 %v4620_v42  ;;  %v823_v15 = vsel %vm819_vm7, %v5071_v61, %v5049_v6  ;;  %v822_v61 = vsel %vm819_vm7, %v5028_v18, %v5074_v57  ;;  %v7188_v18 = vld [vmem:[#allocation14_spill] sm:$0xff] }
 0x1e4   : > { %1437 = vmatpush.bf16.msra.mxu3 %v4398_v32  ;;  %1348 = vmatpush.bf16.msra.mxu0 %v827_v10  ;;  %v3765_v32 = vld [vmem:[%s7104_s2 + $0x64] sm:$0xf]  ;;  %v1242_v17 = vadd.f32 %v1241_v7, %v1213_v44  ;;  %v7186_v10 = vld [vmem:[#allocation17_spill] sm:$0xff] }
 0x1e5   : > { %v5154_v5 = vpop.f32.mrf.mxu3 }
 0x1e6   : > { %1610 = vmatpush.bf16.msra.mxu1 %v814_v9  ;;  %v1188_v9 = vpop.f32.mrf.mxu2 }
 0x1e7   : > { %1529 = vmatpush.bf16.msrb.mxu2 %v4548_v38  ;;  %v3630_v38 = vld [vmem:[%s7104_s2 + $0x84] sm:$0xf0] }
 0x1e8   : > { %1438 = vmatpush.bf16.msra.mxu3 %v4382_v25  ;;  %v5152_v35 = vor.u32 %v3765_v32, %v3630_v38  ;;  %1349 = vmatpush.bf16.msra.mxu0 %v826_v4  ;;  %v825_v25 = vsel %vm819_vm7, %v5082_v23, %v810_v62 }
 0x1ea   : > { %1611 = vmatpush.bf16.msra.mxu1 %v810_v62  ;;  %1414 = vmatmul.bf16.vlgmr.msra.gmra.mxu2 %v4545_v28 }
 0x1eb   : > { %v5158_v42 = vpop.f32.mrf.mxu0  ;;  %1332 = vmatmul.bf16.gmra.mxu3 %v5152_v35  ;;  %v5170_v2 = vpop.permute.xlu1 %904 }
 0x1ec   : > { %1439 = vmatpush.bf16.msra.mxu3 %v4331_v1  ;;  %1350 = vmatpush.bf16.msra.mxu0 %v825_v25  ;;  %v824_v1 = vsel %vm819_vm7, %v5093_v49, %v5090_v20  ;;  %v1131_v62 = vadd.f32 %v5012_v63, %v5170_v2  ;;  %v3666_v63 = vld [vmem:[%s7104_s2 + $0xcc] sm:$0xf0]  ;;  %v7187_v49 = vld [vmem:[#allocation3_spill] sm:$0xff] }
 0x1ed   : > { %v1217_v28 = vpop.f32.mrf.mxu3 }
 0x1ee   : > { %1612 = vmatpush.bf16.msra.mxu1 %v5090_v20  ;;  %v1160_v7 = vadd.f32 %v5045_v50, %v1131_v62  ;;  %v3774_v20 = vld [vmem:[%s7104_s2 + $0xac] sm:$0xf]  ;;  %v5192_v50 = vpop.f32.mrf.mxu2  ;;  %v7189_v62 = vld [vmem:[#allocation10_spill] sm:$0xff] }
 0x1ef   : > { %v5197_v38 = vor.u32 %v3774_v20, %v3666_v63  ;;  %v5244_v20 = vpop.permute.xlu0 %899 }
 0x1f0   : > { %1440 = vmatpush.bf16.msra.mxu3 %v7184_v55  ;;  %1351 = vmatpush.bf16.msra.mxu0 %v824_v1  ;;  %v1189_v32 = vadd.f32 %v1188_v9, %v1160_v7  ;;  %v821_v9 = vsel %vm819_vm7, %v5051_v8, %v5047_v30  ;;  %v820_v55 = vsel %vm819_vm7, %v5031_v39, %v5004_v14  ;;  %v3783_v39 = vld [vmem:[%s7104_s2 + $0xf4] sm:$0xf] }
 0x1f2   : > { %1613 = vmatpush.bf16.msra.mxu1 %v5049_v6  ;;  %v5190_v6 = vpop.f32.mrf.mxu1  ;;  %v1218_v44 = vadd.f32 %v1217_v28, %v1189_v32  ;;  %v7192_v32 = vld [vmem:[#allocation12_spill] sm:$0xff] }
 0x1f3   : > { %v1246_v23 = vpop.f32.mrf.mxu0  ;;  %1400 = vmatmul.bf16.gmra.mxu1 %v7186_v10  ;;  %v7191_v10 = vld [vmem:[#allocation13_spill] sm:$0xff] }
 0x1f4   : > { %1441 = vmatpush.bf16.msra.mxu3 %v7185_v13  ;;  %1352 = vmatpush.bf16.msra.mxu0 %v823_v15  ;;  %v1247_v25 = vadd.f32 %v1246_v23, %v1218_v44  ;;  %v7193_v44 = vld [vmem:[#allocation15_spill] sm:$0xff] }
 0x1f5   : > { %v5199_v4 = vpop.f32.mrf.mxu3 }
 0x1f6   : > { %1614 = vmatpush.bf16.msra.mxu1 %v5074_v57  ;;  %v3600_v57 = vld [vmem:[%s7104_s2 + $0x20] sm:$0xf]  ;;  %v1193_v28 = vpop.f32.mrf.mxu2 }
 0x1f8   : > { %1442 = vmatpush.bf16.msra.mxu3 %v7187_v49  ;;  %1353 = vmatpush.bf16.msra.mxu0 %v822_v61 }
 0x1fa   : > { %1615 = vmatpush.bf16.msra.mxu1 %v5047_v30  ;;  %1419 = vmatmul.bf16.gmra.mxu2 %v7188_v18 }
 0x1fb   : > { %1337 = vmatmul.bf16.gmra.mxu3 %v5197_v38 }
 0x1fc   : > { %1551 = vmatpush.bf16.msrb.mxu3 %v4812_v33  ;;  %v5203_v33 = vpop.f32.mrf.mxu0  ;;  %1354 = vmatpush.bf16.msra.mxu0 %v821_v9  ;;  %v3770_v9 = vld [vmem:[%s7104_s2 + $0x88] sm:$0xf0] }
 0x1fe   : > { %1616 = vmatpush.bf16.msra.mxu1 %v5004_v14  ;;  %v7190_v14 = vld [vmem:[#allocation21_spill] sm:$0xff]  ;;  %v5250_v61 = vpop.f32.mrf.mxu2 }
 0x1ff   : > { %v5223_v8 = vpop.permute.xlu1 %914 }
 0x200   : > { %1552 = vmatpush.bf16.msrb.mxu3 %v4888_v0  ;;  %v3761_v0 = vld [vmem:[%s7104_s2 + $0x40] sm:$0xf0]  ;;  %1355 = vmatpush.bf16.msra.mxu0 %v820_v55  ;;  %v1270_v1 = vpop.f32.mrf.mxu1  ;;  %v1136_v13 = vadd.f32 %v5053_v43, %v5223_v8  ;;  %v3702_v43 = vld [vmem:[%s7104_s2 + $0x114] sm:$0xf0] }
 0x201   : > { %v5221_v30 = vor.u32 %v3761_v0, %v3600_v57  ;;  %v5228_v23 = vadd.f32 %v1270_v1, %v1242_v17  ;;  %v7194_v57 = vld [vmem:[#allocation7_spill] sm:$0xff] }
 0x202   : > { %v1165_v15 = vadd.f32 %v5116_v58, %v1136_v13  ;;  %v5242_v58 = vor.u32 %v3783_v39, %v3702_v43 }
 0x203   : > { %1356 = vmatmul.bf16.vlgmr.msra.gmra.mxu0 %v5221_v30  ;;  %1501 = vmatmul.bf16.vlgmr.msrb.gmra.mxu1 %v7190_v14  ;;  %v7197_v14 = vld [vmem:[#allocation9_spill] sm:$0xff] }
 0x204   : > { %1553 = vmatpush.bf16.msrb.mxu3 %v4867_v36  ;;  %1464 = vmatpush.bf16.msrb.mxu0 %v7189_v62  ;;  %v1222_v36 = vpop.f32.mrf.mxu3  ;;  %v1194_v7 = vadd.f32 %v1193_v28, %v1165_v15  ;;  %v1251_v17 = vpop.f32.mrf.mxu0  ;;  %v7195_v28 = vld [vmem:[#allocation11_spill] sm:$0xff] }
 0x206   : > { %v5268_v1 = vpop.permute.xlu0 %924  ;;  %v1198_v15 = vpop.f32.mrf.mxu2 }
 0x207   : > { %v1141_v62 = vadd.f32 %v5095_v54, %v5268_v1 }
 0x208   : > { %1554 = vmatpush.bf16.msrb.mxu3 %v4752_v27  ;;  %1465 = vmatpush.bf16.msrb.mxu0 %v7191_v10  ;;  %v1223_v27 = vadd.f32 %v1222_v36, %v1194_v7  ;;  %v5246_v63 = vpop.f32.mrf.mxu1  ;;  %v7198_v10 = vld [vmem:[#allocation6_spill] sm:$0xff] }
 0x209   : > { %v1170_v36 = vadd.f32 %v5163_v40, %v1141_v62  ;;  %v3672_v40 = vld [vmem:[%s7104_s2 + $0xb0] sm:$0xf] }
 0x20a   : > { %v1252_v49 = vadd.f32 %v1251_v17, %v1223_v27  ;;  %1424 = vmatmul.bf16.gmra.mxu2 %v7193_v44  ;;  %v7199_v27 = vld [vmem:[#allocation16_spill] sm:$0xff] }
 0x20b   : > { %1342 = vmatmul.bf16.gmra.mxu3 %v5242_v58  ;;  %v1199_v39 = vadd.f32 %v1198_v15, %v1170_v36  ;;  %v7201_v44 = vld [vmem:[#allocation8_spill] sm:$0xff] }
 0x20c   : > { %1555 = vmatpush.bf16.msrb.mxu3 %v4835_v45  ;;  %1466 = vmatpush.bf16.msrb.mxu0 %v7192_v32  ;;  %v3636_v45 = vld [vmem:[%s7104_s2 + $0x68] sm:$0xf]  ;;  %v5260_v18 = vpop.f32.mrf.mxu3  ;;  %v3779_v32 = vld [vmem:[%s7104_s2 + $0xd0] sm:$0xf0] }
 0x20d   : > { %v5266_v0 = vor.u32 %v3770_v9, %v3636_v45  ;;  %v3673_v45 = vor.u32 %v3779_v32, %v3672_v40  ;;  %v7206_v40 = vld [vmem:[#allocation20_spill] sm:$0xff]  ;;  %v7207_v32 = vld [vmem:[#allocation25_spill] sm:$0xff] }
 0x210   : > { %1556 = vmatpush.bf16.msrb.mxu3 %v4803_v48  ;;  %1467 = vmatpush.bf16.msrb.mxu0 %v7194_v57  ;;  %v5264_v48 = vpop.f32.mrf.mxu0  ;;  %v1275_v55 = vpop.f32.mrf.mxu1 }
 0x211   : > { %v1276_v13 = vadd.f32 %v1275_v55, %v1247_v25  ;;  %v5292_v55 = vpop.permute.xlu1 %929 }
 0x212   : > { %v1143_v62 = vadd.f32 %v5126_v29, %v5292_v55 }
 0x213   : > { %1361 = vmatmul.bf16.gmra.mxu0 %v5266_v0 }
 0x214   : > { %1557 = vmatpush.bf16.msrb.mxu3 %v4699_v56  ;;  %1468 = vmatpush.bf16.msrb.mxu0 %v7195_v28  ;;  %v7196_v56 = vld [vmem:[#allocation24_spill] sm:$0xff]  ;;  %v1227_v43 = vpop.f32.mrf.mxu3  ;;  %v1200_v28 = vpop.f32.mrf.mxu2 }
 0x215   : > { %1506 = vmatmul.bf16.gmra.mxu1 %v7196_v56  ;;  %v1228_v7 = vadd.f32 %v1227_v43, %v1199_v39  ;;  %v3708_v56 = vld [vmem:[%s7104_s2 + $0xf8] sm:$0xf] }
 0x218   : > { %1558 = vmatpush.bf16.msrb.mxu3 %v4777_v12  ;;  %1469 = vmatpush.bf16.msrb.mxu0 %v7197_v14  ;;  %v5278_v17 = vpop.f32.mrf.mxu1  ;;  %v1256_v25 = vpop.f32.mrf.mxu0  ;;  %v7200_v12 = vld [vmem:[#allocation18_spill] sm:$0xff] }
 0x219   : > { %v1257_v54 = vadd.f32 %v1256_v25, %v1228_v7 }
 0x21a   : > { %1429 = vmatmul.bf16.gmra.mxu2 %v7200_v12 }
 0x21b   : > { %1443 = vmatmul.bf16.vlgmr.msra.gmra.mxu3 %v7199_v27 }
 0x21c   : > { %1470 = vmatpush.bf16.msrb.mxu0 %v7198_v10 }
 0x220   : > { %1471 = vmatpush.bf16.msrb.mxu0 %v7201_v44  ;;  %v1280_v9 = vpop.f32.mrf.mxu1  ;;  %v1258_v7 = vpop.f32.mrf.mxu0 }
 0x221   : > { %v1281_v57 = vadd.f32 %v1280_v9, %v1252_v49  ;;  %v7202_v49 = vld [vmem:[#allocation19_spill] sm:$0xff] }
 0x222   : > { %v7208_v9 = vld [vmem:[#allocation23_spill] sm:$0xff] }
 0x223   : > { %1366 = vmatmul.bf16.gmra.mxu0 %v3673_v45 }
 0x224   : > { %1580 = vmatpush.bf16.msra.mxu0 %v5036_v52  ;;  %v1172_v52 = vadd.f32 %v5190_v6, %v1143_v62  ;;  %v1229_v6 = vpop.f32.mrf.mxu3 }
 0x225   : > { %1511 = vmatmul.bf16.gmra.mxu1 %v4869_v60  ;;  %v3788_v60 = vld [vmem:[%s7104_s2 + $0x118] sm:$0xf0] }
 0x228   : > { %1581 = vmatpush.bf16.msra.mxu0 %v5010_v34  ;;  %v5298_v36 = vpop.f32.mrf.mxu1  ;;  %v7203_v34 = vld [vmem:[#allocation27_spill] sm:$0xff] }
 0x22a   : > { %1530 = vmatmul.bf16.vlgmr.msrb.gmra.mxu2 %v7203_v34 }
 0x22b   : > { %1448 = vmatmul.bf16.gmra.mxu3 %v7202_v49 }
 0x22c   : > { %1582 = vmatpush.bf16.msra.mxu0 %v4936_v19  ;;  %v1201_v19 = vadd.f32 %v1200_v28, %v1172_v52 }
 0x22d   : > { %v1299_v29 = vpop.f32.mrf.mxu2 }
 0x22e   : > { %v1300_v15 = vadd.f32 %v1299_v29, %v5228_v23  ;;  %v1230_v43 = vadd.f32 %v1229_v6, %v1201_v19 }
 0x230   : > { %1583 = vmatpush.bf16.msra.mxu0 %v4992_v46  ;;  %v3709_v46 = vor.u32 %v3788_v60, %v3708_v56  ;;  %v1285_v14 = vpop.f32.mrf.mxu1  ;;  %v1259_v10 = vadd.f32 %v1258_v7, %v1230_v43 }
 0x231   : > { %v1286_v39 = vadd.f32 %v1285_v14, %v1257_v54  ;;  %v7205_v54 = vld [vmem:[#allocation29_spill] sm:$0xff] }
 0x233   : > { %1371 = vmatmul.bf16.gmra.mxu0 %v3709_v46 }
 0x234   : > { %1584 = vmatpush.bf16.msra.mxu0 %v4962_v22  ;;  %v7204_v22 = vld [vmem:[#allocation22_spill] sm:$0xff] }
 0x235   : > { %1516 = vmatmul.bf16.gmra.mxu1 %v4919_v41  ;;  %v5314_v25 = vpop.f32.mrf.mxu2 }
 0x238   : > { %1585 = vmatpush.bf16.msra.mxu0 %v4876_v3  ;;  %v1287_v27 = vpop.f32.mrf.mxu1 }
 0x239   : > { %v5317_v23 = vadd.f32 %v1287_v27, %v1259_v10  ;;  %v2039_v27 = vld [vmem:[%s7107_s5 + $0x10] sm:$0xff] }
 0x23a   : > { %1535 = vmatmul.bf16.gmra.mxu2 %v7205_v54  ;;  %2052 = vperm.xlu2 %3878, %v2039_v27   ;;  %v5361_v54 = vpop.permute.xlu2 %909 }
 0x23b   : > { %1453 = vmatmul.bf16.gmra.mxu3 %v7204_v22 }
 0x23c   : > { %1586 = vmatpush.bf16.msra.mxu0 %v4938_v47 }
 0x23d   : > { %v1304_v12 = vpop.f32.mrf.mxu2 }
 0x23e   : > { %v1305_v3 = vadd.f32 %v1304_v12, %v1276_v13 }
 0x240   : > { %1587 = vmatpush.bf16.msra.mxu0 %v4917_v37  ;;  %v1386_v28 = vpop.f32.mrf.mxu1 }
 0x243   : > { %1472 = vmatmul.bf16.vlgmr.msrb.gmra.mxu0 %v7206_v40  ;;  %v7211_v40 = vld [vmem:[#allocation35_spill] sm:$0xff] }
 0x245   : > { %1617 = vmatmul.bf16.vlgmr.msra.gmra.mxu1 %v5221_v30  ;;  %v5324_v41 = vpop.f32.mrf.mxu2 }
 0x248   : > { %v5334_v49 = vpop.f32.mrf.mxu1 }
 0x24a   : > { %1540 = vmatmul.bf16.gmra.mxu2 %v4960_v21  ;;  %v7209_v21 = vld [vmem:[#allocation26_spill] sm:$0xff] }
 0x24b   : > { %1458 = vmatmul.bf16.gmra.mxu3 %v7207_v32 }
 0x24d   : > { %v1309_v47 = vpop.f32.mrf.mxu2 }
 0x24e   : > { %v1310_v44 = vadd.f32 %v1309_v47, %v1281_v57  ;;  %v5371_v47 = vpop.permute.xlu2 %919 }
 0x253   : > { %1477 = vmatmul.bf16.gmra.mxu0 %v7208_v9 }
 0x255   : > { %1622 = vmatmul.bf16.gmra.mxu1 %v5266_v0  ;;  %v5330_v37 = vpop.f32.mrf.mxu2  ;;  %v2037_v0 = vld [vmem:[%s7107_s5] sm:$0xff] }
 0x256   : > { %2042 = vperm.xlu0 %3879, %v2037_v0  }
 0x25a   : > { %1545 = vmatmul.bf16.gmra.mxu2 %v5007_v51  ;;  %v1391_v51 = vpop.f32.mrf.mxu1 }
 0x25b   : > { %1559 = vmatmul.bf16.vlgmr.msrb.gmra.mxu3 %v4986_v11  ;;  %v1387_v11 = vadd.f32 %v1386_v28, %v5131_v24  ;;  %v1392_v24 = vadd.f32 %v1391_v51, %v5170_v2  ;;  %v7212_v28 = vld [vmem:[#allocation33_spill] sm:$0xff] }
 0x25d   : > { %v1314_v30 = vpop.f32.mrf.mxu2 }
 0x25e   : > { %v1315_v13 = vadd.f32 %v1314_v30, %v1286_v39  ;;  %v1328_v62 = vpop.f32.mrf.mxu3 }
 0x25f   : > { %v1329_v52 = vadd.f32 %v1328_v62, %v1300_v15  ;;  %v7210_v15 = vld [vmem:[#allocation28_spill] sm:$0xff] }
 0x263   : > { %1482 = vmatmul.bf16.gmra.mxu0 %v7209_v21 }
 0x265   : > { %1627 = vmatmul.bf16.gmra.mxu1 %v3673_v45  ;;  %v5337_v57 = vpop.f32.mrf.mxu2  ;;  %v5347_v45 = vpop.f32.mrf.mxu1 }
 0x266   : > { %v5339_v34 = vpop.f32.mrf.mxu3 }
 0x26b   : > { %1564 = vmatmul.bf16.gmra.mxu3 %v5024_v53 }
 0x26d   : > { %v1415_v56 = vpop.f32.mrf.mxu2  ;;  %v1396_v39 = vpop.f32.mrf.mxu1 }
 0x26e   : > { %v1333_v60 = vpop.f32.mrf.mxu3  ;;  %v1416_v29 = vadd.f32 %v1415_v56, %v1387_v11  ;;  %v1397_v32 = vadd.f32 %v1396_v39, %v5223_v8 }
 0x26f   : > { %v1334_v19 = vadd.f32 %v1333_v60, %v1305_v3 }
 0x273   : > { %1487 = vmatmul.bf16.gmra.mxu0 %v7210_v15 }
 0x275   : > { %1632 = vmatmul.bf16.gmra.mxu1 %v3709_v46  ;;  %v5349_v6 = vpop.f32.mrf.mxu2  ;;  %v5365_v2 = vpop.f32.mrf.mxu1 }
 0x276   : > { %v5351_v14 = vpop.f32.mrf.mxu3 }
 0x27b   : > { %1569 = vmatmul.bf16.gmra.mxu3 %v5066_v31 }
 0x27d   : > { %v1420_v53 = vpop.f32.mrf.mxu2  ;;  %v1401_v11 = vpop.f32.mrf.mxu1 }
 0x27e   : > { %v1338_v43 = vpop.f32.mrf.mxu3  ;;  %v1421_v10 = vadd.f32 %v1420_v53, %v1392_v24  ;;  %v1402_v24 = vadd.f32 %v1401_v11, %v5268_v1 }
 0x27f   : > { %v1339_v7 = vadd.f32 %v1338_v43, %v1310_v44 }
 0x280   : > { %v1357_v22 = vpop.f32.mrf.mxu0 }
 0x281   : > { %v5358_v46 = vadd.f32 %v1357_v22, %v1329_v52  ;;  %v2038_v52 = vld [vmem:[%s7107_s5 + $0x8] sm:$0xff] }
 0x282   : > { %2047 = vperm.xlu1 %3880, %v2038_v52  }
 0x283   : > { %1588 = vmatmul.bf16.vlgmr.msra.gmra.mxu0 %v5121_v59  ;;  %v1138_v59 = vadd.f32 %v7212_v28, %v5371_v47 }
 0x285   : > { %v5363_v12 = vpop.f32.mrf.mxu2  ;;  %v1167_v8 = vadd.f32 %v5135_v16, %v1138_v59  ;;  %v1403_v39 = vpop.f32.mrf.mxu1 }
 0x286   : > { %v1340_v31 = vpop.f32.mrf.mxu3 }
 0x288   : > { %v5367_v3 = vpop.f32.mrf.mxu0 }
 0x28b   : > { %1574 = vmatmul.bf16.gmra.mxu3 %v7211_v40 }
 0x28d   : > { %v1425_v9 = vpop.f32.mrf.mxu2 }
 0x28e   : > { %v1343_v44 = vpop.f32.mrf.mxu3  ;;  %v5375_v62 = vadd.f32 %v1425_v9, %v1397_v32 }
 0x28f   : > { %v1344_v30 = vadd.f32 %v1343_v44, %v1315_v13  ;;  %v1196_v13 = vadd.f32 %v5250_v61, %v1167_v8  ;;  %v1404_v61 = vadd.f32 %v1403_v39, %v5292_v55  ;;  %v1502_v44 = vpop.f32.mrf.mxu1  ;;  %v1317_v39 = vadd.f32 %v5337_v57, %v5317_v23 }
 0x290   : > { %v1362_v21 = vpop.f32.mrf.mxu0 }
 0x291   : > { %v5380_v0 = vadd.f32 %v1362_v21, %v1334_v19  ;;  %v1225_v15 = vadd.f32 %v5260_v18, %v1196_v13 }
 0x293   : > { %1593 = vmatmul.bf16.gmra.mxu0 %v5152_v35  ;;  %v1254_v53 = vadd.f32 %v5264_v48, %v1225_v15  ;;  %v5409_v15 = vld [vmem:[%s290_s15] sm:$0x3]  ;;  %s4011_s15 = smov 48  }
 0x295   : > { %v5384_v56 = vpop.f32.mrf.mxu2  ;;  %v1283_v40 = vadd.f32 %v5298_v36, %v1254_v53 }
 0x296   : > { %v1345_v51 = vpop.f32.mrf.mxu3 }
 0x297   : > { %v1312_v18 = vadd.f32 %v5330_v37, %v1283_v40  ;;  %v5403_v37 = vpop.f32.mrf.mxu1  ;;  %v1346_v40 = vadd.f32 %v1345_v51, %v1317_v39 }
 0x298   : > { %v5387_v60 = vpop.f32.mrf.mxu0 }
 0x29d   : > { %v1430_v19 = vpop.f32.mrf.mxu2 }
 0x29e   : > { %v1444_v43 = vpop.f32.mrf.mxu3  ;;  %v5392_v16 = vadd.f32 %v1430_v19, %v1402_v24 }
 0x29f   : > { %v1445_v27 = vadd.f32 %v1444_v43, %v1416_v29  ;;  %v1341_v29 = vadd.f32 %v1340_v31, %v1312_v18  ;;  %v1507_v18 = vpop.f32.mrf.mxu1 }
 0x2a0   : > { %v1367_v35 = vpop.f32.mrf.mxu0 }
 0x2a1   : > { %v1368_v22 = vadd.f32 %v1367_v35, %v1339_v7  ;;  %v5414_v35 = vperm.slane %v5409_v15, 0 }
 0x2a3   : > { %v1646_v32 = vsub.f32 0.0, %v1368_v22  ;;  %1598 = vmatmul.bf16.gmra.mxu0 %v5197_v38 }
 0x2a5   : > { %v1670_v1 = vmul.f32 1.442695, %v1646_v32  ;;  %v1432_v48 = vpop.f32.mrf.mxu2 }
 0x2a6   : > { %v5398_v9 = vpop.f32.mrf.mxu3  ;;  %v5400_v28 = vadd.f32 %v1432_v48, %v1404_v61 }
 0x2a7   : > { %3881 = vpow2.f32 %v1670_v1 }
 0x2a8   : > { %v1369_v7 = vpop.f32.mrf.mxu0 }
 0x2a9   : > { %v1370_v59 = vadd.f32 %v1369_v7, %v1341_v29 }
 0x2ab   : > { %v1648_v36 = vsub.f32 0.0, %v1370_v59 }
 0x2ad   : > { %v3882_v52 = vpop.eup %3881  ;;  %v1674_v21 = vmul.f32 1.442695, %v1648_v36 }
 0x2ae   : > { %v1694_v38 = vadd.f32 1.0, %v3882_v52  ;;  %v1449_v11 = vpop.f32.mrf.mxu3 }
 0x2af   : > { %3883 = vpow2.f32 %v1674_v21  ;;  %v1450_v55 = vadd.f32 %v1449_v11, %v1421_v10  ;;  %v1509_v11 = vpop.f32.mrf.mxu1 }
 0x2b0   : > { %3885 = vrcp.f32 %v1694_v38  ;;  %v1372_v8 = vpop.f32.mrf.mxu0 }
 0x2b1   : > { %v1373_v31 = vadd.f32 %v1372_v8, %v1344_v30 }
 0x2b3   : > { %v1650_v13 = vsub.f32 0.0, %v1373_v31  ;;  %1603 = vmatmul.bf16.gmra.mxu0 %v5242_v58 }
 0x2b5   : > { %v3884_v24 = vpop.eup %3883  ;;  %v1678_v43 = vmul.f32 1.442695, %v1650_v13 }
 0x2b6   : > { %v3886_v10 = vpop.eup %3885  ;;  %v1696_v19 = vadd.f32 1.0, %v3884_v24  ;;  %v1451_v53 = vpop.f32.mrf.mxu3 }
 0x2b7   : > { %v1726_v32 = vmul.f32 %v3886_v10, %v1368_v22  ;;  %3887 = vpow2.f32 %v1678_v43 }
 0x2b8   : > { %3889 = vrcp.f32 %v1696_v19  ;;  %v1374_v30 = vpop.f32.mrf.mxu0 }
 0x2b9   : > { %v5417_v58 = vmul.f32 %v5414_v35, %v1726_v32  ;;  %v1375_v61 = vadd.f32 %v1374_v30, %v1346_v40 }
 0x2bb   : > { %v1652_v1 = vsub.f32 0.0, %v1375_v61 }
 0x2bd   : > { %v3888_v48 = vpop.eup %3887  ;;  %v1682_v23 = vmul.f32 1.442695, %v1652_v1 }
 0x2be   : > { %v3890_v57 = vpop.eup %3889  ;;  %v1698_v29 = vadd.f32 1.0, %v3888_v48  ;;  %v1454_v7 = vpop.f32.mrf.mxu3 }
 0x2bf   : > { %v1728_v36 = vmul.f32 %v3890_v57, %v1370_v59  ;;  %3891 = vpow2.f32 %v1682_v23  ;;  %v1455_v52 = vadd.f32 %v1454_v7, %v5375_v62  ;;  %v1512_v62 = vpop.f32.mrf.mxu1 }
 0x2c0   : > { %3893 = vrcp.f32 %v1698_v29  ;;  %v1473_v51 = vpop.f32.mrf.mxu0 }
 0x2c1   : > { %v5421_v22 = vmul.f32 %v5414_v35, %v1728_v36  ;;  %v1474_v21 = vadd.f32 %v1473_v51, %v1445_v27 }
 0x2c3   : > { %v5423_v38 = vadd.f32 %v1502_v44, %v1474_v21  ;;  %v1394_v44 = vadd.f32 %v5347_v45, %v5361_v54  ;;  %v1399_v45 = vadd.f32 %v5365_v2, %v5371_v47  ;;  %v1531_v2 = vpop.f32.mrf.mxu2 }
 0x2c5   : > { %v3892_v8 = vpop.eup %3891  ;;  %v1423_v23 = vadd.f32 %v5363_v12, %v1394_v44  ;;  %v1428_v12 = vadd.f32 %v5384_v56, %v1399_v45  ;;  %v7215_v56 = vld [vmem:[#allocation32_spill] sm:$0xff] }
 0x2c6   : > { %v3894_v13 = vpop.eup %3893  ;;  %v1700_v24 = vadd.f32 1.0, %v3892_v8  ;;  %v1456_v39 = vpop.f32.mrf.mxu3 }
 0x2c7   : > { %v1730_v43 = vmul.f32 %v3894_v13, %v1373_v31  ;;  %v1452_v29 = vadd.f32 %v1451_v53, %v1423_v23  ;;  %v1514_v36 = vpop.f32.mrf.mxu1  ;;  %v7214_v53 = vld [vmem:[#allocation31_spill] sm:$0xff]  ;;  %v1133_v23 = vadd.f32 %v7215_v56, %v5361_v54 }
 0x2c8   : > { %3895 = vrcp.f32 %v1700_v24  ;;  %v1475_v10 = vpop.f32.mrf.mxu0 }
 0x2c9   : > { %v5426_v59 = vmul.f32 %v5414_v35, %v1730_v43  ;;  %v1457_v43 = vadd.f32 %v1456_v39, %v1428_v12  ;;  %v1389_v39 = vadd.f32 %v5334_v49, %v5244_v20 }
 0x2ce   : > { %v3896_v19 = vpop.eup %3895  ;;  %v1459_v40 = vpop.f32.mrf.mxu3 }
 0x2cf   : > { %v1732_v32 = vmul.f32 %v3896_v19, %v1375_v61  ;;  %v1460_v30 = vadd.f32 %v1459_v40, %v5392_v16  ;;  %v1517_v13 = vpop.f32.mrf.mxu1 }
 0x2d0   : > { %v1478_v27 = vpop.f32.mrf.mxu0 }
 0x2d1   : > { %v5432_v1 = vmul.f32 %v5414_v35, %v1732_v32  ;;  %v1479_v48 = vadd.f32 %v1478_v27, %v1450_v55  ;;  %v7213_v55 = vld [vmem:[#allocation30_spill] sm:$0xff] }
 0x2d3   : > { %v5434_v31 = vadd.f32 %v1507_v18, %v1479_v48  ;;  %v1128_v18 = vadd.f32 %v7213_v55, %v5244_v20 }
 0x2d6   : > { %v1461_v57 = vpop.f32.mrf.mxu3 }
 0x2d7   : > { %v1462_v7 = vadd.f32 %v1461_v57, %v5400_v28  ;;  %v1157_v28 = vadd.f32 %v7214_v53, %v1128_v18  ;;  %v1519_v27 = vpop.f32.mrf.mxu1 }
 0x2d8   : > { %v1480_v61 = vpop.f32.mrf.mxu0 }
 0x2d9   : > { %v1481_v51 = vadd.f32 %v1480_v61, %v1452_v29 }
 0x2db   : > { %v5438_v16 = vadd.f32 %v1509_v11, %v1481_v51  ;;  %v1186_v11 = vadd.f32 %v5139_v26, %v1157_v28  ;;  %v1533_v51 = vpop.f32.mrf.mxu2 }
 0x2dd   : > { %v1215_v47 = vadd.f32 %v5154_v5, %v1186_v11 }
 0x2df   : > { %v1618_v26 = vpop.f32.mrf.mxu1 }
 0x2e0   : > { %v1483_v21 = vpop.f32.mrf.mxu0 }
 0x2e1   : > { %v1484_v8 = vadd.f32 %v1483_v21, %v1455_v52  ;;  %v1560_v52 = vpop.f32.mrf.mxu3 }
 0x2e3   : > { %v5444_v24 = vadd.f32 %v1512_v62, %v1484_v8  ;;  %v1244_v62 = vadd.f32 %v5158_v42, %v1215_v47  ;;  %v1418_v42 = vadd.f32 %v5349_v6, %v1389_v39 }
 0x2e5   : > { %v1273_v29 = vadd.f32 %v5246_v63, %v1244_v62  ;;  %v1447_v20 = vadd.f32 %v5398_v9, %v1418_v42  ;;  %v1536_v9 = vpop.f32.mrf.mxu2 }
 0x2e7   : > { %v1302_v5 = vadd.f32 %v5314_v25, %v1273_v29  ;;  %v1532_v25 = vadd.f32 %v1531_v2, %v5423_v38  ;;  %v1476_v18 = vadd.f32 %v1475_v10, %v1447_v20  ;;  %v1620_v53 = vpop.f32.mrf.mxu1 }
 0x2e8   : > { %v1485_v19 = vpop.f32.mrf.mxu0 }
 0x2e9   : > { %v1486_v40 = vadd.f32 %v1485_v19, %v1457_v43  ;;  %v1562_v45 = vpop.f32.mrf.mxu3  ;;  %v1561_v6 = vadd.f32 %v1560_v52, %v1532_v25 }
 0x2eb   : > { %v5449_v32 = vadd.f32 %v1514_v36, %v1486_v40  ;;  %v7216_v36 = vld [vmem:[#allocation34_spill] sm:$0xff] }
 0x2ec   : > { %v1162_v61 = vadd.f32 %v7216_v36, %v1133_v23 }
 0x2ed   : > { %v1538_v56 = vpop.f32.mrf.mxu2 }
 0x2ee   : > { %v1191_v8 = vadd.f32 %v5192_v50, %v1162_v61 }
 0x2ef   : > { %v1623_v47 = vpop.f32.mrf.mxu1 }
 0x2f0   : > { %v1488_v44 = vpop.f32.mrf.mxu0  ;;  %v1220_v12 = vadd.f32 %v5199_v4, %v1191_v8 }
 0x2f1   : > { %v1489_v48 = vadd.f32 %v1488_v44, %v1460_v30  ;;  %v1638_v30 = vsub.f32 0.0, %v5358_v46 }
 0x2f2   : > { %v1249_v43 = vadd.f32 %v5203_v33, %v1220_v12 }
 0x2f3   : > { %v5455_v57 = vadd.f32 %v1517_v13, %v1489_v48  ;;  %v1331_v13 = vadd.f32 %v5339_v34, %v1302_v5  ;;  %v1654_v55 = vmul.f32 1.442695, %v1638_v30  ;;  %v1505_v34 = vadd.f32 %v5403_v37, %v1476_v18 }
 0x2f4   : > { %v1278_v10 = vadd.f32 %v5278_v17, %v1249_v43  ;;  %v1642_v37 = vsub.f32 0.0, %v5380_v0 }
 0x2f5   : > { %v5470_v63 = vadd.f32 %v5367_v3, %v1331_v13  ;;  %3897 = vpow2.f32 %v1654_v55  ;;  %v1565_v3 = vpop.f32.mrf.mxu3  ;;  %v1534_v11 = vadd.f32 %v1533_v51, %v1505_v34  ;;  %v1539_v13 = vadd.f32 %v1538_v56, %v5438_v16  ;;  %v1541_v20 = vpop.f32.mrf.mxu2 }
 0x2f6   : > { %v1307_v52 = vadd.f32 %v5324_v41, %v1278_v10  ;;  %v1662_v39 = vmul.f32 1.442695, %v1642_v37 }
 0x2f8   : > { %v1490_v21 = vpop.f32.mrf.mxu0  ;;  %v1336_v33 = vadd.f32 %v5351_v14, %v1307_v52 }
 0x2f9   : > { %v1491_v54 = vadd.f32 %v1490_v21, %v1462_v7  ;;  %v1640_v7 = vsub.f32 0.0, %v5470_v63 }
 0x2fa   : > { %v5482_v17 = vadd.f32 %v5387_v60, %v1336_v33 }
 0x2fb   : > { %v5467_v49 = vadd.f32 %v1519_v27, %v1491_v54  ;;  %v1658_v40 = vmul.f32 1.442695, %v1640_v7  ;;  %v3898_v4 = vpop.eup %3897  ;;  %v1563_v27 = vadd.f32 %v1562_v45, %v1534_v11  ;;  %v1625_v45 = vpop.f32.mrf.mxu1  ;;  %v5492_v7 = vperm.slane %v5409_v15, 1 }
 0x2fc   : > { %v1686_v62 = vadd.f32 1.0, %v3898_v4  ;;  %v1644_v21 = vsub.f32 0.0, %v5482_v17  ;;  %v1542_v15 = vadd.f32 %v1541_v20, %v5444_v24 }
 0x2fd   : > { %3899 = vpow2.f32 %v1658_v40  ;;  %v1567_v29 = vpop.f32.mrf.mxu3  ;;  %v1543_v52 = vpop.f32.mrf.mxu2 }
 0x2fe   : > { %v1666_v8 = vmul.f32 1.442695, %v1644_v21 }
 0x300   : > { %v1589_v50 = vpop.f32.mrf.mxu0 }
 0x301   : > { %v1590_v28 = vadd.f32 %v1589_v50, %v1561_v6  ;;  %v1568_v6 = vadd.f32 %v1567_v29, %v1539_v13 }
 0x303   : > { %v1619_v19 = vadd.f32 %v1618_v26, %v1590_v28  ;;  %v1537_v26 = vadd.f32 %v1536_v9, %v5434_v31  ;;  %v3900_v41 = vpop.eup %3899 }
 0x304   : > { %v1688_v54 = vadd.f32 1.0, %v3900_v41 }
 0x305   : > { %v1639_v38 = vsub.f32 0.0, %v1619_v19  ;;  %v1566_v51 = vadd.f32 %v1565_v3, %v1537_v26 }
 0x307   : > { %v1656_v2 = vmul.f32 1.442695, %v1639_v38  ;;  %v1628_v38 = vpop.f32.mrf.mxu1 }
 0x308   : > { %v1591_v44 = vpop.f32.mrf.mxu0 }
 0x309   : > { %3901 = vpow2.f32 %v1656_v2  ;;  %v1592_v48 = vadd.f32 %v1591_v44, %v1563_v27 }
 0x30a   : > { %3903 = vrcp.f32 %v1686_v62 }
 0x30b   : > { %v1621_v23 = vadd.f32 %v1620_v53, %v1592_v48  ;;  %3905 = vpow2.f32 %v1662_v39  ;;  %v1570_v53 = vpop.f32.mrf.mxu3 }
 0x30c   : > { %v1571_v37 = vadd.f32 %v1570_v53, %v1542_v15 }
 0x30d   : > { %v1641_v36 = vsub.f32 0.0, %v1621_v23 }
 0x30f   : > { %v3902_v61 = vpop.eup %3901  ;;  %v1660_v5 = vmul.f32 1.442695, %v1641_v36 }
 0x310   : > { %v1687_v14 = vadd.f32 1.0, %v3902_v61  ;;  %v1594_v30 = vpop.f32.mrf.mxu0  ;;  %v3904_v31 = vpop.eup %3903 }
 0x311   : > { %3907 = vpow2.f32 %v1660_v5  ;;  %v1595_v42 = vadd.f32 %v1594_v30, %v1566_v51  ;;  %v3906_v25 = vpop.eup %3905  ;;  %v1718_v12 = vmul.f32 %v3904_v31, %v5358_v46  ;;  %v1630_v5 = vpop.f32.mrf.mxu1 }
 0x312   : > { %3909 = vrcp.f32 %v1687_v14  ;;  %v1690_v43 = vadd.f32 1.0, %v3906_v25  ;;  %v1546_v25 = vpop.f32.mrf.mxu2 }
 0x313   : > { %v5486_v60 = vadd.f32 %v1623_v47, %v1595_v42  ;;  %3911 = vrcp.f32 %v1688_v54  ;;  %v1740_v40 = vmul.f32 %v5414_v35, %v1718_v12  ;;  %v1572_v56 = vpop.f32.mrf.mxu3 }
 0x314   : > { %3913 = vpow2.f32 %v1666_v8 }
 0x315   : > { %v1643_v55 = vsub.f32 0.0, %v5486_v60 }
 0x317   : > { %v3908_v18 = vpop.eup %3907  ;;  %v1664_v50 = vmul.f32 1.442695, %v1643_v55 }
 0x318   : > { %v3910_v34 = vpop.eup %3909  ;;  %v1689_v9 = vadd.f32 1.0, %v3908_v18  ;;  %v1596_v28 = vpop.f32.mrf.mxu0 }
 0x319   : > { %v1719_v16 = vmul.f32 %v3910_v34, %v1619_v19  ;;  %3915 = vpow2.f32 %v1664_v50  ;;  %v1597_v3 = vadd.f32 %v1596_v28, %v1568_v6  ;;  %v3912_v10 = vpop.eup %3911 }
 0x31a   : > { %3917 = vrcp.f32 %v1689_v9  ;;  %v3914_v2 = vpop.eup %3913  ;;  %v1720_v19 = vmul.f32 %v3912_v10, %v5470_v63 }
 0x31b   : > { %v1741_v11 = vmul.f32 %v5492_v7, %v1719_v16  ;;  %v5496_v46 = vadd.f32 %v1625_v45, %v1597_v3  ;;  %3919 = vrcp.f32 %v1690_v43  ;;  %v1692_v29 = vadd.f32 1.0, %v3914_v2  ;;  %v1575_v53 = vpop.f32.mrf.mxu3 }
 0x31c   : > { %v1742_v36 = vmul.f32 %v5414_v35, %v1720_v19  ;;  %v1548_v19 = vpop.f32.mrf.mxu2 }
 0x31d   : > { %v1756_v4 = vpack.c.bf16 %v1741_v11, %v1740_v40  ;;  %v1645_v27 = vsub.f32 0.0, %v5496_v46  ;;  %v1633_v11 = vpop.f32.mrf.mxu1 }
 0x31f   : > { %v3916_v47 = vpop.eup %3915  ;;  %v1668_v44 = vmul.f32 1.442695, %v1645_v27  ;;  %v1772_v14 = vunpack.c.l.b16 %v1756_v4  ;;  %v1773_v42 = vunpack.c.h.b16 %v1756_v4 }
 0x320   : > { %v3918_v48 = vpop.eup %3917  ;;  %v1691_v33 = vadd.f32 1.0, %v3916_v47  ;;  %v1599_v62 = vpop.f32.mrf.mxu0 }
 0x321   : > { %v1721_v39 = vmul.f32 %v3918_v48, %v1621_v23  ;;  %3921 = vpow2.f32 %v1668_v44  ;;  %v1600_v26 = vadd.f32 %v1599_v62, %v1571_v37  ;;  %v3920_v24 = vpop.eup %3919  ;;  %v1544_v23 = vadd.f32 %v1543_v52, %v5449_v32 }
 0x322   : > { %3923 = vrcp.f32 %v1691_v33  ;;  %v1722_v21 = vmul.f32 %v3920_v24, %v5380_v0  ;;  %v1549_v44 = vadd.f32 %v1548_v19, %v5467_v49 }
 0x323   : > { %v1743_v41 = vmul.f32 %v5492_v7, %v1721_v39  ;;  %v5503_v61 = vadd.f32 %v1628_v38, %v1600_v26  ;;  %3925 = vrcp.f32 %v1692_v29  ;;  %v1573_v13 = vadd.f32 %v1572_v56, %v1544_v23 }
 0x324   : > { %v1744_v6 = vmul.f32 %v5414_v35, %v1722_v21 }
 0x325   : > { %v1757_v63 = vpack.c.bf16 %v1743_v41, %v1742_v36  ;;  %v1647_v51 = vsub.f32 0.0, %v5503_v61 }
 0x327   : > { %v3922_v30 = vpop.eup %3921  ;;  %v1774_v45 = vunpack.c.l.b16 %v1757_v63  ;;  %v1775_v54 = vunpack.c.h.b16 %v1757_v63  ;;  %v1672_v31 = vmul.f32 1.442695, %v1647_v51  ;;  %v1635_v51 = vpop.f32.mrf.mxu1 }
 0x328   : > { %v3924_v8 = vpop.eup %3923  ;;  %v1693_v20 = vadd.f32 1.0, %v3922_v30  ;;  %v1601_v55 = vpop.f32.mrf.mxu0 }
 0x329   : > { %v5508_v18 = vpack.c.b16 %v1774_v45, %v1772_v14  ;;  %v5510_v12 = vpack.c.b16 %v1775_v54, %v1773_v42  ;;  %v1723_v0 = vmul.f32 %v3924_v8, %v5486_v60  ;;  %3927 = vpow2.f32 %v1672_v31  ;;  %v3926_v34 = vpop.eup %3925 }
 0x32a   : > { %3929 = vrcp.f32 %v1693_v20  ;;  %v1602_v32 = vadd.f32 %v1601_v55, %v1573_v13  ;;  %v1547_v60 = vadd.f32 %v1546_v25, %v5455_v57  ;;  %v1724_v3 = vmul.f32 %v3926_v34, %v5482_v17  ;;  %v1577_v17 = vpop.f32.mrf.mxu3 }
 0x32b   : > { %v1745_v50 = vmul.f32 %v5492_v7, %v1723_v0  ;;  %1806 = vrot.lane.b32.xlu0 %v5510_v12, %s4001_s7  ;;  %1832 = vrot.lane.b32.xlu1 %v5508_v18, %s4002_s9  ;;  %v1578_v26 = vadd.f32 %v1577_v17, %v1549_v44 }
 0x32c   : > { %v1631_v9 = vadd.f32 %v1630_v5, %v1602_v32  ;;  %1804 = vrot.lane.b32.xlu2 %v5508_v18, %s4001_s7  ;;  %v1576_v40 = vadd.f32 %v1575_v53, %v1547_v60  ;;  %v1746_v47 = vmul.f32 %v5414_v35, %v1724_v3 }
 0x32d   : > { %v1758_v28 = vpack.c.bf16 %v1745_v50, %v1744_v6 }
 0x32e   : > { %v1649_v43 = vsub.f32 0.0, %v1631_v9 }
 0x32f   : > { %v3928_v16 = vpop.eup %3927  ;;  %v1776_v35 = vunpack.c.l.b16 %v1758_v28  ;;  %v1777_v48 = vunpack.c.h.b16 %v1758_v28 }
 0x330   : > { %v3930_v38 = vpop.eup %3929  ;;  %v1695_v10 = vadd.f32 1.0, %v3928_v16  ;;  %v1676_v15 = vmul.f32 1.442695, %v1649_v43  ;;  %v1604_v4 = vpop.f32.mrf.mxu0 }
 0x331   : > { %v1725_v27 = vmul.f32 %v3930_v38, %v5496_v46  ;;  %v1605_v2 = vadd.f32 %v1604_v4, %v1576_v40  ;;  %v5632_v4 = vpop.permute.xlu0 %2042 }
 0x332   : > { %3931 = vrcp.f32 %v1695_v10  ;;  %7222 = vst [vmem:[#allocation4_spill] sm:$0xff] %v5632_v4 }
 0x333   : > { %v1747_v57 = vmul.f32 %v5492_v7, %v1725_v27  ;;  %3933 = vpow2.f32 %v1676_v15  ;;  %v1634_v52 = vadd.f32 %v1633_v11, %v1605_v2  ;;  %1860 = vrot.lane.b32.xlu0 %v5508_v18, %s4003_s10  ;;  %1862 = vrot.lane.b32.xlu1 %v5510_v12, %s4003_s10  ;;  %v5634_v27 = vpop.permute.xlu1 %2047 }
 0x334   : > { %1834 = vrot.lane.b32.xlu2 %v5510_v12, %s4002_s9  ;;  %7223 = vst [vmem:[#allocation17_spill] sm:$0xff] %v5634_v27 }
 0x335   : > { %v1759_v46 = vpack.c.bf16 %v1747_v57, %v1746_v47  ;;  %v1651_v37 = vsub.f32 0.0, %v1634_v52 }
 0x337   : > { %v1778_v33 = vunpack.c.l.b16 %v1759_v46  ;;  %v1779_v62 = vunpack.c.h.b16 %v1759_v46  ;;  %v1680_v56 = vmul.f32 1.442695, %v1651_v37 }
 0x338   : > { %v3932_v39 = vpop.eup %3931  ;;  %v1606_v29 = vpop.f32.mrf.mxu0 }
 0x339   : > { %v3934_v24 = vpop.eup %3933  ;;  %v5533_v36 = vpack.c.b16 %v1778_v33, %v1776_v35  ;;  %v5535_v41 = vpack.c.b16 %v1779_v62, %v1777_v48  ;;  %v1727_v63 = vmul.f32 %v3932_v39, %v5503_v61  ;;  %3935 = vpow2.f32 %v1680_v56 }
 0x33a   : > { %v1697_v5 = vadd.f32 1.0, %v3934_v24  ;;  %v1607_v21 = vadd.f32 %v1606_v29, %v1578_v26 }
 0x33b   : > { %v1749_v49 = vmul.f32 %v5492_v7, %v1727_v63  ;;  %1890 = vrot.lane.b32.xlu0 %v5510_v12, %s7217_s14  ;;  %1916 = vrot.lane.b32.xlu1 %v5508_v18, %s7218_s19 }
 0x33c   : > { %3937 = vrcp.f32 %v1697_v5  ;;  %v1636_v23 = vadd.f32 %v1635_v51, %v1607_v21  ;;  %1888 = vrot.lane.b32.xlu2 %v5508_v18, %s7217_s14 }
 0x33d   : > { %v1760_v14 = vpack.c.bf16 %v1749_v49, %v5417_v58 }
 0x33e   : > { %v1653_v61 = vsub.f32 0.0, %v1636_v23 }
 0x33f   : > { %v3936_v30 = vpop.eup %3935  ;;  %v1780_v20 = vunpack.c.l.b16 %v1760_v14  ;;  %v1781_v25 = vunpack.c.h.b16 %v1760_v14 }
 0x340   : > { %v1699_v42 = vadd.f32 1.0, %v3936_v30  ;;  %v1684_v45 = vmul.f32 1.442695, %v1653_v61 }
 0x342   : > { %v3938_v54 = vpop.eup %3937  ;;  %3939 = vrcp.f32 %v1699_v42 }
 0x343   : > { %v1729_v31 = vmul.f32 %v3938_v54, %v1631_v9  ;;  %3941 = vpow2.f32 %v1684_v45  ;;  %1944 = vrot.lane.b32.xlu0 %v5508_v18, %s7219_s20  ;;  %1946 = vrot.lane.b32.xlu1 %v5510_v12, %s7219_s20 }
 0x344   : > { %1918 = vrot.lane.b32.xlu2 %v5510_v12, %s7218_s19 }
 0x345   : > { %v1751_v8 = vmul.f32 %v5492_v7, %v1729_v31 }
 0x347   : > { %v1761_v58 = vpack.c.bf16 %v1751_v8, %v5421_v22 }
 0x348   : > { %v3940_v13 = vpop.eup %3939 }
 0x349   : > { %v3942_v55 = vpop.eup %3941  ;;  %v1782_v0 = vunpack.c.l.b16 %v1761_v58  ;;  %v1783_v32 = vunpack.c.h.b16 %v1761_v58  ;;  %v1731_v6 = vmul.f32 %v3940_v13, %v1634_v52 }
 0x34a   : > { %v1701_v53 = vadd.f32 1.0, %v3942_v55 }
 0x34b   : > { %v5554_v50 = vpack.c.b16 %v1782_v0, %v1780_v20  ;;  %v5556_v34 = vpack.c.b16 %v1783_v32, %v1781_v25  ;;  %v1753_v9 = vmul.f32 %v5492_v7, %v1731_v6  ;;  %1974 = vrot.lane.b32.xlu0 %v5510_v12, %s7220_s16  ;;  %2000 = vrot.lane.b32.xlu1 %v5508_v18, %s4008_s11 }
 0x34c   : > { %3943 = vrcp.f32 %v1701_v53  ;;  %1972 = vrot.lane.b32.xlu2 %v5508_v18, %s7220_s16 }
 0x34d   : > { %v1762_v22 = vpack.c.bf16 %v1753_v9, %v5426_v59 }
 0x34f   : > { %v1784_v3 = vunpack.c.l.b16 %v1762_v22  ;;  %v1785_v40 = vunpack.c.h.b16 %v1762_v22 }
 0x352   : > { %v3944_v60 = vpop.eup %3943 }
 0x353   : > { %v1733_v28 = vmul.f32 %v3944_v60, %v1636_v23  ;;  %1836 = vrot.lane.b32.xlu0 %v5533_v36, %s4002_s9  ;;  %1808 = vrot.lane.b32.xlu1 %v5533_v36, %s4001_s7 }
 0x354   : > { %2002 = vrot.lane.b32.xlu2 %v5510_v12, %s4008_s11 }
 0x355   : > { %v1755_v43 = vmul.f32 %v5492_v7, %v1733_v28 }
 0x357   : > { %v1763_v16 = vpack.c.bf16 %v1755_v43, %v5432_v1  ;;  %v5608_v1 = vpop.permute.xlu2 %2052 }
 0x358   : > { %7221 = vst [vmem:[#allocation5_spill] sm:$0xff] %v5608_v1 }
 0x359   : > { %v1786_v11 = vunpack.c.l.b16 %v1763_v16  ;;  %v1787_v38 = vunpack.c.h.b16 %v1763_v16 }
 0x35b   : > { %v5574_v59 = vpack.c.b16 %v1786_v11, %v1784_v3  ;;  %v5576_v10 = vpack.c.b16 %v1787_v38, %v1785_v40  ;;  %1866 = vrot.lane.b32.xlu0 %v5535_v41, %s4003_s10  ;;  %1838 = vrot.lane.b32.xlu1 %v5535_v41, %s4002_s9 }
 0x35c   : > { %1810 = vrot.lane.b32.xlu2 %v5535_v41, %s4001_s7 }
 0x363   : > { %1920 = vrot.lane.b32.xlu0 %v5533_v36, %s7218_s19  ;;  %1892 = vrot.lane.b32.xlu1 %v5533_v36, %s7217_s14 }
 0x364   : > { %1864 = vrot.lane.b32.xlu2 %v5533_v36, %s4003_s10 }
 0x36b   : > { %1950 = vrot.lane.b32.xlu0 %v5535_v41, %s7219_s20  ;;  %1922 = vrot.lane.b32.xlu1 %v5535_v41, %s7218_s19 }
 0x36c   : > { %1894 = vrot.lane.b32.xlu2 %v5535_v41, %s7217_s14 }
 0x373   : > { %2004 = vrot.lane.b32.xlu0 %v5533_v36, %s4008_s11  ;;  %1976 = vrot.lane.b32.xlu1 %v5533_v36, %s7220_s16 }
 0x374   : > { %1948 = vrot.lane.b32.xlu2 %v5533_v36, %s7219_s20 }
 0x37b   : > { %1812 = vrot.lane.b32.xlu0 %v5554_v50, %s4001_s7  ;;  %2006 = vrot.lane.b32.xlu1 %v5535_v41, %s4008_s11 }
 0x37c   : > { %1978 = vrot.lane.b32.xlu2 %v5535_v41, %s7220_s16 }
 0x383   : > { %1842 = vrot.lane.b32.xlu0 %v5556_v34, %s4002_s9  ;;  %1814 = vrot.lane.b32.xlu1 %v5556_v34, %s4001_s7 }
 0x384   : > { %1840 = vrot.lane.b32.xlu2 %v5554_v50, %s4002_s9 }
 0x386   : > { %v5616_v7 = vpop.permute.xlu2 %1804 }
 0x38b   : > { %1896 = vrot.lane.b32.xlu0 %v5554_v50, %s7217_s14  ;;  %1868 = vrot.lane.b32.xlu1 %v5554_v50, %s4003_s10 }
 0x38c   : > { %1870 = vrot.lane.b32.xlu2 %v5556_v34, %s4003_s10 }
 0x38e   : > { %v5624_v15 = vpop.permute.xlu2 %1834 }
 0x393   : > { %1926 = vrot.lane.b32.xlu0 %v5556_v34, %s7218_s19  ;;  %1898 = vrot.lane.b32.xlu1 %v5556_v34, %s7217_s14 }
 0x394   : > { %1924 = vrot.lane.b32.xlu2 %v5554_v50, %s7218_s19 }
 0x396   : > { %v5636_v2 = vpop.permute.xlu2 %1888 }
 0x39b   : > { %1980 = vrot.lane.b32.xlu0 %v5554_v50, %s7220_s16  ;;  %1952 = vrot.lane.b32.xlu1 %v5554_v50, %s7219_s20 }
 0x39c   : > { %1954 = vrot.lane.b32.xlu2 %v5556_v34, %s7219_s20 }
 0x39d   : > { %v5644_v47 = vpop.permute.xlu1 %1832  ;;  %v5646_v19 = vpop.permute.xlu0 %1806 }
 0x39e   : > { %v5648_v57 = vpop.permute.xlu2 %1918 }
 0x3a3   : > { %2010 = vrot.lane.b32.xlu0 %v5556_v34, %s4008_s11  ;;  %1982 = vrot.lane.b32.xlu1 %v5556_v34, %s7220_s16 }
 0x3a4   : > { %2008 = vrot.lane.b32.xlu2 %v5554_v50, %s4008_s11 }
 0x3a5   : > { %v5656_v52 = vpop.permute.xlu1 %1862  ;;  %v5658_v17 = vpop.permute.xlu0 %1860 }
 0x3a6   : > { %v5660_v46 = vpop.permute.xlu2 %1972 }
 0x3ab   : > { %1818 = vrot.lane.b32.xlu0 %v5576_v10, %s4001_s7  ;;  %1844 = vrot.lane.b32.xlu1 %v5574_v59, %s4002_s9 }
 0x3ac   : > { %1816 = vrot.lane.b32.xlu2 %v5574_v59, %s4001_s7 }
 0x3ad   : > { %v5668_v37 = vpop.permute.xlu1 %1916  ;;  %v5670_v44 = vpop.permute.xlu0 %1890 }
 0x3ae   : > { %v5672_v35 = vpop.permute.xlu2 %2002 }
 0x3b3   : > { %1872 = vrot.lane.b32.xlu0 %v5574_v59, %s4003_s10  ;;  %1874 = vrot.lane.b32.xlu1 %v5576_v10, %s4003_s10 }
 0x3b4   : > { %1846 = vrot.lane.b32.xlu2 %v5576_v10, %s4002_s9 }
 0x3b5   : > { %v5680_v48 = vpop.permute.xlu1 %1946  ;;  %v5682_v33 = vpop.permute.xlu0 %1944 }
 0x3b6   : > { %7224 = vst [vmem:[#allocation3_spill] sm:$0xff] %v5680_v48  ;;  %v1811_v62 = vpop.permute.xlu2 %1810 }
 0x3b7   : > { %7225 = vst [vmem:[#allocation14_spill] sm:$0xff] %v5682_v33 }
 0x3bb   : > { %1902 = vrot.lane.b32.xlu0 %v5576_v10, %s7217_s14  ;;  %1928 = vrot.lane.b32.xlu1 %v5574_v59, %s7218_s19 }
 0x3bc   : > { %1900 = vrot.lane.b32.xlu2 %v5574_v59, %s7217_s14  ;;  %s4012_s14 = smov 28  }
 0x3bd   : > { %v5690_v56 = vpop.permute.xlu1 %2000  ;;  %v5692_v39 = vpop.permute.xlu0 %1974 }
 0x3be   : > { %v5694_v26 = vpop.permute.xlu2 %1864 }
 0x3c3   : > { %1956 = vrot.lane.b32.xlu0 %v5574_v59, %s7219_s20  ;;  %1958 = vrot.lane.b32.xlu1 %v5576_v10, %s7219_s20 }
 0x3c4   : > { %1930 = vrot.lane.b32.xlu2 %v5576_v10, %s7218_s19  ;;  %s3807_s19 = smul.u32 (%p4096_p5), 48, %s3987_s24 }
 0x3c5   : > { %v1809_v29 = vpop.permute.xlu1 %1808  ;;  %v5702_v24 = vpop.permute.xlu0 %1836 }
 0x3c6   : > { %v5704_v63 = vpop.permute.xlu2 %1894 }
 0x3cb   : > { %1986 = vrot.lane.b32.xlu0 %v5576_v10, %s7220_s16  ;;  %2012 = vrot.lane.b32.xlu1 %v5574_v59, %s4008_s11 }
 0x3cc   : > { %1984 = vrot.lane.b32.xlu2 %v5574_v59, %s7220_s16  ;;  %s3280_s16 = sadd.s32 (%p4096_p5), %s3983_s23, %s3807_s19 }
 0x3cd   : > { %v5712_v51 = vpop.permute.xlu1 %1838  ;;  %v5714_v5 = vpop.permute.xlu0 %1866  ;;  %s3734_s7 = sshll.u32 (%p4096_p5), %s3280_s16, 3 }
 0x3ce   : > { %v5716_v21 = vpop.permute.xlu2 %1948  ;;  %s7033_s8 = scalar_lea.vmem (%p4096_p5), %s7108_s6, %s3734_s7 }
 0x3cf   : > { %7226 = vst [vmem:[#allocation10_spill] sm:$0xff] %v5716_v21  ;;  %v1821_v21 = vsel %vm420_vm0, %v1809_v29, %v1811_v62 }
 0x3d4   : > { %2014 = vrot.lane.b32.xlu2 %v5576_v10, %s4008_s11 }
 0x3d5   : > { %v5720_v49 = vpop.permute.xlu1 %1892  ;;  %v5722_v23 = vpop.permute.xlu0 %1920 }
 0x3d6   : > { %v5724_v14 = vpop.permute.xlu2 %1978 }
 0x3dd   : > { %v5726_v61 = vpop.permute.xlu1 %1922  ;;  %v5728_v30 = vpop.permute.xlu0 %1950 }
 0x3de   : > { %7227 = vst [vmem:[#allocation21_spill] sm:$0xff] %v5728_v30  ;;  %v5730_v42 = vpop.permute.xlu2 %1840 }
 0x3e5   : > { %v5732_v45 = vpop.permute.xlu1 %1976  ;;  %v5734_v54 = vpop.permute.xlu0 %2004 }
 0x3e6   : > { %v5736_v31 = vpop.permute.xlu2 %1870 }
 0x3ed   : > { %v5738_v8 = vpop.permute.xlu1 %2006  ;;  %v1813_v58 = vpop.permute.xlu0 %1812 }
 0x3ee   : > { %v5740_v13 = vpop.permute.xlu2 %1924 }
 0x3f5   : > { %v1815_v20 = vpop.permute.xlu1 %1814  ;;  %v5742_v55 = vpop.permute.xlu0 %1842 }
 0x3f6   : > { %v5744_v25 = vpop.permute.xlu2 %1954  ;;  %v1822_v27 = vsel %vm420_vm0, %v1813_v58, %v1815_v20 }
 0x3fd   : > { %v1869_v0 = vpop.permute.xlu1 %1868  ;;  %v5746_v32 = vpop.permute.xlu0 %1896 }
 0x3fe   : > { %v5748_v6 = vpop.permute.xlu2 %2008 }
 0x405   : > { %v5750_v53 = vpop.permute.xlu1 %1898  ;;  %v5752_v9 = vpop.permute.xlu0 %1926 }
 0x406   : > { %v1817_v22 = vpop.permute.xlu2 %1816 }
 0x40d   : > { %v5754_v60 = vpop.permute.xlu1 %1952  ;;  %v5756_v28 = vpop.permute.xlu0 %1980 }
 0x40e   : > { %v5758_v43 = vpop.permute.xlu2 %1846 }
 0x415   : > { %v5760_v16 = vpop.permute.xlu1 %1982  ;;  %v5762_v3 = vpop.permute.xlu0 %2010 }
 0x416   : > { %v5764_v40 = vpop.permute.xlu2 %1900 }
 0x41d   : > { %v1845_v11 = vpop.permute.xlu1 %1844  ;;  %v1819_v38 = vpop.permute.xlu0 %1818 }
 0x41e   : > { %2194 = vmatpush.bf16.msrb.mxu1 %v1819_v38  ;;  %v1823_v1 = vsel %vm420_vm0, %v1817_v22, %v1819_v38  ;;  %v5773_v30 = vpop.permute.xlu2 %1930  ;;  %v1933_v38 = vsel %vm648_vm4, %v5722_v23, %v5726_v61  ;;  %v3728_v23 = vld [vmem:[%s7106_s4 + $0x10] sm:$0xf] }
 0x41f   : > { %2104 = vmatpush.bf16.msra.mxu2 %v1823_v1  ;;  %v1820_v1 = vsel %vm420_vm0, %v5616_v7, %v5646_v19  ;;  %v1876_v7 = vsel %vm534_vm2, %v5658_v17, %v5656_v52  ;;  %vm2884_vm0 = vcmask 1046528  }
 0x422   : > { %2195 = vmatpush.bf16.msrb.mxu1 %v1815_v20  ;;  %v3714_v20 = vld [vmem:[%s7106_s4 + $0x14] sm:$0xf0] }
 0x423   : > { %2105 = vmatpush.bf16.msra.mxu2 %v1822_v27  ;;  %v1878_v27 = vsel %vm534_vm2, %v1869_v0, %v5736_v31 }
 0x425   : > { %v5768_v4 = vpop.permute.xlu1 %1874  ;;  %v1873_v33 = vpop.permute.xlu0 %1872 }
 0x426   : > { %v1879_v48 = vsel %vm534_vm2, %v1873_v33, %v5768_v4  ;;  %2196 = vmatpush.bf16.msrb.mxu1 %v1811_v62  ;;  %v1985_v62 = vpop.permute.xlu2 %1984 }
 0x427   : > { %2106 = vmatpush.bf16.msra.mxu2 %v1821_v21  ;;  %2122 = vmatpush.bf16.msra.mxu3 %v1879_v48  ;;  %v1877_v48 = vsel %vm534_vm2, %v5694_v26, %v5714_v5  ;;  %v1849_v21 = vsel %vm477_vm1, %v5702_v24, %v5712_v51  ;;  %v1848_v24 = vsel %vm477_vm1, %v5644_v47, %v5624_v15  ;;  %vm3061_vm2 = vcmask 64512  }
 0x42a   : > { %2197 = vmatpush.bf16.msrb.mxu1 %v5646_v19 }
 0x42b   : > { %2107 = vmatpush.bf16.msra.mxu2 %v1820_v1  ;;  %2123 = vmatpush.bf16.msra.mxu3 %v1878_v27  ;;  %v2017_v1 = vsel %vm819_vm7, %v5734_v54, %v5738_v8  ;;  %v1932_v27 = vsel %vm648_vm4, %v5668_v37, %v5648_v57  ;;  %v1990_v54 = vsel %vm762_vm6, %v5756_v28, %v5760_v16 }
 0x42c   : > { %v2016_v37 = vsel %vm819_vm7, %v5690_v56, %v5672_v35  ;;  %v1906_v56 = vsel %vm591_vm3, %v5746_v32, %v5750_v53  ;;  %v3720_v32 = vld [vmem:[%s7106_s4 + $0x8] sm:$0xf] }
 0x42d   : > { %v1929_v58 = vpop.permute.xlu1 %1928  ;;  %v5781_v33 = vpop.permute.xlu0 %1902 }
 0x42e   : > { %2198 = vmatpush.bf16.msrb.mxu1 %v5576_v10  ;;  %v1851_v10 = vsel %vm477_vm1, %v1845_v11, %v5758_v43  ;;  %v1935_v17 = vsel %vm648_vm4, %v1929_v58, %v5773_v30  ;;  %v5813_v29 = vpop.permute.xlu2 %2014  ;;  %v2034_v11 = vld [vmem:[%s7106_s4 + $0x28] sm:$0xff]  ;;  %v3793_v58 = vld [vmem:[%s7106_s4 + $0x20] sm:$0xf0] }
 0x42f   : > { %2108 = vmatpush.bf16.msra.mxu2 %v5574_v59  ;;  %2124 = vmatpush.bf16.msra.mxu3 %v1877_v48  ;;  %v3712_v59 = vld [vmem:[%s7106_s4] sm:$0xf]  ;;  %v2075_v28 = vunpack.c.h.b16 %v2034_v11 }
 0x432   : > { %2199 = vmatpush.bf16.msrb.mxu1 %v5556_v34  ;;  %v3791_v34 = vld [vmem:[%s7106_s4 + $0x10] sm:$0xf0] }
 0x433   : > { %2109 = vmatpush.bf16.msra.mxu2 %v5554_v50  ;;  %2125 = vmatpush.bf16.msra.mxu3 %v1876_v7  ;;  %v3713_v50 = vor.u32 %v3791_v34, %v3712_v59  ;;  %v1907_v7 = vsel %vm591_vm3, %v5764_v40, %v5781_v33  ;;  %v1988_v40 = vsel %vm762_vm6, %v5660_v46, %v5692_v39 }
 0x434   : > { %v1905_v59 = vsel %vm591_vm3, %v5720_v49, %v5704_v63  ;;  %v1904_v46 = vsel %vm591_vm3, %v5636_v2, %v5670_v44  ;;  %v3792_v49 = vld [vmem:[%s7106_s4 + $0x18] sm:$0xf0]  ;;  %v2036_v2 = vld [vmem:[%s7106_s4 + $0x38] sm:$0xf] }
 0x435   : > { %v5793_v19 = vpop.permute.xlu1 %1958  ;;  %v5804_v26 = vpop.permute.xlu0 %1956 }
 0x436   : > { %2200 = vmatpush.bf16.msrb.mxu1 %v5535_v41  ;;  %v1850_v41 = vsel %vm477_vm1, %v5730_v42, %v5742_v55  ;;  %v3789_v42 = vld [vmem:[%s7106_s4 + $0x4] sm:$0xf]  ;;  %v1963_v34 = vsel %vm705_vm5, %v5804_v26, %v5793_v19  ;;  %v1962_v26 = vsel %vm705_vm5, %v5754_v60, %v5744_v25  ;;  %vm2881_vm1 = vcmask 1046534  }
 0x437   : > { %2110 = vmatpush.bf16.msra.mxu2 %v5533_v36  ;;  %2126 = vmatpush.bf16.msra.mxu3 %v1851_v10  ;;  %v5840_v22 = vor.u32 %v3789_v42, %v3714_v20  ;;  %v1989_v10 = vsel %vm762_vm6, %v5732_v45, %v5724_v14  ;;  %v5886_v45 = vpack.c.b16 %v2075_v28, %v2075_v28  ;;  %v3790_v42 = vld [vmem:[%s7106_s4 + $0xc] sm:$0xf]  ;;  %v3722_v20 = vld [vmem:[%s7106_s4 + $0x1c] sm:$0xf0] }
 0x43a   : > { %2201 = vmatpush.bf16.msrb.mxu1 %v5510_v12 }
 0x43b   : > { %2111 = vmatpush.bf16.msra.mxu2 %v5508_v18  ;;  %2127 = vmatpush.bf16.msra.mxu3 %v1850_v41  ;;  %v1934_v18 = vsel %vm648_vm4, %v5740_v13, %v5752_v9  ;;  %v2018_v13 = vsel %vm819_vm7, %v5748_v6, %v5762_v3  ;;  %v2074_v6 = vunpack.c.l.b16 %v2034_v11  ;;  %v7228_v41 = vld [vmem:[#allocation21_spill] sm:$0xff] }
 0x43d   : > { %v2013_v36 = vpop.permute.xlu1 %2012  ;;  %2202 = vmatmul.bf16.vlgmr.msrb.gmra.mxu1 %v3713_v50  ;;  %v5832_v0 = vpop.permute.xlu0 %1986  ;;  %v2084_v48 = vpack.c.b16 %v2074_v6, %v2074_v6 }
 0x43e   : > { %2270 = vmatpush.bf16.msra.mxu1 %v5813_v29  ;;  %v2019_v12 = vsel %vm819_vm7, %v2013_v36, %v5813_v29  ;;  %2112 = vmatmul.bf16.vlgmr.msra.gmra.mxu2 %v3713_v50  ;;  %v1991_v47 = vsel %vm762_vm6, %v1985_v62, %v5832_v0  ;;  %v3729_v62 = vor.u32 %v3793_v58, %v3728_v23 }
 0x43f   : > { %2140 = vmatpush.bf16.msrb.mxu2 %v1935_v17  ;;  %2128 = vmatpush.bf16.msra.mxu3 %v1849_v21  ;;  %v3721_v50 = vor.u32 %v3792_v49, %v3720_v32  ;;  %v7229_v17 = vld [vmem:[#allocation10_spill] sm:$0xff] }
 0x440   : > { %2180 = vmatpush.bf16.msrb.mxu0 %v2019_v12  ;;  %v1961_v36 = vsel %vm705_vm5, %v7229_v17, %v7228_v41  ;;  %v2078_v12 = vunpack.c.l.b16 %v2036_v2  ;;  %v7231_v21 = vld [vmem:[#allocation14_spill] sm:$0xff] }
 0x442   : > { %2271 = vmatpush.bf16.msra.mxu1 %v5762_v3  ;;  %v2088_v60 = vpack.c.b16 %v2078_v12, %v2078_v12 }
 0x443   : > { %2141 = vmatpush.bf16.msrb.mxu2 %v1934_v18  ;;  %2129 = vmatpush.bf16.msra.mxu3 %v1848_v24  ;;  %v2035_v24 = vld [vmem:[%s7106_s4 + $0x30] sm:$0xff] }
 0x444   : > { %2181 = vmatpush.bf16.msrb.mxu0 %v2018_v13  ;;  %v2076_v13 = vunpack.c.l.b16 %v2035_v24 }
 0x446   : > { %2272 = vmatpush.bf16.msra.mxu1 %v5738_v8  ;;  %2130 = vmatmul.bf16.vlgmr.msra.gmra.mxu3 %v5840_v22 }
 0x447   : > { %2142 = vmatpush.bf16.msrb.mxu2 %v1933_v38  ;;  %2158 = vmatpush.bf16.msrb.mxu3 %v1991_v47  ;;  %v7233_v47 = vld [vmem:[#allocation17_spill] sm:$0xff] }
 0x448   : > { %2182 = vmatpush.bf16.msrb.mxu0 %v2017_v1 }
 0x44a   : > { %2273 = vmatpush.bf16.msra.mxu1 %v5672_v35 }
 0x44b   : > { %2143 = vmatpush.bf16.msrb.mxu2 %v1932_v27  ;;  %2159 = vmatpush.bf16.msrb.mxu3 %v1990_v54 }
 0x44c   : > { %2183 = vmatpush.bf16.msrb.mxu0 %v2016_v37 }
 0x44d   : > { %2207 = vmatmul.bf16.gmra.mxu1 %v2084_v48 }
 0x44e   : > { %2117 = vmatmul.bf16.gmra.mxu2 %v2084_v48 }
 0x44f   : > { %2144 = vmatpush.bf16.msrb.mxu2 %v1907_v7  ;;  %2160 = vmatpush.bf16.msrb.mxu3 %v1989_v10 }
 0x450   : > { %2248 = vmatpush.bf16.msra.mxu0 %v5832_v0 }
 0x451   : > { %3730 = vmatmul.msk.bf16.vlgmr.msrb.gmra.mxu0 %vm2097_vm8, %v3729_v62 }
 0x453   : > { %2145 = vmatpush.bf16.msrb.mxu2 %v1906_v56  ;;  %2161 = vmatpush.bf16.msrb.mxu3 %v1988_v40 }
 0x454   : > { %2249 = vmatpush.bf16.msra.mxu0 %v5760_v16 }
 0x456   : > { %2135 = vmatmul.bf16.gmra.mxu3 %v5886_v45 }
 0x457   : > { %2146 = vmatpush.bf16.msrb.mxu2 %v1905_v59  ;;  %2162 = vmatpush.bf16.msrb.mxu3 %v1963_v34 }
 0x458   : > { %2250 = vmatpush.bf16.msra.mxu0 %v5724_v14 }
 0x45b   : > { %2147 = vmatpush.bf16.msrb.mxu2 %v1904_v46  ;;  %2163 = vmatpush.bf16.msrb.mxu3 %v1962_v26  ;;  %v7234_v46 = vld [vmem:[#allocation5_spill] sm:$0xff] }
 0x45c   : > { %2251 = vmatpush.bf16.msra.mxu0 %v5692_v39 }
 0x45d   : > { %3732 = vmatmul.msk.bf16.vlgmr.msra.gmra.mxu1 %vm2097_vm8, %v3729_v62 }
 0x45e   : > { %2148 = vmatmul.bf16.vlgmr.msrb.gmra.mxu2 %v3721_v50 }
 0x45f   : > { %2212 = vmatpush.bf16.msra.mxu2 %v5768_v4  ;;  %2164 = vmatpush.bf16.msrb.mxu3 %v1961_v36  ;;  %v7230_v4 = vld [vmem:[#allocation3_spill] sm:$0xff] }
 0x460   : > { %2252 = vmatpush.bf16.msra.mxu0 %v5793_v19  ;;  %v1960_v18 = vsel %vm705_vm5, %v7231_v21, %v7230_v4 }
 0x461   : > { %3731 = vmatmul.msk.bf16.gmra.mxu0 %vm2097_vm8, %v2088_v60 }
 0x463   : > { %2213 = vmatpush.bf16.msra.mxu2 %v5736_v31  ;;  %2165 = vmatpush.bf16.msrb.mxu3 %v1960_v18  ;;  %v3725_v31 = vor.u32 %v3790_v42, %v3722_v20 }
 0x464   : > { %2253 = vmatpush.bf16.msra.mxu0 %v5744_v25 }
 0x466   : > { %2166 = vmatmul.bf16.vlgmr.msrb.gmra.mxu3 %v3725_v31 }
 0x467   : > { %2214 = vmatpush.bf16.msra.mxu2 %v5714_v5  ;;  %2230 = vmatpush.bf16.msra.mxu3 %v5773_v30  ;;  %v2086_v5 = vpack.c.b16 %v2076_v13, %v2076_v13  ;;  %v2077_v30 = vunpack.c.h.b16 %v2035_v24 }
 0x468   : > { %2254 = vmatpush.bf16.msra.mxu0 %v7228_v41 }
 0x46b   : > { %2215 = vmatpush.bf16.msra.mxu2 %v5656_v52  ;;  %2231 = vmatpush.bf16.msra.mxu3 %v5752_v9  ;;  %v2087_v52 = vpack.c.b16 %v2077_v30, %v2077_v30 }
 0x46c   : > { %2255 = vmatpush.bf16.msra.mxu0 %v7230_v4 }
 0x46e   : > { %2153 = vmatmul.bf16.gmra.mxu2 %v2086_v5 }
 0x46f   : > { %2216 = vmatpush.bf16.msra.mxu2 %v5758_v43  ;;  %2232 = vmatpush.bf16.msra.mxu3 %v5726_v61 }
 0x471   : > { %2256 = vmatmul.bf16.vlgmr.msra.gmra.mxu0 %v3725_v31 }
 0x473   : > { %2217 = vmatpush.bf16.msra.mxu2 %v5742_v55  ;;  %2233 = vmatpush.bf16.msra.mxu3 %v5648_v57 }
 0x476   : > { %2171 = vmatmul.bf16.gmra.mxu3 %v2087_v52 }
 0x477   : > { %2218 = vmatpush.bf16.msra.mxu2 %v5712_v51  ;;  %2234 = vmatpush.bf16.msra.mxu3 %v5781_v33 }
 0x47b   : > { %2219 = vmatpush.bf16.msra.mxu2 %v5624_v15  ;;  %2235 = vmatpush.bf16.msra.mxu3 %v5750_v53 }
 0x47e   : > { %2220 = vmatmul.bf16.vlgmr.msra.gmra.mxu2 %v5840_v22 }
 0x47f   : > { %3794 = vmatpush.bf16.msrb.mxu2 %v5832_v0  ;;  %2236 = vmatpush.bf16.msra.mxu3 %v5704_v63 }
 0x483   : > { %3795 = vmatpush.bf16.msrb.mxu2 %v5760_v16  ;;  %2237 = vmatpush.bf16.msra.mxu3 %v5670_v44 }
 0x486   : > { %2238 = vmatmul.bf16.vlgmr.msra.gmra.mxu3 %v3721_v50 }
 0x487   : > { %3796 = vmatpush.bf16.msrb.mxu2 %v5724_v14  ;;  %3802 = vmatpush.bf16.msrb.mxu3 %v5813_v29 }
 0x48b   : > { %3797 = vmatpush.bf16.msrb.mxu2 %v5692_v39  ;;  %3803 = vmatpush.bf16.msrb.mxu3 %v5762_v3  ;;  %v7232_v3 = vld [vmem:[#allocation4_spill] sm:$0xff] }
 0x48e   : > { %2225 = vmatmul.bf16.gmra.mxu2 %v5886_v45 }
 0x48f   : > { %3798 = vmatpush.bf16.msrb.mxu2 %v5793_v19  ;;  %3804 = vmatpush.bf16.msrb.mxu3 %v5738_v8 }
 0x493   : > { %3799 = vmatpush.bf16.msrb.mxu2 %v5744_v25  ;;  %3805 = vmatpush.bf16.msrb.mxu3 %v5672_v35 }
 0x496   : > { %2243 = vmatmul.bf16.gmra.mxu3 %v2086_v5 }
 0x497   : > { %3800 = vmatpush.bf16.msrb.mxu2 %v7228_v41 }
 0x49b   : > { %3801 = vmatpush.bf16.msrb.mxu2 %v7230_v4 }
 0x49e   : > { %2261 = vmatmul.bf16.vlgmr.msrb.gmra.mxu2 %v2087_v52 }
 0x4a6   : > { %3733 = vmatmul.msk.bf16.vlgmr.msrb.gmra.mxu3 %vm2097_vm8, %v2088_v60 }
 0x4ba   : > { %v5964_v15 = vpop.f32.mrf.mxu1 }
 0x4bb   : > { %v2204_v52 = vadd.f32 %v5964_v15, %v7232_v3 }
 0x4c1   : > { %v2113_v57 = vpop.f32.mrf.mxu2 }
 0x4c2   : > { %v5966_v44 = vpop.f32.mrf.mxu1  ;;  %v2114_v33 = vadd.f32 %v2113_v57, %v7232_v3 }
 0x4c9   : > { %v2115_v39 = vpop.f32.mrf.mxu2  ;;  %v2131_v63 = vpop.f32.mrf.mxu3 }
 0x4ca   : > { %v5968_v51 = vpop.f32.mrf.mxu1  ;;  %v2132_v19 = vadd.f32 %v2131_v63, %v2114_v33  ;;  %v2116_v6 = vadd.f32 %v2115_v39, %v7233_v47 }
 0x4ce   : > { %v2185_v35 = vpop.f32.mrf.mxu0 }
 0x4d1   : > { %v2118_v14 = vpop.f32.mrf.mxu2  ;;  %v2133_v61 = vpop.f32.mrf.mxu3 }
 0x4d2   : > { %v2210_v8 = vpop.f32.mrf.mxu1  ;;  %v2134_v27 = vadd.f32 %v2133_v61, %v2116_v6  ;;  %v2119_v32 = vadd.f32 %v2118_v14, %v7234_v46 }
 0x4d6   : > { %v2187_v55 = vpop.f32.mrf.mxu0 }
 0x4d9   : > { %v2120_v25 = vpop.f32.mrf.mxu2  ;;  %v2136_v53 = vpop.f32.mrf.mxu3 }
 0x4da   : > { %v2137_v26 = vadd.f32 %v2136_v53, %v2119_v32 }
 0x4de   : > { %v5970_v9 = vpop.f32.mrf.mxu0 }
 0x4e1   : > { %v2138_v43 = vpop.f32.mrf.mxu3  ;;  %v2149_v16 = vpop.f32.mrf.mxu2 }
 0x4e2   : > { %v2150_v0 = vadd.f32 %v2149_v16, %v2132_v19  ;;  %v2275_v16 = vpop.f32.mrf.mxu1 }
 0x4e6   : > { %v2192_v29 = vpop.f32.mrf.mxu0 }
 0x4e9   : > { %v2151_v22 = vpop.f32.mrf.mxu2  ;;  %v2167_v11 = vpop.f32.mrf.mxu3 }
 0x4ea   : > { %v2168_v38 = vadd.f32 %v2167_v11, %v2150_v0  ;;  %v2152_v62 = vadd.f32 %v2151_v22, %v2134_v27 }
 0x4ec   : > { %v5975_v1 = vadd.f32 %v2185_v35, %v2168_v38 }
 0x4ee   : > { %2330 = vst.msk [vmem:[%s5977_s13] sm:$0x1] %vm2329_vm9, %v5975_v1  ;;  %v5983_v23 = vperm.slane %v5975_v1, 0  ;;  %v2288_v58 = vrot.slane %v5975_v1, 2  ;;  %v2287_v54 = vrot.slane %v5975_v1, 1  ;;  %v2291_v48 = vrot.slane %v5975_v1, 5  ;;  %v2257_v25 = vpop.f32.mrf.mxu0 }
 0x4ef   : > { %v2290_v37 = vrot.slane %v5975_v1, 4  ;;  %v2293_v56 = vrot.slane %v5975_v1, 7  ;;  %v2289_v45 = vrot.slane %v5975_v1, 3  ;;  %v2292_v34 = vrot.slane %v5975_v1, 6 }
 0x4f0   : > { %2378 = vrot.lane.b32.xlu0 %v5983_v23, %s4003_s10  ;;  %v5991_v10 = vperm.slane %v2288_v58, 0  ;;  %2332 = vst.msk [vmem:[%s5977_s13 + $0x10] sm:$0x1] %vm2329_vm9, %v2288_v58  ;;  %v5995_v28 = vperm.slane %v2287_v54, 0  ;;  %v6032_v60 = vperm.slane %v2291_v48, 0 }
 0x4f1   : > { %v2154_v7 = vpop.f32.mrf.mxu2  ;;  %v2169_v40 = vpop.f32.mrf.mxu3  ;;  %2331 = vst.msk [vmem:[%s5977_s13 + $0x8] sm:$0x1] %vm2329_vm9, %v2287_v54  ;;  %v6034_v4 = vperm.slane %v2290_v37, 0  ;;  %v6085_v63 = vperm.slane %v2293_v56, 0 }
 0x4f2   : > { %v2170_v59 = vadd.f32 %v2169_v40, %v2152_v62  ;;  %2382 = vrot.lane.b32.xlu2 %v5991_v10, %s4003_s10  ;;  %2380 = vrot.lane.b32.xlu1 %v5995_v28, %s4003_s10  ;;  %2335 = vst.msk [vmem:[%s5977_s13 + $0x28] sm:$0x1] %vm2329_vm9, %v2291_v48  ;;  %v2155_v36 = vadd.f32 %v2154_v7, %v2137_v26  ;;  %v6172_v62 = vperm.slane %v2289_v45, 0 }
 0x4f3   : > { %2334 = vst.msk [vmem:[%s5977_s13 + $0x20] sm:$0x1] %vm2329_vm9, %v2290_v37 }
 0x4f4   : > { %v6011_v49 = vadd.f32 %v2187_v55, %v2170_v59  ;;  %2337 = vst.msk [vmem:[%s5977_s13 + $0x38] sm:$0x1] %vm2329_vm9, %v2293_v56  ;;  %v2206_v55 = vadd.f32 %v5966_v44, %v7233_v47  ;;  %v2209_v44 = vadd.f32 %v5968_v51, %v7234_v46  ;;  %v2277_v51 = vpop.f32.mrf.mxu1 }
 0x4f5   : > { %2333 = vst.msk [vmem:[%s5977_s13 + $0x18] sm:$0x1] %vm2329_vm9, %v2289_v45 }
 0x4f6   : > { %2338 = vst.msk [vmem:[%s5977_s13 + $0x40] sm:$0x1] %vm2329_vm9, %v6011_v49  ;;  %v2294_v50 = vrot.slane %v6011_v49, 1  ;;  %v2296_v2 = vrot.slane %v6011_v49, 3  ;;  %v2295_v41 = vrot.slane %v6011_v49, 2  ;;  %v2297_v17 = vrot.slane %v6011_v49, 4  ;;  %v2259_v38 = vpop.f32.mrf.mxu0 }
 0x4f7   : > { %2336 = vst.msk [vmem:[%s5977_s13 + $0x30] sm:$0x1] %vm2329_vm9, %v2292_v34  ;;  %v2299_v21 = vrot.slane %v6011_v49, 6  ;;  %v2298_v42 = vrot.slane %v6011_v49, 5  ;;  %v2300_v31 = vrot.slane %v6011_v49, 7 }
 0x4f8   : > { %2474 = vrot.lane.b32.xlu0 %v5983_v23, %s7219_s20  ;;  %2339 = vst.msk [vmem:[%s5977_s13 + $0x48] sm:$0x1] %vm2329_vm9, %v2294_v50 }
 0x4f9   : > { %v2156_v12 = vpop.f32.mrf.mxu2  ;;  %v2172_v18 = vpop.f32.mrf.mxu3  ;;  %2341 = vst.msk [vmem:[%s5977_s13 + $0x58] sm:$0x1] %vm2329_vm9, %v2296_v2 }
 0x4fa   : > { %v2173_v20 = vadd.f32 %v2172_v18, %v2155_v36  ;;  %2388 = vrot.lane.b32.xlu2 %v6032_v60, %s4003_s10  ;;  %2386 = vrot.lane.b32.xlu1 %v6034_v4, %s4003_s10  ;;  %2340 = vst.msk [vmem:[%s5977_s13 + $0x50] sm:$0x1] %vm2329_vm9, %v2295_v41  ;;  %v2360_v18 = vperm.slane %v2292_v34, 0 }
 0x4fb   : > { %2342 = vst.msk [vmem:[%s5977_s13 + $0x60] sm:$0x1] %vm2329_vm9, %v2297_v17 }
 0x4fc   : > { %v6060_v24 = vadd.f32 %v5970_v9, %v2173_v20  ;;  %2344 = vst.msk [vmem:[%s5977_s13 + $0x70] sm:$0x1] %vm2329_vm9, %v2299_v21 }
 0x4fd   : > { %2343 = vst.msk [vmem:[%s5977_s13 + $0x68] sm:$0x1] %vm2329_vm9, %v2298_v42 }
 0x4fe   : > { %2346 = vst.msk [vmem:[%s5977_s13 + $0x80] sm:$0x1] %vm2329_vm9, %v6060_v24  ;;  %v2301_v13 = vrot.slane %v6060_v24, 1  ;;  %v2304_v5 = vrot.slane %v6060_v24, 4  ;;  %v2307_v30 = vrot.slane %v6060_v24, 7  ;;  %v2302_v57 = vrot.slane %v6060_v24, 2 }
 0x4ff   : > { %2345 = vst.msk [vmem:[%s5977_s13 + $0x78] sm:$0x1] %vm2329_vm9, %v2300_v31  ;;  %v2303_v15 = vrot.slane %v6060_v24, 3  ;;  %v2305_v61 = vrot.slane %v6060_v24, 5  ;;  %v2306_v8 = vrot.slane %v6060_v24, 6 }
 0x500   : > { %2570 = vrot.lane.b32.xlu0 %v5983_v23, %s4010_s21  ;;  %2347 = vst.msk [vmem:[%s5977_s13 + $0x88] sm:$0x1] %vm2329_vm9, %v2301_v13 }
 0x501   : > { %v2221_v39 = vpop.f32.mrf.mxu2  ;;  %v2174_v35 = vpop.f32.mrf.mxu3  ;;  %2350 = vst.msk [vmem:[%s5977_s13 + $0xa0] sm:$0x1] %vm2329_vm9, %v2304_v5 }
 0x502   : > { %v2222_v14 = vadd.f32 %v2221_v39, %v2204_v52  ;;  %2478 = vrot.lane.b32.xlu2 %v5991_v10, %s7219_s20  ;;  %2392 = vrot.lane.b32.xlu1 %v6085_v63, %s4003_s10  ;;  %2353 = vst.msk [vmem:[%s5977_s13 + $0xb8] sm:$0x1] %vm2329_vm9, %v2307_v30 }
 0x503   : > { %2348 = vst.msk [vmem:[%s5977_s13 + $0x90] sm:$0x1] %vm2329_vm9, %v2302_v57 }
 0x504   : > { %2349 = vst.msk [vmem:[%s5977_s13 + $0x98] sm:$0x1] %vm2329_vm9, %v2303_v15 }
 0x505   : > { %2351 = vst.msk [vmem:[%s5977_s13 + $0xa8] sm:$0x1] %vm2329_vm9, %v2305_v61 }
 0x506   : > { %2352 = vst.msk [vmem:[%s5977_s13 + $0xb0] sm:$0x1] %vm2329_vm9, %v2306_v8 }
 0x508   : > { %2666 = vrot.lane.b32.xlu0 %v5983_v23, %s4011_s15 }
 0x509   : > { %v2223_v53 = vpop.f32.mrf.mxu2  ;;  %v2239_v43 = vpop.f32.mrf.mxu3 }
 0x50a   : > { %v2224_v9 = vadd.f32 %v2223_v53, %v2206_v55  ;;  %v2240_v3 = vadd.f32 %v2239_v43, %v2222_v14  ;;  %2484 = vrot.lane.b32.xlu2 %v6032_v60, %s7219_s20  ;;  %2476 = vrot.lane.b32.xlu1 %v5995_v28, %s7219_s20 }
 0x50c   : > { %v2258_v33 = vadd.f32 %v2257_v25, %v2240_v3 }
 0x50e   : > { %v6130_v19 = vadd.f32 %v2275_v16, %v2258_v33 }
 0x510   : > { %v6135_v29 = vrot.slane %v6130_v19, 7  ;;  %2762 = vrot.lane.b32.xlu0 %v5983_v23, %s4012_s14 }
 0x511   : > { %v2226_v0 = vpop.f32.mrf.mxu2  ;;  %v2241_v11 = vpop.f32.mrf.mxu3 }
 0x512   : > { %v2227_v22 = vadd.f32 %v2226_v0, %v2209_v44  ;;  %v2242_v47 = vadd.f32 %v2241_v11, %v2224_v9  ;;  %2574 = vrot.lane.b32.xlu2 %v5991_v10, %s4010_s21  ;;  %2482 = vrot.lane.b32.xlu1 %v6034_v4, %s7219_s20  ;;  %v6146_v6 = vsel %vm2866_vm10, %v5975_v1, %v6135_v29 }
 0x513   : > { %v6151_v23 = vsel %vm2864_vm11, %v5975_v1, %v6135_v29  ;;  %v6156_v58 = vsel %vm2869_vm12, %v5975_v1, %v6135_v29  ;;  %v6161_v54 = vsel %vm2875_vm13, %v5975_v1, %v6135_v29  ;;  %v6166_v48 = vsel %vm2872_vm14, %v5975_v1, %v6135_v29 }
 0x514   : > { %v2260_v27 = vadd.f32 %v2259_v38, %v2242_v47  ;;  %v6182_v40 = vsel %vm2878_vm15, %v5975_v1, %v6135_v29  ;;  %v6191_v45 = vsel %vm2884_vm0, %v6135_v29, %v5975_v1  ;;  %v6196_v32 = vsel %vm2881_vm1, %v5975_v1, %v6135_v29 }
 0x516   : > { %v6168_v37 = vadd.f32 %v2277_v51, %v2260_v27 }
 0x518   : > { %v6175_v7 = vrot.slane %v6168_v37, 7  ;;  %2384 = vrot.lane.b32.xlu0 %v6172_v62, %s4003_s10 }
 0x519   : > { %v2228_v56 = vpop.f32.mrf.mxu2  ;;  %v2244_v59 = vpop.f32.mrf.mxu3 }
 0x51a   : > { %v2245_v46 = vadd.f32 %v2244_v59, %v2227_v22  ;;  %2580 = vrot.lane.b32.xlu2 %v6032_v60, %s4010_s21  ;;  %2488 = vrot.lane.b32.xlu1 %v6085_v63, %s7219_s20  ;;  %v6201_v26 = vsel %vm2864_vm11, %v6011_v49, %v6175_v7  ;;  %v6206_v36 = vsel %vm2866_vm10, %v6011_v49, %v6175_v7  ;;  %v6354_v59 = vperm.slane %v2295_v41, 0 }
 0x51b   : > { %v6211_v12 = vsel %vm2869_vm12, %v6011_v49, %v6175_v7  ;;  %v6218_v20 = vsel %vm2872_vm14, %v6011_v49, %v6175_v7  ;;  %v6223_v52 = vsel %vm2875_vm13, %v6011_v49, %v6175_v7  ;;  %v6228_v39 = vsel %vm2878_vm15, %v6011_v49, %v6175_v7 }
 0x51c   : > { %v6233_v1 = vsel %vm2881_vm1, %v6011_v49, %v6175_v7  ;;  %v6243_v55 = vsel %vm2884_vm0, %v6175_v7, %v6011_v49  ;;  %v6374_v41 = vperm.slane %v2299_v21, 0  ;;  %v6392_v21 = vperm.slane %v2300_v31, 0 }
 0x520   : > { %2390 = vrot.lane.b32.xlu0 %v2360_v18, %s4003_s10 }
 0x521   : > { %v2262_v34 = vpop.f32.mrf.mxu2  ;;  %v2246_v35 = vpop.f32.mrf.mxu3 }
 0x522   : > { %v2263_v14 = vadd.f32 %v2262_v34, %v2245_v46  ;;  %2670 = vrot.lane.b32.xlu2 %v5991_v10, %s4011_s15  ;;  %2572 = vrot.lane.b32.xlu1 %v5995_v28, %s4010_s21  ;;  %v6378_v34 = vperm.slane %v2298_v42, 0 }
 0x528   : > { %2480 = vrot.lane.b32.xlu0 %v6172_v62, %s7219_s20 }
 0x529   : > { %v2264_v25 = vpop.f32.mrf.mxu2  ;;  %v2280_v53 = vpop.f32.mrf.mxu3 }
 0x52a   : > { %v6247_v9 = vadd.f32 %v2280_v53, %v2263_v14  ;;  %2676 = vrot.lane.b32.xlu2 %v6032_v60, %s4011_s15  ;;  %2578 = vrot.lane.b32.xlu1 %v6034_v4, %s4010_s21 }
 0x52c   : > { %v6254_v43 = vrot.slane %v6247_v9, 7 }
 0x52e   : > { %v6259_v16 = vsel %vm2864_vm11, %v6060_v24, %v6254_v43  ;;  %v6264_v3 = vsel %vm2866_vm10, %v6060_v24, %v6254_v43  ;;  %v6269_v33 = vsel %vm2869_vm12, %v6060_v24, %v6254_v43  ;;  %v6274_v44 = vsel %vm2872_vm14, %v6060_v24, %v6254_v43 }
 0x52f   : > { %v6280_v0 = vsel %vm2875_vm13, %v6060_v24, %v6254_v43  ;;  %v6285_v22 = vsel %vm2878_vm15, %v6060_v24, %v6254_v43  ;;  %v6290_v11 = vsel %vm2881_vm1, %v6060_v24, %v6254_v43  ;;  %v6299_v47 = vsel %vm2884_vm0, %v6254_v43, %v6060_v24 }
 0x530   : > { %2486 = vrot.lane.b32.xlu0 %v2360_v18, %s7219_s20 }
 0x531   : > { %v2282_v38 = vpop.f32.mrf.mxu3 }
 0x532   : > { %2766 = vrot.lane.b32.xlu2 %v5991_v10, %s4012_s14  ;;  %2584 = vrot.lane.b32.xlu1 %v6085_v63, %s4010_s21  ;;  %v2362_v10 = vperm.slane %v6011_v49, 0 }
 0x538   : > { %2576 = vrot.lane.b32.xlu0 %v6172_v62, %s4010_s21 }
 0x53a   : > { %2772 = vrot.lane.b32.xlu2 %v6032_v60, %s4012_s14  ;;  %2668 = vrot.lane.b32.xlu1 %v5995_v28, %s4011_s15 }
 0x540   : > { %2582 = vrot.lane.b32.xlu0 %v2360_v18, %s4010_s21 }
 0x542   : > { %2394 = vrot.lane.b32.xlu2 %v2362_v10, %s4003_s10  ;;  %2674 = vrot.lane.b32.xlu1 %v6034_v4, %s4011_s15 }
 0x548   : > { %2672 = vrot.lane.b32.xlu0 %v6172_v62, %s4011_s15 }
 0x54a   : > { %2490 = vrot.lane.b32.xlu2 %v2362_v10, %s7219_s20  ;;  %2680 = vrot.lane.b32.xlu1 %v6085_v63, %s4011_s15 }
 0x54c   : > { %v2383_v60 = vpop.permute.xlu2 %2382 }
 0x54d   : > { %2452 = vst.msk [vmem:[%s5977_s13 + $0x11] sm:$0x1] %vm2329_vm9, %v2383_v60 }
 0x550   : > { %2678 = vrot.lane.b32.xlu0 %v2360_v18, %s4011_s15 }
 0x552   : > { %2586 = vrot.lane.b32.xlu2 %v2362_v10, %s4010_s21  ;;  %2764 = vrot.lane.b32.xlu1 %v5995_v28, %s4012_s14 }
 0x554   : > { %v2389_v51 = vpop.permute.xlu2 %2388 }
 0x555   : > { %2455 = vst.msk [vmem:[%s5977_s13 + $0x29] sm:$0x1] %vm2329_vm9, %v2389_v51 }
 0x558   : > { %2768 = vrot.lane.b32.xlu0 %v6172_v62, %s4012_s14 }
 0x55a   : > { %2682 = vrot.lane.b32.xlu2 %v2362_v10, %s4011_s15  ;;  %2770 = vrot.lane.b32.xlu1 %v6034_v4, %s4012_s14  ;;  %v6344_v4 = vperm.slane %v2294_v50, 0 }
 0x55c   : > { %v2479_v27 = vpop.permute.xlu2 %2478 }
 0x55d   : > { %2548 = vst.msk [vmem:[%s5977_s13 + $0x12] sm:$0x1] %vm2329_vm9, %v2479_v27 }
 0x560   : > { %2774 = vrot.lane.b32.xlu0 %v2360_v18, %s4012_s14 }
 0x562   : > { %v2379_v56 = vpop.permute.xlu0 %2378  ;;  %2778 = vrot.lane.b32.xlu2 %v2362_v10, %s4012_s14  ;;  %2776 = vrot.lane.b32.xlu1 %v6085_v63, %s4012_s14  ;;  %v6350_v63 = vperm.slane %v2296_v2, 0  ;;  %v6368_v2 = vperm.slane %v2297_v17, 0 }
 0x563   : > { %2450 = vst.msk [vmem:[%s5977_s13 + $0x1] sm:$0x1] %vm2329_vm9, %v2379_v56 }
 0x564   : > { %v2485_v28 = vpop.permute.xlu2 %2484  ;;  %v2381_v62 = vpop.permute.xlu1 %2380 }
 0x565   : > { %2551 = vst.msk [vmem:[%s5977_s13 + $0x2a] sm:$0x1] %vm2329_vm9, %v2485_v28 }
 0x566   : > { %2451 = vst.msk [vmem:[%s5977_s13 + $0x9] sm:$0x1] %vm2329_vm9, %v2381_v62 }
 0x568   : > { %2396 = vrot.lane.b32.xlu0 %v6344_v4, %s4003_s10 }
 0x56a   : > { %v2475_v46 = vpop.permute.xlu0 %2474  ;;  %2400 = vrot.lane.b32.xlu2 %v6350_v63, %s4003_s10  ;;  %2398 = vrot.lane.b32.xlu1 %v6354_v59, %s4003_s10 }
 0x56b   : > { %2546 = vst.msk [vmem:[%s5977_s13 + $0x2] sm:$0x1] %vm2329_vm9, %v2475_v46 }
 0x56c   : > { %v2575_v50 = vpop.permute.xlu2 %2574  ;;  %v2387_v18 = vpop.permute.xlu1 %2386 }
 0x56d   : > { %2644 = vst.msk [vmem:[%s5977_s13 + $0x13] sm:$0x1] %vm2329_vm9, %v2575_v50 }
 0x56e   : > { %2454 = vst.msk [vmem:[%s5977_s13 + $0x21] sm:$0x1] %vm2329_vm9, %v2387_v18 }
 0x570   : > { %2402 = vrot.lane.b32.xlu0 %v6368_v2, %s4003_s10 }
 0x572   : > { %v2571_v35 = vpop.permute.xlu0 %2570  ;;  %2406 = vrot.lane.b32.xlu2 %v6374_v41, %s4003_s10  ;;  %2404 = vrot.lane.b32.xlu1 %v6378_v34, %s4003_s10 }
 0x573   : > { %2642 = vst.msk [vmem:[%s5977_s13 + $0x3] sm:$0x1] %vm2329_vm9, %v2571_v35 }
 0x574   : > { %v2581_v17 = vpop.permute.xlu2 %2580  ;;  %v2393_v14 = vpop.permute.xlu1 %2392 }
 0x575   : > { %2647 = vst.msk [vmem:[%s5977_s13 + $0x2b] sm:$0x1] %vm2329_vm9, %v2581_v17 }
 0x576   : > { %2457 = vst.msk [vmem:[%s5977_s13 + $0x39] sm:$0x1] %vm2329_vm9, %v2393_v14 }
 0x578   : > { %2408 = vrot.lane.b32.xlu0 %v6392_v21, %s4003_s10 }
 0x57a   : > { %v2667_v42 = vpop.permute.xlu0 %2666  ;;  %2496 = vrot.lane.b32.xlu2 %v6350_v63, %s7219_s20  ;;  %2494 = vrot.lane.b32.xlu1 %v6354_v59, %s7219_s20 }
 0x57b   : > { %2738 = vst.msk [vmem:[%s5977_s13 + $0x4] sm:$0x1] %vm2329_vm9, %v2667_v42 }
 0x57c   : > { %v2671_v25 = vpop.permute.xlu2 %2670  ;;  %v2477_v53 = vpop.permute.xlu1 %2476 }
 0x57d   : > { %2740 = vst.msk [vmem:[%s5977_s13 + $0x14] sm:$0x1] %vm2329_vm9, %v2671_v25 }
 0x57e   : > { %2547 = vst.msk [vmem:[%s5977_s13 + $0xa] sm:$0x1] %vm2329_vm9, %v2477_v53 }
 0x580   : > { %2492 = vrot.lane.b32.xlu0 %v6344_v4, %s7219_s20 }
 0x582   : > { %v2763_v49 = vpop.permute.xlu0 %2762  ;;  %2502 = vrot.lane.b32.xlu2 %v6374_v41, %s7219_s20  ;;  %2500 = vrot.lane.b32.xlu1 %v6378_v34, %s7219_s20 }
 0x583   : > { %2834 = vst.msk [vmem:[%s5977_s13 + $0x5] sm:$0x1] %vm2329_vm9, %v2763_v49  ;;  %v2370_v49 = vperm.slane %v6060_v24, 0 }
 0x584   : > { %v2677_v31 = vpop.permute.xlu2 %2676  ;;  %v2483_v38 = vpop.permute.xlu1 %2482 }
 0x585   : > { %2743 = vst.msk [vmem:[%s5977_s13 + $0x2c] sm:$0x1] %vm2329_vm9, %v2677_v31 }
 0x586   : > { %2550 = vst.msk [vmem:[%s5977_s13 + $0x22] sm:$0x1] %vm2329_vm9, %v2483_v38 }
 0x588   : > { %2498 = vrot.lane.b32.xlu0 %v6368_v2, %s7219_s20 }
 0x58a   : > { %v2385_v10 = vpop.permute.xlu0 %2384  ;;  %2592 = vrot.lane.b32.xlu2 %v6350_v63, %s4010_s21  ;;  %2590 = vrot.lane.b32.xlu1 %v6354_v59, %s4010_s21 }
 0x58b   : > { %2453 = vst.msk [vmem:[%s5977_s13 + $0x19] sm:$0x1] %vm2329_vm9, %v2385_v10 }
 0x58c   : > { %v2767_v60 = vpop.permute.xlu2 %2766  ;;  %v2489_v51 = vpop.permute.xlu1 %2488 }
 0x58d   : > { %2836 = vst.msk [vmem:[%s5977_s13 + $0x15] sm:$0x1] %vm2329_vm9, %v2767_v60 }
 0x58e   : > { %2553 = vst.msk [vmem:[%s5977_s13 + $0x3a] sm:$0x1] %vm2329_vm9, %v2489_v51 }
 0x590   : > { %2504 = vrot.lane.b32.xlu0 %v6392_v21, %s7219_s20 }
 0x592   : > { %v2391_v27 = vpop.permute.xlu0 %2390  ;;  %2598 = vrot.lane.b32.xlu2 %v6374_v41, %s4010_s21  ;;  %2596 = vrot.lane.b32.xlu1 %v6378_v34, %s4010_s21 }
 0x593   : > { %2456 = vst.msk [vmem:[%s5977_s13 + $0x31] sm:$0x1] %vm2329_vm9, %v2391_v27 }
 0x594   : > { %v2773_v56 = vpop.permute.xlu2 %2772  ;;  %v2573_v28 = vpop.permute.xlu1 %2572 }
 0x595   : > { %2839 = vst.msk [vmem:[%s5977_s13 + $0x2d] sm:$0x1] %vm2329_vm9, %v2773_v56 }
 0x596   : > { %2643 = vst.msk [vmem:[%s5977_s13 + $0xb] sm:$0x1] %vm2329_vm9, %v2573_v28 }
 0x598   : > { %2588 = vrot.lane.b32.xlu0 %v6344_v4, %s4010_s21 }
 0x59a   : > { %v2481_v62 = vpop.permute.xlu0 %2480  ;;  %2688 = vrot.lane.b32.xlu2 %v6350_v63, %s4011_s15  ;;  %2686 = vrot.lane.b32.xlu1 %v6354_v59, %s4011_s15 }
 0x59b   : > { %2549 = vst.msk [vmem:[%s5977_s13 + $0x1a] sm:$0x1] %vm2329_vm9, %v2481_v62 }
 0x59c   : > { %v2395_v46 = vpop.permute.xlu2 %2394  ;;  %v2579_v50 = vpop.permute.xlu1 %2578 }
 0x59d   : > { %2458 = vst.msk [vmem:[%s5977_s13 + $0x41] sm:$0x1] %vm2329_vm9, %v2395_v46 }
 0x59e   : > { %2646 = vst.msk [vmem:[%s5977_s13 + $0x23] sm:$0x1] %vm2329_vm9, %v2579_v50 }
 0x5a0   : > { %2594 = vrot.lane.b32.xlu0 %v6368_v2, %s4010_s21 }
 0x5a2   : > { %v2487_v18 = vpop.permute.xlu0 %2486  ;;  %2694 = vrot.lane.b32.xlu2 %v6374_v41, %s4011_s15  ;;  %2692 = vrot.lane.b32.xlu1 %v6378_v34, %s4011_s15 }
 0x5a3   : > { %2552 = vst.msk [vmem:[%s5977_s13 + $0x32] sm:$0x1] %vm2329_vm9, %v2487_v18  ;;  %v6560_v18 = vperm.slane %v2302_v57, 0 }
 0x5a4   : > { %v2491_v35 = vpop.permute.xlu2 %2490  ;;  %v2585_v17 = vpop.permute.xlu1 %2584 }
 0x5a5   : > { %2554 = vst.msk [vmem:[%s5977_s13 + $0x42] sm:$0x1] %vm2329_vm9, %v2491_v35 }
 0x5a6   : > { %2649 = vst.msk [vmem:[%s5977_s13 + $0x3b] sm:$0x1] %vm2329_vm9, %v2585_v17 }
 0x5a8   : > { %2600 = vrot.lane.b32.xlu0 %v6392_v21, %s4010_s21 }
 0x5aa   : > { %v2577_v14 = vpop.permute.xlu0 %2576  ;;  %2784 = vrot.lane.b32.xlu2 %v6350_v63, %s4012_s14  ;;  %2782 = vrot.lane.b32.xlu1 %v6354_v59, %s4012_s14 }
 0x5ab   : > { %2645 = vst.msk [vmem:[%s5977_s13 + $0x1b] sm:$0x1] %vm2329_vm9, %v2577_v14  ;;  %v6586_v14 = vperm.slane %v2306_v8, 0 }
 0x5ac   : > { %v2587_v42 = vpop.permute.xlu2 %2586  ;;  %v2669_v25 = vpop.permute.xlu1 %2668 }
 0x5ad   : > { %2650 = vst.msk [vmem:[%s5977_s13 + $0x43] sm:$0x1] %vm2329_vm9, %v2587_v42 }
 0x5ae   : > { %2739 = vst.msk [vmem:[%s5977_s13 + $0xc] sm:$0x1] %vm2329_vm9, %v2669_v25 }
 0x5b0   : > { %2684 = vrot.lane.b32.xlu0 %v6344_v4, %s4011_s15 }
 0x5b2   : > { %v2583_v53 = vpop.permute.xlu0 %2582  ;;  %2790 = vrot.lane.b32.xlu2 %v6374_v41, %s4012_s14  ;;  %2788 = vrot.lane.b32.xlu1 %v6378_v34, %s4012_s14  ;;  %v6494_v41 = vperm.slane %v2301_v13, 0  ;;  %v6510_v13 = vperm.slane %v2304_v5, 0  ;;  %v6525_v5 = vperm.slane %v2307_v30, 0 }
 0x5b3   : > { %2648 = vst.msk [vmem:[%s5977_s13 + $0x33] sm:$0x1] %vm2329_vm9, %v2583_v53 }
 0x5b4   : > { %v2683_v63 = vpop.permute.xlu2 %2682  ;;  %v2675_v59 = vpop.permute.xlu1 %2674 }
 0x5b5   : > { %2746 = vst.msk [vmem:[%s5977_s13 + $0x44] sm:$0x1] %vm2329_vm9, %v2683_v63 }
 0x5b6   : > { %2742 = vst.msk [vmem:[%s5977_s13 + $0x24] sm:$0x1] %vm2329_vm9, %v2675_v59 }
 0x5b8   : > { %2690 = vrot.lane.b32.xlu0 %v6368_v2, %s4011_s15 }
 0x5ba   : > { %v2673_v34 = vpop.permute.xlu0 %2672  ;;  %2412 = vrot.lane.b32.xlu2 %v6494_v41, %s4003_s10  ;;  %2410 = vrot.lane.b32.xlu1 %v2370_v49, %s4003_s10 }
 0x5bb   : > { %2741 = vst.msk [vmem:[%s5977_s13 + $0x1c] sm:$0x1] %vm2329_vm9, %v2673_v34 }
 0x5bc   : > { %v2779_v31 = vpop.permute.xlu2 %2778  ;;  %v2681_v38 = vpop.permute.xlu1 %2680 }
 0x5bd   : > { %2842 = vst.msk [vmem:[%s5977_s13 + $0x45] sm:$0x1] %vm2329_vm9, %v2779_v31 }
 0x5be   : > { %2745 = vst.msk [vmem:[%s5977_s13 + $0x3c] sm:$0x1] %vm2329_vm9, %v2681_v38 }
 0x5c0   : > { %2696 = vrot.lane.b32.xlu0 %v6392_v21, %s4011_s15 }
 0x5c2   : > { %v2679_v10 = vpop.permute.xlu0 %2678  ;;  %2418 = vrot.lane.b32.xlu2 %v6510_v13, %s4003_s10  ;;  %2506 = vrot.lane.b32.xlu1 %v2370_v49, %s7219_s20 }
 0x5c3   : > { %2744 = vst.msk [vmem:[%s5977_s13 + $0x34] sm:$0x1] %vm2329_vm9, %v2679_v10 }
 0x5c4   : > { %v2401_v60 = vpop.permute.xlu2 %2400  ;;  %v2765_v51 = vpop.permute.xlu1 %2764 }
 0x5c5   : > { %2461 = vst.msk [vmem:[%s5977_s13 + $0x59] sm:$0x1] %vm2329_vm9, %v2401_v60 }
 0x5c6   : > { %2835 = vst.msk [vmem:[%s5977_s13 + $0xd] sm:$0x1] %vm2329_vm9, %v2765_v51 }
 0x5c8   : > { %2780 = vrot.lane.b32.xlu0 %v6344_v4, %s4012_s14 }
 0x5ca   : > { %v2769_v27 = vpop.permute.xlu0 %2768  ;;  %2424 = vrot.lane.b32.xlu2 %v6525_v5, %s4003_s10  ;;  %2602 = vrot.lane.b32.xlu1 %v2370_v49, %s4010_s21 }
 0x5cb   : > { %2837 = vst.msk [vmem:[%s5977_s13 + $0x1d] sm:$0x1] %vm2329_vm9, %v2769_v27 }
 0x5cc   : > { %v2407_v56 = vpop.permute.xlu2 %2406  ;;  %v2771_v28 = vpop.permute.xlu1 %2770 }
 0x5cd   : > { %2464 = vst.msk [vmem:[%s5977_s13 + $0x71] sm:$0x1] %vm2329_vm9, %v2407_v56 }
 0x5ce   : > { %2838 = vst.msk [vmem:[%s5977_s13 + $0x25] sm:$0x1] %vm2329_vm9, %v2771_v28 }
 0x5d0   : > { %2786 = vrot.lane.b32.xlu0 %v6368_v2, %s4012_s14 }
 0x5d2   : > { %v2775_v30 = vpop.permute.xlu0 %2774  ;;  %2508 = vrot.lane.b32.xlu2 %v6494_v41, %s7219_s20  ;;  %2698 = vrot.lane.b32.xlu1 %v2370_v49, %s4011_s15 }
 0x5d3   : > { %2840 = vst.msk [vmem:[%s5977_s13 + $0x35] sm:$0x1] %vm2329_vm9, %v2775_v30 }
 0x5d4   : > { %v2497_v4 = vpop.permute.xlu2 %2496  ;;  %v2777_v62 = vpop.permute.xlu1 %2776 }
 0x5d5   : > { %2557 = vst.msk [vmem:[%s5977_s13 + $0x5a] sm:$0x1] %vm2329_vm9, %v2497_v4 }
 0x5d6   : > { %2841 = vst.msk [vmem:[%s5977_s13 + $0x3d] sm:$0x1] %vm2329_vm9, %v2777_v62 }
 0x5d8   : > { %2792 = vrot.lane.b32.xlu0 %v6392_v21, %s4012_s14  ;;  %v6566_v21 = vperm.slane %v2303_v15, 0  ;;  %v6580_v15 = vperm.slane %v2305_v61, 0 }
 0x5da   : > { %v2397_v2 = vpop.permute.xlu0 %2396  ;;  %2514 = vrot.lane.b32.xlu2 %v6510_v13, %s7219_s20  ;;  %2794 = vrot.lane.b32.xlu1 %v2370_v49, %s4012_s14 }
 0x5db   : > { %2459 = vst.msk [vmem:[%s5977_s13 + $0x49] sm:$0x1] %vm2329_vm9, %v2397_v2 }
 0x5dc   : > { %v2503_v46 = vpop.permute.xlu2 %2502  ;;  %v2399_v50 = vpop.permute.xlu1 %2398 }
 0x5dd   : > { %2560 = vst.msk [vmem:[%s5977_s13 + $0x72] sm:$0x1] %vm2329_vm9, %v2503_v46 }
 0x5de   : > { %2460 = vst.msk [vmem:[%s5977_s13 + $0x51] sm:$0x1] %vm2329_vm9, %v2399_v50 }
 0x5e0   : > { %2414 = vrot.lane.b32.xlu0 %v6560_v18, %s4003_s10 }
 0x5e2   : > { %v2403_v35 = vpop.permute.xlu0 %2402  ;;  %2520 = vrot.lane.b32.xlu2 %v6525_v5, %s7219_s20  ;;  %2416 = vrot.lane.b32.xlu1 %v6566_v21, %s4003_s10 }
 0x5e3   : > { %2462 = vst.msk [vmem:[%s5977_s13 + $0x61] sm:$0x1] %vm2329_vm9, %v2403_v35  ;;  %v3134_v35 = vrot.slane %v6130_v19, 1 }
 0x5e4   : > { %v2593_v57 = vpop.permute.xlu2 %2592  ;;  %v2405_v17 = vpop.permute.xlu1 %2404 }
 0x5e5   : > { %2653 = vst.msk [vmem:[%s5977_s13 + $0x5b] sm:$0x1] %vm2329_vm9, %v2593_v57 }
 0x5e6   : > { %2463 = vst.msk [vmem:[%s5977_s13 + $0x69] sm:$0x1] %vm2329_vm9, %v2405_v17  ;;  %v3153_v17 = vperm.slane %v3134_v35, 0 }
 0x5e8   : > { %2420 = vrot.lane.b32.xlu0 %v6580_v15, %s4003_s10 }
 0x5ea   : > { %v2409_v42 = vpop.permute.xlu0 %2408  ;;  %2604 = vrot.lane.b32.xlu2 %v6494_v41, %s4010_s21  ;;  %2422 = vrot.lane.b32.xlu1 %v6586_v14, %s4003_s10  ;;  %s4013_s10 = smov 116  }
 0x5eb   : > { %2465 = vst.msk [vmem:[%s5977_s13 + $0x79] sm:$0x1] %vm2329_vm9, %v2409_v42 }
 0x5ec   : > { %v2599_v61 = vpop.permute.xlu2 %2598  ;;  %v2495_v25 = vpop.permute.xlu1 %2494 }
 0x5ed   : > { %2656 = vst.msk [vmem:[%s5977_s13 + $0x73] sm:$0x1] %vm2329_vm9, %v2599_v61 }
 0x5ee   : > { %2556 = vst.msk [vmem:[%s5977_s13 + $0x52] sm:$0x1] %vm2329_vm9, %v2495_v25  ;;  %v3138_v25 = vrot.slane %v6130_v19, 5 }
 0x5f0   : > { %2510 = vrot.lane.b32.xlu0 %v6560_v18, %s7219_s20 }
 0x5f2   : > { %v2493_v24 = vpop.permute.xlu0 %2492  ;;  %2610 = vrot.lane.b32.xlu2 %v6510_v13, %s4010_s21  ;;  %2512 = vrot.lane.b32.xlu1 %v6566_v21, %s7219_s20 }
 0x5f3   : > { %2555 = vst.msk [vmem:[%s5977_s13 + $0x4a] sm:$0x1] %vm2329_vm9, %v2493_v24  ;;  %v3137_v24 = vrot.slane %v6130_v19, 4 }
 0x5f4   : > { %v2689_v8 = vpop.permute.xlu2 %2688  ;;  %v2501_v53 = vpop.permute.xlu1 %2500 }
 0x5f5   : > { %2749 = vst.msk [vmem:[%s5977_s13 + $0x5c] sm:$0x1] %vm2329_vm9, %v2689_v8 }
 0x5f6   : > { %2559 = vst.msk [vmem:[%s5977_s13 + $0x6a] sm:$0x1] %vm2329_vm9, %v2501_v53  ;;  %v3157_v53 = vperm.slane %v3138_v25, 0 }
 0x5f8   : > { %2516 = vrot.lane.b32.xlu0 %v6580_v15, %s7219_s20 }
 0x5fa   : > { %v2499_v63 = vpop.permute.xlu0 %2498  ;;  %2616 = vrot.lane.b32.xlu2 %v6525_v5, %s4010_s21  ;;  %2518 = vrot.lane.b32.xlu1 %v6586_v14, %s7219_s20  ;;  %s4014_s20 = smov 8  }
 0x5fb   : > { %2558 = vst.msk [vmem:[%s5977_s13 + $0x62] sm:$0x1] %vm2329_vm9, %v2499_v63  ;;  %v3156_v63 = vperm.slane %v3137_v24, 0  ;;  %v2883_v24 = vrot.slane %v6196_v32, 6 }
 0x5fc   : > { %v2695_v59 = vpop.permute.xlu2 %2694  ;;  %v2591_v49 = vpop.permute.xlu1 %2590 }
 0x5fd   : > { %2752 = vst.msk [vmem:[%s5977_s13 + $0x74] sm:$0x1] %vm2329_vm9, %v2695_v59 }
 0x5fe   : > { %2652 = vst.msk [vmem:[%s5977_s13 + $0x53] sm:$0x1] %vm2329_vm9, %v2591_v49  ;;  %v3139_v49 = vrot.slane %v6130_v19, 6 }
 0x600   : > { %2606 = vrot.lane.b32.xlu0 %v6560_v18, %s4010_s21 }
 0x602   : > { %v2505_v34 = vpop.permute.xlu0 %2504  ;;  %2700 = vrot.lane.b32.xlu2 %v6494_v41, %s4011_s15  ;;  %2608 = vrot.lane.b32.xlu1 %v6566_v21, %s4010_s21 }
 0x603   : > { %2561 = vst.msk [vmem:[%s5977_s13 + $0x7a] sm:$0x1] %vm2329_vm9, %v2505_v34 }
 0x604   : > { %v2785_v31 = vpop.permute.xlu2 %2784  ;;  %v2597_v38 = vpop.permute.xlu1 %2596 }
 0x605   : > { %2845 = vst.msk [vmem:[%s5977_s13 + $0x5d] sm:$0x1] %vm2329_vm9, %v2785_v31 }
 0x606   : > { %2655 = vst.msk [vmem:[%s5977_s13 + $0x6b] sm:$0x1] %vm2329_vm9, %v2597_v38  ;;  %v2868_v38 = vrot.slane %v6146_v6, 1 }
 0x608   : > { %2612 = vrot.lane.b32.xlu0 %v6580_v15, %s4010_s21 }
 0x60a   : > { %v2589_v10 = vpop.permute.xlu0 %2588  ;;  %2706 = vrot.lane.b32.xlu2 %v6510_v13, %s4011_s15  ;;  %2614 = vrot.lane.b32.xlu1 %v6586_v14, %s4010_s21 }
 0x60b   : > { %2651 = vst.msk [vmem:[%s5977_s13 + $0x4b] sm:$0x1] %vm2329_vm9, %v2589_v10  ;;  %v3158_v10 = vperm.slane %v3139_v49, 0 }
 0x60c   : > { %v2791_v60 = vpop.permute.xlu2 %2790  ;;  %v2687_v51 = vpop.permute.xlu1 %2686 }
 0x60d   : > { %2848 = vst.msk [vmem:[%s5977_s13 + $0x75] sm:$0x1] %vm2329_vm9, %v2791_v60  ;;  %v2919_v60 = vperm.slane %v2868_v38, 0 }
 0x60e   : > { %2748 = vst.msk [vmem:[%s5977_s13 + $0x54] sm:$0x1] %vm2329_vm9, %v2687_v51  ;;  %v3159_v51 = vperm.slane %v6135_v29, 0  ;;  %v2917_v29 = vperm.slane %v6151_v23, 0 }
 0x610   : > { %2702 = vrot.lane.b32.xlu0 %v6560_v18, %s4011_s15 }
 0x612   : > { %v2595_v27 = vpop.permute.xlu0 %2594  ;;  %2712 = vrot.lane.b32.xlu2 %v6525_v5, %s4011_s15  ;;  %2704 = vrot.lane.b32.xlu1 %v6566_v21, %s4011_s15 }
 0x613   : > { %2654 = vst.msk [vmem:[%s5977_s13 + $0x63] sm:$0x1] %vm2329_vm9, %v2595_v27 }
 0x614   : > { %v2413_v56 = vpop.permute.xlu2 %2412  ;;  %v2693_v28 = vpop.permute.xlu1 %2692 }
 0x615   : > { %2467 = vst.msk [vmem:[%s5977_s13 + $0x89] sm:$0x1] %vm2329_vm9, %v2413_v56  ;;  %v2871_v56 = vrot.slane %v6156_v58, 2 }
 0x616   : > { %2751 = vst.msk [vmem:[%s5977_s13 + $0x6c] sm:$0x1] %vm2329_vm9, %v2693_v28 }
 0x617   : > { %v2922_v28 = vperm.slane %v2871_v56, 1 }
 0x618   : > { %2708 = vrot.lane.b32.xlu0 %v6580_v15, %s4011_s15 }
 0x61a   : > { %v2601_v30 = vpop.permute.xlu0 %2600  ;;  %2796 = vrot.lane.b32.xlu2 %v6494_v41, %s4012_s14  ;;  %2710 = vrot.lane.b32.xlu1 %v6586_v14, %s4011_s15 }
 0x61b   : > { %2657 = vst.msk [vmem:[%s5977_s13 + $0x7b] sm:$0x1] %vm2329_vm9, %v2601_v30  ;;  %v2918_v30 = vperm.slane %v6151_v23, 1 }
 0x61c   : > { %v2419_v4 = vpop.permute.xlu2 %2418  ;;  %v2783_v62 = vpop.permute.xlu1 %2782 }
 0x61d   : > { %2470 = vst.msk [vmem:[%s5977_s13 + $0xa1] sm:$0x1] %vm2329_vm9, %v2419_v4 }
 0x61e   : > { %2844 = vst.msk [vmem:[%s5977_s13 + $0x55] sm:$0x1] %vm2329_vm9, %v2783_v62 }
 0x620   : > { %2798 = vrot.lane.b32.xlu0 %v6560_v18, %s4012_s14 }
 0x622   : > { %v2685_v2 = vpop.permute.xlu0 %2684  ;;  %2802 = vrot.lane.b32.xlu2 %v6510_v13, %s4012_s14  ;;  %2800 = vrot.lane.b32.xlu1 %v6566_v21, %s4012_s14  ;;  %v3135_v21 = vrot.slane %v6130_v19, 2 }
 0x623   : > { %2747 = vst.msk [vmem:[%s5977_s13 + $0x4c] sm:$0x1] %vm2329_vm9, %v2685_v2  ;;  %v2877_v2 = vrot.slane %v6161_v54, 4 }
 0x624   : > { %v2425_v41 = vpop.permute.xlu2 %2424  ;;  %v2789_v46 = vpop.permute.xlu1 %2788  ;;  %v3154_v57 = vperm.slane %v3135_v21, 0  ;;  %v2880_v21 = vrot.slane %v6182_v40, 5 }
 0x625   : > { %2473 = vst.msk [vmem:[%s5977_s13 + $0xb9] sm:$0x1] %vm2329_vm9, %v2425_v41  ;;  %v2920_v41 = vperm.slane %v2868_v38, 1  ;;  %v2925_v23 = vperm.slane %v2877_v2, 0  ;;  %v2934_v38 = vperm.slane %v6201_v26, 1 }
 0x626   : > { %2847 = vst.msk [vmem:[%s5977_s13 + $0x6d] sm:$0x1] %vm2329_vm9, %v2789_v46  ;;  %v2921_v46 = vperm.slane %v2871_v56, 0 }
 0x628   : > { %2804 = vrot.lane.b32.xlu0 %v6580_v15, %s4012_s14 }
 0x62a   : > { %v2691_v50 = vpop.permute.xlu0 %2690  ;;  %2808 = vrot.lane.b32.xlu2 %v6525_v5, %s4012_s14  ;;  %2806 = vrot.lane.b32.xlu1 %v6586_v14, %s4012_s14  ;;  %v3152_v5 = vperm.slane %v6130_v19, 0  ;;  %v3136_v14 = vrot.slane %v6130_v19, 3 }
 0x62b   : > { %2750 = vst.msk [vmem:[%s5977_s13 + $0x64] sm:$0x1] %vm2329_vm9, %v2691_v50 }
 0x62c   : > { %v2509_v13 = vpop.permute.xlu2 %2508  ;;  %v2411_v18 = vpop.permute.xlu1 %2410  ;;  %v3155_v8 = vperm.slane %v3136_v14, 0  ;;  %v2926_v14 = vperm.slane %v2877_v2, 1 }
 0x62d   : > { %2563 = vst.msk [vmem:[%s5977_s13 + $0x8a] sm:$0x1] %vm2329_vm9, %v2509_v13  ;;  %v2874_v13 = vrot.slane %v6166_v48, 3 }
 0x62e   : > { %2466 = vst.msk [vmem:[%s5977_s13 + $0x81] sm:$0x1] %vm2329_vm9, %v2411_v18 }
 0x62f   : > { %v2923_v35 = vperm.slane %v2874_v13, 0 }
 0x630   : > { %3176 = vrot.lane.b32.xlu0 %v3152_v5, %s4013_s10  ;;  %v2928_v5 = vperm.slane %v2880_v21, 1 }
 0x632   : > { %v2697_v15 = vpop.permute.xlu0 %2696  ;;  %3180 = vrot.lane.b32.xlu2 %v3154_v57, %s4013_s10  ;;  %3178 = vrot.lane.b32.xlu1 %v3153_v17, %s4013_s10  ;;  %v2924_v57 = vperm.slane %v2874_v13, 1 }
 0x633   : > { %2753 = vst.msk [vmem:[%s5977_s13 + $0x7c] sm:$0x1] %vm2329_vm9, %v2697_v15  ;;  %v2886_v15 = vrot.slane %v6191_v45, 7 }
 0x634   : > { %v2515_v42 = vpop.permute.xlu2 %2514  ;;  %v2507_v61 = vpop.permute.xlu1 %2506 }
 0x635   : > { %2566 = vst.msk [vmem:[%s5977_s13 + $0xa2] sm:$0x1] %vm2329_vm9, %v2515_v42  ;;  %v2931_v42 = vperm.slane %v2886_v15, 0 }
 0x636   : > { %2562 = vst.msk [vmem:[%s5977_s13 + $0x82] sm:$0x1] %vm2329_vm9, %v2507_v61  ;;  %v2927_v61 = vperm.slane %v2880_v21, 0  ;;  %v2899_v21 = vrot.slane %v6233_v1, 6 }
 0x638   : > { %3182 = vrot.lane.b32.xlu0 %v3155_v8, %s4013_s10 }
 0x63a   : > { %v2781_v59 = vpop.permute.xlu0 %2780  ;;  %3186 = vrot.lane.b32.xlu2 %v3157_v53, %s4013_s10  ;;  %3184 = vrot.lane.b32.xlu1 %v3156_v63, %s4013_s10  ;;  %v2929_v53 = vperm.slane %v2883_v24, 0  ;;  %v3160_v63 = vperm.slane %v6168_v37, 0 }
 0x63b   : > { %2843 = vst.msk [vmem:[%s5977_s13 + $0x4d] sm:$0x1] %vm2329_vm9, %v2781_v59  ;;  %v2930_v59 = vperm.slane %v2883_v24, 1  ;;  %v2904_v24 = vrot.slane %v6264_v3, 1 }
 0x63c   : > { %v2521_v34 = vpop.permute.xlu2 %2520  ;;  %v2603_v31 = vpop.permute.xlu1 %2602 }
 0x63d   : > { %2569 = vst.msk [vmem:[%s5977_s13 + $0xba] sm:$0x1] %vm2329_vm9, %v2521_v34 }
 0x63e   : > { %2658 = vst.msk [vmem:[%s5977_s13 + $0x83] sm:$0x1] %vm2329_vm9, %v2603_v31  ;;  %v2932_v31 = vperm.slane %v2886_v15, 1 }
 0x640   : > { %3188 = vrot.lane.b32.xlu0 %v3158_v10, %s4013_s10  ;;  %v2933_v10 = vperm.slane %v6201_v26, 0 }
 0x642   : > { %v2787_v27 = vpop.permute.xlu0 %2786  ;;  %2969 = vrot.lane.b32.xlu2 %v2919_v60, %s4014_s20  ;;  %3190 = vrot.lane.b32.xlu1 %v3159_v51, %s4013_s10  ;;  %v2889_v51 = vrot.slane %v6206_v36, 1 }
 0x643   : > { %2846 = vst.msk [vmem:[%s5977_s13 + $0x65] sm:$0x1] %vm2329_vm9, %v2787_v27 }
 0x644   : > { %v2605_v19 = vpop.permute.xlu2 %2604  ;;  %v2699_v6 = vpop.permute.xlu1 %2698  ;;  %v2935_v26 = vperm.slane %v2889_v51, 0 }
 0x645   : > { %2659 = vst.msk [vmem:[%s5977_s13 + $0x8b] sm:$0x1] %vm2329_vm9, %v2605_v19 }
 0x646   : > { %2754 = vst.msk [vmem:[%s5977_s13 + $0x84] sm:$0x1] %vm2329_vm9, %v2699_v6  ;;  %v2891_v6 = vrot.slane %v6211_v12, 2  ;;  %v2893_v12 = vrot.slane %v6218_v20, 3 }
 0x648   : > { %2965 = vrot.lane.b32.xlu0 %v2917_v29, %s4014_s20  ;;  %v2937_v56 = vperm.slane %v2891_v6, 0  ;;  %v2936_v29 = vperm.slane %v2889_v51, 1 }
 0x64a   : > { %v2793_v4 = vpop.permute.xlu0 %2792  ;;  %2975 = vrot.lane.b32.xlu2 %v2922_v28, %s4014_s20  ;;  %2967 = vrot.lane.b32.xlu1 %v2918_v30, %s4014_s20 }
 0x64b   : > { %2849 = vst.msk [vmem:[%s5977_s13 + $0x7d] sm:$0x1] %vm2329_vm9, %v2793_v4  ;;  %v2938_v4 = vperm.slane %v2891_v6, 1  ;;  %v2912_v6 = vrot.slane %v6285_v22, 5 }
 0x64c   : > { %v2611_v58 = vpop.permute.xlu2 %2610  ;;  %v2795_v62 = vpop.permute.xlu1 %2794 }
 0x64d   : > { %2662 = vst.msk [vmem:[%s5977_s13 + $0xa3] sm:$0x1] %vm2329_vm9, %v2611_v58  ;;  %v2940_v58 = vperm.slane %v2893_v12, 1 }
 0x64e   : > { %2850 = vst.msk [vmem:[%s5977_s13 + $0x85] sm:$0x1] %vm2329_vm9, %v2795_v62  ;;  %v2939_v62 = vperm.slane %v2893_v12, 0 }
 0x650   : > { %2971 = vrot.lane.b32.xlu0 %v2920_v41, %s4014_s20  ;;  %v2895_v41 = vrot.slane %v6223_v52, 4 }
 0x652   : > { %v2415_v50 = vpop.permute.xlu0 %2414  ;;  %2981 = vrot.lane.b32.xlu2 %v2925_v23, %s4014_s20  ;;  %2973 = vrot.lane.b32.xlu1 %v2921_v46, %s4014_s20  ;;  %v2897_v46 = vrot.slane %v6228_v39, 5 }
 0x653   : > { %2468 = vst.msk [vmem:[%s5977_s13 + $0x91] sm:$0x1] %vm2329_vm9, %v2415_v50  ;;  %v2941_v50 = vperm.slane %v2895_v41, 0 }
 0x654   : > { %v2617_v54 = vpop.permute.xlu2 %2616  ;;  %v2417_v18 = vpop.permute.xlu1 %2416  ;;  %v2943_v13 = vperm.slane %v2897_v46, 0 }
 0x655   : > { %2665 = vst.msk [vmem:[%s5977_s13 + $0xbb] sm:$0x1] %vm2329_vm9, %v2617_v54  ;;  %v2942_v54 = vperm.slane %v2895_v41, 1 }
 0x656   : > { %2469 = vst.msk [vmem:[%s5977_s13 + $0x99] sm:$0x1] %vm2329_vm9, %v2417_v18 }
 0x658   : > { %2977 = vrot.lane.b32.xlu0 %v2923_v35, %s4014_s20  ;;  %v2944_v35 = vperm.slane %v2897_v46, 1 }
 0x65a   : > { %v2421_v17 = vpop.permute.xlu0 %2420  ;;  %2987 = vrot.lane.b32.xlu2 %v2928_v5, %s4014_s20  ;;  %2979 = vrot.lane.b32.xlu1 %v2924_v57, %s4014_s20  ;;  %v2946_v5 = vperm.slane %v2899_v21, 1  ;;  %v2945_v57 = vperm.slane %v2899_v21, 0 }
 0x65b   : > { %2471 = vst.msk [vmem:[%s5977_s13 + $0xa9] sm:$0x1] %vm2329_vm9, %v2421_v17 }
 0x65c   : > { %v2701_v48 = vpop.permute.xlu2 %2700  ;;  %v2423_v40 = vpop.permute.xlu1 %2422 }
 0x65d   : > { %2755 = vst.msk [vmem:[%s5977_s13 + $0x8c] sm:$0x1] %vm2329_vm9, %v2701_v48  ;;  %v2901_v48 = vrot.slane %v6243_v55, 7 }
 0x65e   : > { %2472 = vst.msk [vmem:[%s5977_s13 + $0xb1] sm:$0x1] %vm2329_vm9, %v2423_v40 }
 0x65f   : > { %v2947_v15 = vperm.slane %v2901_v48, 0 }
 0x660   : > { %2983 = vrot.lane.b32.xlu0 %v2926_v14, %s4014_s20  ;;  %v2949_v14 = vperm.slane %v6259_v16, 0 }
 0x662   : > { %v2511_v25 = vpop.permute.xlu0 %2510  ;;  %2993 = vrot.lane.b32.xlu2 %v2931_v42, %s4014_s20  ;;  %2985 = vrot.lane.b32.xlu1 %v2927_v61, %s4014_s20  ;;  %v2948_v42 = vperm.slane %v2901_v48, 1  ;;  %v3144_v48 = vrot.slane %v6168_v37, 5 }
 0x663   : > { %2564 = vst.msk [vmem:[%s5977_s13 + $0x92] sm:$0x1] %vm2329_vm9, %v2511_v25 }
 0x664   : > { %v2707_v45 = vpop.permute.xlu2 %2706  ;;  %v2513_v8 = vpop.permute.xlu1 %2512 }
 0x665   : > { %2758 = vst.msk [vmem:[%s5977_s13 + $0xa4] sm:$0x1] %vm2329_vm9, %v2707_v45  ;;  %v2950_v45 = vperm.slane %v6259_v16, 1 }
 0x666   : > { %2565 = vst.msk [vmem:[%s5977_s13 + $0x9a] sm:$0x1] %vm2329_vm9, %v2513_v8  ;;  %v2952_v8 = vperm.slane %v2904_v24, 1 }
 0x668   : > { %2989 = vrot.lane.b32.xlu0 %v2929_v53, %s4014_s20  ;;  %v2951_v53 = vperm.slane %v2904_v24, 0 }
 0x66a   : > { %v2517_v49 = vpop.permute.xlu0 %2516  ;;  %3192 = vrot.lane.b32.xlu2 %v3160_v63, %s4013_s10  ;;  %2991 = vrot.lane.b32.xlu1 %v2930_v59, %s4014_s20  ;;  %v2906_v59 = vrot.slane %v6269_v33, 2 }
 0x66b   : > { %2567 = vst.msk [vmem:[%s5977_s13 + $0xaa] sm:$0x1] %vm2329_vm9, %v2517_v49 }
 0x66c   : > { %v2713_v32 = vpop.permute.xlu2 %2712  ;;  %v2519_v34 = vpop.permute.xlu1 %2518  ;;  %v2953_v16 = vperm.slane %v2906_v59, 0 }
 0x66d   : > { %2761 = vst.msk [vmem:[%s5977_s13 + $0xbc] sm:$0x1] %vm2329_vm9, %v2713_v32  ;;  %v2908_v32 = vrot.slane %v6274_v44, 3  ;;  %v2910_v44 = vrot.slane %v6280_v0, 4  ;;  %v2914_v0 = vrot.slane %v6290_v11, 6 }
 0x66e   : > { %2568 = vst.msk [vmem:[%s5977_s13 + $0xb2] sm:$0x1] %vm2329_vm9, %v2519_v34 }
 0x66f   : > { %v2955_v34 = vperm.slane %v2908_v32, 0  ;;  %v2958_v51 = vperm.slane %v2910_v44, 1 }
 0x670   : > { %2995 = vrot.lane.b32.xlu0 %v2932_v31, %s4014_s20  ;;  %v2954_v31 = vperm.slane %v2906_v59, 1  ;;  %v3147_v59 = vrot.slane %v6247_v9, 2 }
 0x672   : > { %v2607_v60 = vpop.permute.xlu0 %2606  ;;  %2999 = vrot.lane.b32.xlu2 %v2934_v38, %s4014_s20  ;;  %2997 = vrot.lane.b32.xlu1 %v2933_v10, %s4014_s20 }
 0x673   : > { %2660 = vst.msk [vmem:[%s5977_s13 + $0x93] sm:$0x1] %vm2329_vm9, %v2607_v60  ;;  %v2956_v60 = vperm.slane %v2908_v32, 1  ;;  %v3149_v32 = vrot.slane %v6247_v9, 4 }
 0x674   : > { %v2797_v27 = vpop.permute.xlu2 %2796  ;;  %v2609_v19 = vpop.permute.xlu1 %2608 }
 0x675   : > { %2851 = vst.msk [vmem:[%s5977_s13 + $0x8d] sm:$0x1] %vm2329_vm9, %v2797_v27  ;;  %v2957_v27 = vperm.slane %v2910_v44, 0 }
 0x676   : > { %2661 = vst.msk [vmem:[%s5977_s13 + $0x9b] sm:$0x1] %vm2329_vm9, %v2609_v19 }
 0x678   : > { %3001 = vrot.lane.b32.xlu0 %v2935_v26, %s4014_s20 }
 0x67a   : > { %v2613_v28 = vpop.permute.xlu0 %2612  ;;  %3005 = vrot.lane.b32.xlu2 %v2937_v56, %s4014_s20  ;;  %3003 = vrot.lane.b32.xlu1 %v2936_v29, %s4014_s20  ;;  %v2959_v29 = vperm.slane %v2912_v6, 0 }
 0x67b   : > { %2663 = vst.msk [vmem:[%s5977_s13 + $0xab] sm:$0x1] %vm2329_vm9, %v2613_v28  ;;  %v2961_v28 = vperm.slane %v2914_v0, 0 }
 0x67c   : > { %v2803_v36 = vpop.permute.xlu2 %2802  ;;  %v2615_v30 = vpop.permute.xlu1 %2614 }
 0x67d   : > { %2854 = vst.msk [vmem:[%s5977_s13 + $0xa5] sm:$0x1] %vm2329_vm9, %v2803_v36  ;;  %v2960_v36 = vperm.slane %v2912_v6, 1 }
 0x67e   : > { %2664 = vst.msk [vmem:[%s5977_s13 + $0xb3] sm:$0x1] %vm2329_vm9, %v2615_v30 }
 0x680   : > { %3007 = vrot.lane.b32.xlu0 %v2938_v4, %s4014_s20  ;;  %v2916_v4 = vrot.slane %v6299_v47, 7 }
 0x682   : > { %v2703_v2 = vpop.permute.xlu0 %2702  ;;  %3011 = vrot.lane.b32.xlu2 %v2940_v58, %s4014_s20  ;;  %3009 = vrot.lane.b32.xlu1 %v2939_v62, %s4014_s20  ;;  %v2962_v58 = vperm.slane %v2914_v0, 1  ;;  %v2964_v62 = vperm.slane %v2916_v4, 1 }
 0x683   : > { %2756 = vst.msk [vmem:[%s5977_s13 + $0x94] sm:$0x1] %vm2329_vm9, %v2703_v2  ;;  %v2963_v2 = vperm.slane %v2916_v4, 0 }
 0x684   : > { %v2809_v20 = vpop.permute.xlu2 %2808  ;;  %v2705_v23 = vpop.permute.xlu1 %2704 }
 0x685   : > { %2857 = vst.msk [vmem:[%s5977_s13 + $0xbd] sm:$0x1] %vm2329_vm9, %v2809_v20  ;;  %v3140_v20 = vrot.slane %v6168_v37, 1 }
 0x686   : > { %2757 = vst.msk [vmem:[%s5977_s13 + $0x9c] sm:$0x1] %vm2329_vm9, %v2705_v23 }
 0x688   : > { %3013 = vrot.lane.b32.xlu0 %v2941_v50, %s4014_s20  ;;  %v3142_v50 = vrot.slane %v6168_v37, 3 }
 0x68a   : > { %v2709_v18 = vpop.permute.xlu0 %2708  ;;  %3017 = vrot.lane.b32.xlu2 %v2943_v13, %s4014_s20  ;;  %3015 = vrot.lane.b32.xlu1 %v2942_v54, %s4014_s20  ;;  %v3141_v13 = vrot.slane %v6168_v37, 2 }
 0x68b   : > { %2759 = vst.msk [vmem:[%s5977_s13 + $0xac] sm:$0x1] %vm2329_vm9, %v2709_v18  ;;  %v3161_v18 = vperm.slane %v3140_v20, 0 }
 0x68c   : > { %v3181_v52 = vpop.permute.xlu2 %3180  ;;  %v2711_v39 = vpop.permute.xlu1 %2710 }
 0x68d   : > { %3250 = vst.msk [vmem:[%s5977_s13 + $0x17] sm:$0x1] %vm2329_vm9, %v3181_v52  ;;  %v3163_v52 = vperm.slane %v3142_v50, 0 }
 0x68e   : > { %2760 = vst.msk [vmem:[%s5977_s13 + $0xb4] sm:$0x1] %vm2329_vm9, %v2711_v39  ;;  %v3162_v39 = vperm.slane %v3141_v13, 0 }
 0x690   : > { %3019 = vrot.lane.b32.xlu0 %v2944_v35, %s4014_s20  ;;  %v3143_v35 = vrot.slane %v6168_v37, 4 }
 0x692   : > { %v2799_v17 = vpop.permute.xlu0 %2798  ;;  %3023 = vrot.lane.b32.xlu2 %v2946_v5, %s4014_s20  ;;  %3021 = vrot.lane.b32.xlu1 %v2945_v57, %s4014_s20 }
 0x693   : > { %2852 = vst.msk [vmem:[%s5977_s13 + $0x95] sm:$0x1] %vm2329_vm9, %v2799_v17  ;;  %v3145_v17 = vrot.slane %v6168_v37, 6 }
 0x694   : > { %v3187_v1 = vpop.permute.xlu2 %3186  ;;  %v2801_v40 = vpop.permute.xlu1 %2800 }
 0x695   : > { %3253 = vst.msk [vmem:[%s5977_s13 + $0x2f] sm:$0x1] %vm2329_vm9, %v3187_v1 }
 0x696   : > { %2853 = vst.msk [vmem:[%s5977_s13 + $0x9d] sm:$0x1] %vm2329_vm9, %v2801_v40  ;;  %v3164_v40 = vperm.slane %v3143_v35, 0 }
 0x698   : > { %3025 = vrot.lane.b32.xlu0 %v2947_v15, %s4014_s20  ;;  %v3166_v15 = vperm.slane %v3145_v17, 0 }
 0x69a   : > { %v2805_v61 = vpop.permute.xlu0 %2804  ;;  %3029 = vrot.lane.b32.xlu2 %v2949_v14, %s4014_s20  ;;  %3027 = vrot.lane.b32.xlu1 %v2948_v42, %s4014_s20  ;;  %v3165_v14 = vperm.slane %v3144_v48, 0 }
 0x69b   : > { %2855 = vst.msk [vmem:[%s5977_s13 + $0xad] sm:$0x1] %vm2329_vm9, %v2805_v61 }
 0x69c   : > { %v6844_v55 = vpop.permute.xlu2 %2969  ;;  %v2807_v25 = vpop.permute.xlu1 %2806 }
 0x69d   : > { %2856 = vst.msk [vmem:[%s5977_s13 + $0xb5] sm:$0x1] %vm2329_vm9, %v2807_v25  ;;  %v3146_v25 = vrot.slane %v6247_v9, 1 }
 0x6a0   : > { %3031 = vrot.lane.b32.xlu0 %v2950_v45, %s4014_s20  ;;  %v3167_v45 = vperm.slane %v6175_v7, 0 }
 0x6a2   : > { %v3177_v63 = vpop.permute.xlu0 %3176  ;;  %3035 = vrot.lane.b32.xlu2 %v2952_v8, %s4014_s20  ;;  %3033 = vrot.lane.b32.xlu1 %v2951_v53, %s4014_s20  ;;  %v3169_v8 = vperm.slane %v3146_v25, 0  ;;  %v3168_v53 = vperm.slane %v6247_v9, 0 }
 0x6a3   : > { %3248 = vst.msk [vmem:[%s5977_s13 + $0x7] sm:$0x1] %vm2329_vm9, %v3177_v63 }
 0x6a4   : > { %v2976_v3 = vpop.permute.xlu2 %2975  ;;  %v3179_v49 = vpop.permute.xlu1 %3178 }
 0x6a5   : > { %3249 = vst.msk [vmem:[%s5977_s13 + $0xf] sm:$0x1] %vm2329_vm9, %v3179_v49 }
 0x6a8   : > { %3037 = vrot.lane.b32.xlu0 %v2953_v16, %s4014_s20  ;;  %v3148_v16 = vrot.slane %v6247_v9, 3 }
 0x6aa   : > { %v3183_v38 = vpop.permute.xlu0 %3182  ;;  %3041 = vrot.lane.b32.xlu2 %v2955_v34, %s4014_s20  ;;  %3039 = vrot.lane.b32.xlu1 %v2954_v31, %s4014_s20  ;;  %v3170_v34 = vperm.slane %v3147_v59, 0  ;;  %v3172_v31 = vperm.slane %v3149_v32, 0 }
 0x6ab   : > { %3251 = vst.msk [vmem:[%s5977_s13 + $0x1f] sm:$0x1] %vm2329_vm9, %v3183_v38  ;;  %v3171_v38 = vperm.slane %v3148_v16, 0 }
 0x6ac   : > { %v6864_v33 = vpop.permute.xlu2 %2981  ;;  %v3185_v10 = vpop.permute.xlu1 %3184 }
 0x6ad   : > { %3252 = vst.msk [vmem:[%s5977_s13 + $0x27] sm:$0x1] %vm2329_vm9, %v3185_v10  ;;  %v3150_v10 = vrot.slane %v6247_v9, 5 }
 0x6af   : > { %v3173_v6 = vperm.slane %v3150_v10, 0 }
 0x6b0   : > { %3043 = vrot.lane.b32.xlu0 %v2956_v60, %s4014_s20 }
 0x6b2   : > { %v3189_v19 = vpop.permute.xlu0 %3188  ;;  %3047 = vrot.lane.b32.xlu2 %v2958_v51, %s4014_s20  ;;  %3045 = vrot.lane.b32.xlu1 %v2957_v27, %s4014_s20  ;;  %v3151_v27 = vrot.slane %v6247_v9, 6 }
 0x6b3   : > { %3254 = vst.msk [vmem:[%s5977_s13 + $0x37] sm:$0x1] %vm2329_vm9, %v3189_v19 }
 0x6b4   : > { %v2988_v26 = vpop.permute.xlu2 %2987  ;;  %v3191_v56 = vpop.permute.xlu1 %3190 }
 0x6b5   : > { %3255 = vst.msk [vmem:[%s5977_s13 + $0x3f] sm:$0x1] %vm2329_vm9, %v3191_v56  ;;  %v3174_v56 = vperm.slane %v3151_v27, 0 }
 0x6b8   : > { %3049 = vrot.lane.b32.xlu0 %v2959_v29, %s4014_s20 }
 0x6ba   : > { %v2966_v30 = vpop.permute.xlu0 %2965  ;;  %3053 = vrot.lane.b32.xlu2 %v2961_v28, %s4014_s20  ;;  %3051 = vrot.lane.b32.xlu1 %v2960_v36, %s4014_s20 }
 0x6bc   : > { %v6881_v22 = vpop.permute.xlu2 %2993  ;;  %v2968_v12 = vpop.permute.xlu1 %2967 }
 0x6bd   : > { %v3062_v11 = vsel %vm3061_vm2, %v2966_v30, %v2968_v12 }
 0x6be   : > { %3110 = vst.msk [vmem:[%s5977_s13 + $0x6] sm:$0x1] %vm2329_vm9, %v3062_v11 }
 0x6c0   : > { %3055 = vrot.lane.b32.xlu0 %v2962_v58, %s4014_s20 }
 0x6c2   : > { %v2972_v41 = vpop.permute.xlu0 %2971  ;;  %3059 = vrot.lane.b32.xlu2 %v2964_v62, %s4014_s20  ;;  %3057 = vrot.lane.b32.xlu1 %v2963_v2, %s4014_s20 }
 0x6c3   : > { %v3063_v47 = vsel %vm3061_vm2, %v6844_v55, %v2972_v41 }
 0x6c4   : > { %3111 = vst.msk [vmem:[%s5977_s13 + $0xe] sm:$0x1] %vm2329_vm9, %v3063_v47  ;;  %v3193_v23 = vpop.permute.xlu2 %3192  ;;  %v2974_v46 = vpop.permute.xlu1 %2973 }
 0x6c5   : > { %3256 = vst.msk [vmem:[%s5977_s13 + $0x47] sm:$0x1] %vm2329_vm9, %v3193_v23  ;;  %v3064_v54 = vsel %vm3061_vm2, %v2974_v46, %v2976_v3 }
 0x6c6   : > { %3112 = vst.msk [vmem:[%s5977_s13 + $0x16] sm:$0x1] %vm2329_vm9, %v3064_v54 }
 0x6c8   : > { %3194 = vrot.lane.b32.xlu0 %v3161_v18, %s4013_s10 }
 0x6ca   : > { %v2978_v21 = vpop.permute.xlu0 %2977  ;;  %3198 = vrot.lane.b32.xlu2 %v3163_v52, %s4013_s10  ;;  %3196 = vrot.lane.b32.xlu1 %v3162_v39, %s4013_s10 }
 0x6cc   : > { %v3000_v5 = vpop.permute.xlu2 %2999  ;;  %v2980_v57 = vpop.permute.xlu1 %2979 }
 0x6cd   : > { %v3065_v1 = vsel %vm3061_vm2, %v2978_v21, %v2980_v57  ;;  %v3361_v27 = vld [vmem:[%s5977_s13 + $0x10] sm:$0xff] (%p4096_p5) }
 0x6ce   : > { %3113 = vst.msk [vmem:[%s5977_s13 + $0x1e] sm:$0x1] %vm2329_vm9, %v3065_v1 }
 0x6cf   : > { %3362 = vst [vmem:[%s7033_s8 + $0x20] sm:$0xff] (%p4096_p5), %v3361_v27 }
 0x6d0   : > { %3200 = vrot.lane.b32.xlu0 %v3164_v40, %s4013_s10 }
 0x6d2   : > { %v2984_v42 = vpop.permute.xlu0 %2983  ;;  %3204 = vrot.lane.b32.xlu2 %v3166_v15, %s4013_s10  ;;  %3202 = vrot.lane.b32.xlu1 %v3165_v14, %s4013_s10 }
 0x6d3   : > { %v3066_v61 = vsel %vm3061_vm2, %v6864_v33, %v2984_v42 }
 0x6d4   : > { %3114 = vst.msk [vmem:[%s5977_s13 + $0x26] sm:$0x1] %vm2329_vm9, %v3066_v61  ;;  %v3006_v37 = vpop.permute.xlu2 %3005  ;;  %v2986_v55 = vpop.permute.xlu1 %2985 }
 0x6d5   : > { %v3067_v24 = vsel %vm3061_vm2, %v2986_v55, %v2988_v26  ;;  %v3175_v26 = vperm.slane %v6254_v43, 0 }
 0x6d6   : > { %3115 = vst.msk [vmem:[%s5977_s13 + $0x2e] sm:$0x1] %vm2329_vm9, %v3067_v24 }
 0x6d8   : > { %3206 = vrot.lane.b32.xlu0 %v3167_v45, %s4013_s10 }
 0x6da   : > { %v2990_v63 = vpop.permute.xlu0 %2989  ;;  %3210 = vrot.lane.b32.xlu2 %v3169_v8, %s4013_s10  ;;  %3208 = vrot.lane.b32.xlu1 %v3168_v53, %s4013_s10 }
 0x6dc   : > { %v3012_v3 = vpop.permute.xlu2 %3011  ;;  %v2992_v49 = vpop.permute.xlu1 %2991 }
 0x6dd   : > { %v3068_v7 = vsel %vm3061_vm2, %v2990_v63, %v2992_v49 }
 0x6de   : > { %3116 = vst.msk [vmem:[%s5977_s13 + $0x36] sm:$0x1] %vm2329_vm9, %v3068_v7 }
 0x6e0   : > { %3212 = vrot.lane.b32.xlu0 %v3170_v34, %s4013_s10 }
 0x6e2   : > { %v2996_v33 = vpop.permute.xlu0 %2995  ;;  %3216 = vrot.lane.b32.xlu2 %v3172_v31, %s4013_s10  ;;  %3214 = vrot.lane.b32.xlu1 %v3171_v38, %s4013_s10 }
 0x6e3   : > { %v3069_v44 = vsel %vm3061_vm2, %v6881_v22, %v2996_v33 }
 0x6e4   : > { %3117 = vst.msk [vmem:[%s5977_s13 + $0x3e] sm:$0x1] %vm2329_vm9, %v3069_v44  ;;  %v3018_v60 = vpop.permute.xlu2 %3017  ;;  %v2998_v51 = vpop.permute.xlu1 %2997 }
 0x6e5   : > { %v3070_v19 = vsel %vm3061_vm2, %v2998_v51, %v3000_v5  ;;  %v3359_v51 = vld [vmem:[%s5977_s13 + $0x8] sm:$0xff] (%p4096_p5) }
 0x6e6   : > { %3118 = vst.msk [vmem:[%s5977_s13 + $0x46] sm:$0x1] %vm2329_vm9, %v3070_v19  ;;  %v3363_v19 = vld [vmem:[%s5977_s13 + $0x18] sm:$0xff] (%p4096_p5) }
 0x6e7   : > { %3360 = vst [vmem:[%s7033_s8 + $0x10] sm:$0xff] (%p4096_p5), %v3359_v51 }
 0x6e8   : > { %3218 = vrot.lane.b32.xlu0 %v3173_v6, %s4013_s10  ;;  %v3365_v6 = vld [vmem:[%s5977_s13 + $0x20] sm:$0xff] (%p4096_p5)  ;;  %3364 = vst [vmem:[%s7033_s8 + $0x30] sm:$0xff] (%p4096_p5), %v3363_v19 }
 0x6e9   : > { %3366 = vst [vmem:[%s7033_s8 + $0x40] sm:$0xff] (%p4096_p5), %v3365_v6 }
 0x6ea   : > { %v3002_v0 = vpop.permute.xlu0 %3001  ;;  %3222 = vrot.lane.b32.xlu2 %v3175_v26, %s4013_s10  ;;  %3220 = vrot.lane.b32.xlu1 %v3174_v56, %s4013_s10  ;;  %v3367_v26 = vld [vmem:[%s5977_s13 + $0x28] sm:$0xff] (%p4096_p5)  ;;  %v3369_v56 = vld [vmem:[%s5977_s13 + $0x30] sm:$0xff] (%p4096_p5) }
 0x6eb   : > { %3368 = vst [vmem:[%s7033_s8 + $0x50] sm:$0xff] (%p4096_p5), %v3367_v26 }
 0x6ec   : > { %v3024_v29 = vpop.permute.xlu2 %3023  ;;  %v3004_v9 = vpop.permute.xlu1 %3003  ;;  %3370 = vst [vmem:[%s7033_s8 + $0x60] sm:$0xff] (%p4096_p5), %v3369_v56 }
 0x6ed   : > { %v3071_v28 = vsel %vm3061_vm2, %v3002_v0, %v3004_v9  ;;  %v3371_v0 = vld [vmem:[%s5977_s13 + $0x38] sm:$0xff] (%p4096_p5) }
 0x6ee   : > { %3119 = vst.msk [vmem:[%s5977_s13 + $0x4e] sm:$0x1] %vm2329_vm9, %v3071_v28 }
 0x6ef   : > { %3372 = vst [vmem:[%s7033_s8 + $0x70] sm:$0xff] (%p4096_p5), %v3371_v0 }
 0x6f2   : > { %v3008_v36 = vpop.permute.xlu0 %3007 }
 0x6f3   : > { %v3072_v30 = vsel %vm3061_vm2, %v3006_v37, %v3008_v36 }
 0x6f4   : > { %3120 = vst.msk [vmem:[%s5977_s13 + $0x56] sm:$0x1] %vm2329_vm9, %v3072_v30  ;;  %v3030_v43 = vpop.permute.xlu2 %3029  ;;  %v3010_v22 = vpop.permute.xlu1 %3009 }
 0x6f5   : > { %v3073_v12 = vsel %vm3061_vm2, %v3010_v22, %v3012_v3 }
 0x6f6   : > { %3121 = vst.msk [vmem:[%s5977_s13 + $0x5e] sm:$0x1] %vm2329_vm9, %v3073_v12 }
 0x6fa   : > { %v3014_v4 = vpop.permute.xlu0 %3013 }
 0x6fc   : > { %v3036_v11 = vpop.permute.xlu2 %3035  ;;  %v3016_v58 = vpop.permute.xlu1 %3015 }
 0x6fd   : > { %v3074_v62 = vsel %vm3061_vm2, %v3014_v4, %v3016_v58 }
 0x6fe   : > { %3122 = vst.msk [vmem:[%s5977_s13 + $0x66] sm:$0x1] %vm2329_vm9, %v3074_v62 }
 0x702   : > { %v3020_v2 = vpop.permute.xlu0 %3019 }
 0x703   : > { %v3075_v41 = vsel %vm3061_vm2, %v3018_v60, %v3020_v2  ;;  %v3357_v60 = vld [vmem:[%s5977_s13] sm:$0xff] (%p4096_p5) }
 0x704   : > { %3123 = vst.msk [vmem:[%s5977_s13 + $0x6e] sm:$0x1] %vm2329_vm9, %v3075_v41  ;;  %v3042_v20 = vpop.permute.xlu2 %3041  ;;  %v3022_v47 = vpop.permute.xlu1 %3021 }
 0x705   : > { %v3076_v23 = vsel %vm3061_vm2, %v3022_v47, %v3024_v29  ;;  %3358 = vst [vmem:[%s7033_s8] sm:$0xff] (%p4096_p5), %v3357_v60  ;;  %v3373_v29 = vld [vmem:[%s5977_s13 + $0x40] sm:$0xff] (%p4096_p5) }
 0x706   : > { %3124 = vst.msk [vmem:[%s5977_s13 + $0x76] sm:$0x1] %vm2329_vm9, %v3076_v23 }
 0x707   : > { %3374 = vst [vmem:[%s7033_s8 + $0x80] sm:$0xff] (%p4096_p5), %v3373_v29 }
 0x70a   : > { %v3026_v46 = vpop.permute.xlu0 %3025 }
 0x70c   : > { %v3048_v50 = vpop.permute.xlu2 %3047  ;;  %v3028_v13 = vpop.permute.xlu1 %3027 }
 0x70d   : > { %v3077_v54 = vsel %vm3061_vm2, %v3026_v46, %v3028_v13 }
 0x70e   : > { %3125 = vst.msk [vmem:[%s5977_s13 + $0x7e] sm:$0x1] %vm2329_vm9, %v3077_v54 }
 0x712   : > { %v3032_v18 = vpop.permute.xlu0 %3031 }
 0x713   : > { %v3078_v52 = vsel %vm3061_vm2, %v3030_v43, %v3032_v18 }
 0x714   : > { %3126 = vst.msk [vmem:[%s5977_s13 + $0x86] sm:$0x1] %vm2329_vm9, %v3078_v52  ;;  %v3054_v39 = vpop.permute.xlu2 %3053  ;;  %v3034_v21 = vpop.permute.xlu1 %3033 }
 0x715   : > { %v3079_v35 = vsel %vm3061_vm2, %v3034_v21, %v3036_v11 }
 0x716   : > { %3127 = vst.msk [vmem:[%s5977_s13 + $0x8e] sm:$0x1] %vm2329_vm9, %v3079_v35 }
 0x71a   : > { %v3038_v5 = vpop.permute.xlu0 %3037 }
 0x71c   : > { %v3060_v57 = vpop.permute.xlu2 %3059  ;;  %v3040_v17 = vpop.permute.xlu1 %3039 }
 0x71d   : > { %v3080_v48 = vsel %vm3061_vm2, %v3038_v5, %v3040_v17 }
 0x71e   : > { %3128 = vst.msk [vmem:[%s5977_s13 + $0x96] sm:$0x1] %vm2329_vm9, %v3080_v48 }
 0x722   : > { %v3044_v1 = vpop.permute.xlu0 %3043 }
 0x723   : > { %v3081_v40 = vsel %vm3061_vm2, %v3042_v20, %v3044_v1 }
 0x724   : > { %3129 = vst.msk [vmem:[%s5977_s13 + $0x9e] sm:$0x1] %vm2329_vm9, %v3081_v40  ;;  %v3199_v15 = vpop.permute.xlu2 %3198  ;;  %v3046_v14 = vpop.permute.xlu1 %3045 }
 0x725   : > { %3259 = vst.msk [vmem:[%s5977_s13 + $0x5f] sm:$0x1] %vm2329_vm9, %v3199_v15  ;;  %v3082_v42 = vsel %vm3061_vm2, %v3046_v14, %v3048_v50 }
 0x726   : > { %3130 = vst.msk [vmem:[%s5977_s13 + $0xa6] sm:$0x1] %vm2329_vm9, %v3082_v42 }
 0x72a   : > { %v3050_v61 = vpop.permute.xlu0 %3049 }
 0x72c   : > { %v3205_v37 = vpop.permute.xlu2 %3204  ;;  %v3052_v55 = vpop.permute.xlu1 %3051  ;;  %v3379_v36 = vld [vmem:[%s5977_s13 + $0x58] sm:$0xff] (%p4096_p5) }
 0x72d   : > { %3262 = vst.msk [vmem:[%s5977_s13 + $0x77] sm:$0x1] %vm2329_vm9, %v3205_v37  ;;  %v3083_v25 = vsel %vm3061_vm2, %v3050_v61, %v3052_v55 }
 0x72e   : > { %3131 = vst.msk [vmem:[%s5977_s13 + $0xae] sm:$0x1] %vm2329_vm9, %v3083_v25 }
 0x72f   : > { %3380 = vst [vmem:[%s7033_s8 + $0xb0] sm:$0xff] (%p4096_p5), %v3379_v36 }
 0x732   : > { %v3056_v24 = vpop.permute.xlu0 %3055 }
 0x733   : > { %v3084_v45 = vsel %vm3061_vm2, %v3054_v39, %v3056_v24 }
 0x734   : > { %3132 = vst.msk [vmem:[%s5977_s13 + $0xb6] sm:$0x1] %vm2329_vm9, %v3084_v45  ;;  %v3211_v8 = vpop.permute.xlu2 %3210  ;;  %v3058_v53 = vpop.permute.xlu1 %3057  ;;  %v3385_v22 = vld [vmem:[%s5977_s13 + $0x70] sm:$0xff] (%p4096_p5) }
 0x735   : > { %3265 = vst.msk [vmem:[%s5977_s13 + $0x8f] sm:$0x1] %vm2329_vm9, %v3211_v8  ;;  %v3085_v63 = vsel %vm3061_vm2, %v3058_v53, %v3060_v57 }
 0x736   : > { %3133 = vst.msk [vmem:[%s5977_s13 + $0xbe] sm:$0x1] %vm2329_vm9, %v3085_v63 }
 0x737   : > { %3386 = vst [vmem:[%s7033_s8 + $0xe0] sm:$0xff] (%p4096_p5), %v3385_v22 }
 0x73a   : > { %v3195_v59 = vpop.permute.xlu0 %3194 }
 0x73b   : > { %3257 = vst.msk [vmem:[%s5977_s13 + $0x4f] sm:$0x1] %vm2329_vm9, %v3195_v59 }
 0x73c   : > { %v3217_v3 = vpop.permute.xlu2 %3216  ;;  %v3197_v49 = vpop.permute.xlu1 %3196  ;;  %v3391_v11 = vld [vmem:[%s5977_s13 + $0x88] sm:$0xff] (%p4096_p5) }
 0x73d   : > { %3268 = vst.msk [vmem:[%s5977_s13 + $0xa7] sm:$0x1] %vm2329_vm9, %v3217_v3 }
 0x73e   : > { %3258 = vst.msk [vmem:[%s5977_s13 + $0x57] sm:$0x1] %vm2329_vm9, %v3197_v49 }
 0x73f   : > { %3392 = vst [vmem:[%s7033_s8 + $0x110] sm:$0xff] (%p4096_p5), %v3391_v11 }
 0x742   : > { %v3201_v32 = vpop.permute.xlu0 %3200  ;;  %v3375_v9 = vld [vmem:[%s5977_s13 + $0x48] sm:$0xff] (%p4096_p5) }
 0x743   : > { %3260 = vst.msk [vmem:[%s5977_s13 + $0x67] sm:$0x1] %vm2329_vm9, %v3201_v32 }
 0x744   : > { %v3223_v16 = vpop.permute.xlu2 %3222  ;;  %v3203_v7 = vpop.permute.xlu1 %3202  ;;  %3376 = vst [vmem:[%s7033_s8 + $0x90] sm:$0xff] (%p4096_p5), %v3375_v9  ;;  %v3397_v2 = vld [vmem:[%s5977_s13 + $0xa0] sm:$0xff] (%p4096_p5) }
 0x745   : > { %3271 = vst.msk [vmem:[%s5977_s13 + $0xbf] sm:$0x1] %vm2329_vm9, %v3223_v16  ;;  %v3377_v28 = vld [vmem:[%s5977_s13 + $0x50] sm:$0xff] (%p4096_p5) }
 0x746   : > { %3261 = vst.msk [vmem:[%s5977_s13 + $0x6f] sm:$0x1] %vm2329_vm9, %v3203_v7 }
 0x747   : > { %3378 = vst [vmem:[%s7033_s8 + $0xa0] sm:$0xff] (%p4096_p5), %v3377_v28 }
 0x748   : > { %3398 = vst [vmem:[%s7033_s8 + $0x140] sm:$0xff] (%p4096_p5), %v3397_v2 }
 0x74a   : > { %v3207_v34 = vpop.permute.xlu0 %3206  ;;  %v3381_v30 = vld [vmem:[%s5977_s13 + $0x60] sm:$0xff] (%p4096_p5) }
 0x74b   : > { %3263 = vst.msk [vmem:[%s5977_s13 + $0x7f] sm:$0x1] %vm2329_vm9, %v3207_v34 }
 0x74c   : > { %v3209_v31 = vpop.permute.xlu1 %3208  ;;  %3382 = vst [vmem:[%s7033_s8 + $0xc0] sm:$0xff] (%p4096_p5), %v3381_v30  ;;  %v3403_v47 = vld [vmem:[%s5977_s13 + $0xb8] sm:$0xff] (%p4096_p5) }
 0x74d   : > { %3264 = vst.msk [vmem:[%s5977_s13 + $0x87] sm:$0x1] %vm2329_vm9, %v3209_v31  ;;  %v3383_v43 = vld [vmem:[%s5977_s13 + $0x68] sm:$0xff] (%p4096_p5) }
 0x74e   : > { %3384 = vst [vmem:[%s7033_s8 + $0xd0] sm:$0xff] (%p4096_p5), %v3383_v43 }
 0x74f   : > { %3404 = vst [vmem:[%s7033_s8 + $0x170] sm:$0xff] (%p4096_p5), %v3403_v47 }
 0x752   : > { %v3213_v38 = vpop.permute.xlu0 %3212  ;;  %v3387_v12 = vld [vmem:[%s5977_s13 + $0x78] sm:$0xff] (%p4096_p5) }
 0x753   : > { %3266 = vst.msk [vmem:[%s5977_s13 + $0x97] sm:$0x1] %vm2329_vm9, %v3213_v38 }
 0x754   : > { %v3215_v33 = vpop.permute.xlu1 %3214  ;;  %v3389_v4 = vld [vmem:[%s5977_s13 + $0x80] sm:$0xff] (%p4096_p5)  ;;  %3388 = vst [vmem:[%s7033_s8 + $0xf0] sm:$0xff] (%p4096_p5), %v3387_v12 }
 0x755   : > { %3267 = vst.msk [vmem:[%s5977_s13 + $0x9f] sm:$0x1] %vm2329_vm9, %v3215_v33 }
 0x756   : > { %3390 = vst [vmem:[%s7033_s8 + $0x100] sm:$0xff] (%p4096_p5), %v3389_v4 }
 0x759   : > { %3278 = sbr.rel (!%p4096_p5) target bundleno = 1894 (0x766), region = 48 }
 0x75a   : > { %v3219_v10 = vpop.permute.xlu0 %3218  ;;  %v3393_v58 = vld [vmem:[%s5977_s13 + $0x90] sm:$0xff] (%p4096_p5) }
 0x75b   : > { %3269 = vst.msk [vmem:[%s5977_s13 + $0xaf] sm:$0x1] %vm2329_vm9, %v3219_v10 }
 0x75c   : > { %v3221_v44 = vpop.permute.xlu1 %3220  ;;  %v3395_v62 = vld [vmem:[%s5977_s13 + $0x98] sm:$0xff] (%p4096_p5)  ;;  %3394 = vst [vmem:[%s7033_s8 + $0x120] sm:$0xff] (%p4096_p5), %v3393_v58 }
 0x75d   : > { %3270 = vst.msk [vmem:[%s5977_s13 + $0xb7] sm:$0x1] %vm2329_vm9, %v3221_v44 }
 0x75e   : > { %3396 = vst [vmem:[%s7033_s8 + $0x130] sm:$0xff] %v3395_v62 }
 0x762   : > { %v3399_v41 = vld [vmem:[%s5977_s13 + $0xa8] sm:$0xff] }
 0x763   : > { %3400 = vst [vmem:[%s7033_s8 + $0x150] sm:$0xff] %v3399_v41 }
 0x764   : > { %v3401_v20 = vld [vmem:[%s5977_s13 + $0xb0] sm:$0xff] }
 0x765   : > { %3402 = vst [vmem:[%s7033_s8 + $0x160] sm:$0xff] %v3401_v20 }
 0x766 PF: > { %s16_s27 = sadd.s32 1, %s3999_s27   ;;  %s7235_s21 = smov %s3979_s22 }
 0x767   : > { %p13_p11 = scmp.ge.s32.totalorder %s16_s27, 6   ;;  %s7236_s22 = smov %s4107_s12 }
 0x768   : > { %s7237_s23 = smov %s3991_s25  ;;  %s7238_s24 = smov %s3995_s26 }
 0x769   : > { %s7239_s25 = smov %s7242_s28  ;;  %s7240_s26 = smov %s7246_s29 }
 0x76a   :  { %15 = sbr.rel (!%p13_p11) target bundleno = 4 (0x4), region = 115 }

</bundles_post_ra>
